<compile_context>
chip_gen: v6e
topology: v6e:2x2x1
jax: 0.10.0
libtpu: 0.0.40
codegen_flags: <defaults>
</compile_context>

<pallas_src>
import functools
import numpy as np

import jax
import jax.numpy as jnp
from jax.experimental import pallas as pl
from jax.experimental.pallas import tpu as pltpu


# ----------------------------------------------------------------------------
# Fixed SRM filter bank (deterministic, from the module's __init__).
# ----------------------------------------------------------------------------
_q = [4.0, 12.0, 2.0]
_f1 = np.asarray([[0, 0, 0, 0, 0],
                  [0, -1, 2, -1, 0],
                  [0, 2, -4, 2, 0],
                  [0, -1, 2, -1, 0],
                  [0, 0, 0, 0, 0]], dtype=float) / _q[0]
_f2 = np.asarray([[-1, 2, -2, 2, -1],
                  [2, -6, 8, -6, 2],
                  [-2, 8, -12, 8, -2],
                  [2, -6, 8, -6, 2],
                  [-1, 2, -2, 2, -1]], dtype=float) / _q[1]
_f3 = np.asarray([[0, 0, 0, 0, 0],
                  [0, 0, 0, 0, 0],
                  [0, 1, -2, 1, 0],
                  [0, 0, 0, 0, 0],
                  [0, 0, 0, 0, 0]], dtype=float) / _q[2]
# Only the pure-JAX reference uses the dense bank; the kernel bakes in the
# factorized form (f1 rank-1 separable, f2 row-symmetric, f3 single row).
SRM_W = np.asarray([[_f1, _f1, _f1],
                    [_f2, _f2, _f2],
                    [_f3, _f3, _f3]]).astype(np.float32)

OUT_CH, IN_CH, KH, KW = SRM_W.shape
PAD = 2
POOL_OUT = 10


def _adaptive_bounds(i, in_size, out_size):
    # PyTorch AdaptiveMaxPool2d bin boundaries.
    start = (i * in_size) // out_size
    end = -((-(i + 1) * in_size) // out_size)  # ceil((i+1)*in/out)
    return start, end


# ----------------------------------------------------------------------------
# Pallas kernel: one packed group of NB images per grid step.
# ----------------------------------------------------------------------------
def _srm_kernel(bias_ref, x_ref, o_ref, pad_ref, *, H, W, NB, out_size):
    # bias_ref: SMEM (3,) f32
    # x_ref:    VMEM (3, H, NB*W)  NB images packed along lanes, native dtype
    # o_ref:    VMEM (out_size, NB*out_size) f32
    # pad_ref:  VMEM (H+4, NB*(W+4)) f32  padded channel-pre-sum plane
    f32 = jnp.float32
    Wp = W + 2 * PAD              # per-image padded width (gutter == conv pad)
    Wt = NB * Wp                  # padded-plane width
    Wc = Wt - 2 * PAD             # conv-output width
    Hp = H + 2 * PAD

    # Deferred-bias constants: work at 2x scale with b3 subtracted; max()
    # commutes with this positive affine map, so the true value is recovered
    # after all pooling with one 0.5*x + b3 on the tiny pooled array.
    b3 = bias_ref[2]
    db1 = 2.0 * (bias_ref[0] - b3)
    db2 = 2.0 * (bias_ref[1] - b3)
    db1_row = jnp.full((1, Wc), db1, dtype=f32)   # splats hoisted out of the loop
    db2_row = jnp.full((1, Wc), db2, dtype=f32)

    # ---- Pass A: channel pre-sum (SRM weights repeat the same filter across
    # input channels, so conv(x, W)[oc] == conv(x0+x1+x2, f_oc)), assembled
    # with per-image zero gutters and written with one full-width interior
    # store + two halo-row stores. ----
    xsum = (x_ref[0].astype(f32) + x_ref[1].astype(f32) + x_ref[2].astype(f32))
    zg2 = jnp.zeros((H, PAD), f32)
    zg4 = jnp.zeros((H, 2 * PAD), f32)
    pieces = [zg2]
    for k in range(NB):
        if k:
            pieces.append(zg4)
        pieces.append(xsum[:, k * W:(k + 1) * W])
    pieces.append(zg2)
    pad_ref[0:PAD, :] = jnp.zeros((PAD, Wt), f32)
    pad_ref[PAD:PAD + H, :] = jnp.concatenate(pieces, axis=1)
    pad_ref[PAD + H:Hp, :] = jnp.zeros((PAD, Wt), f32)

    # ---- Pass B: per pool-row strip: factorized SRM conv (2x scaled) +
    # channel max + row max + incremental column pooling.  Only one
    # (1, NB*out) row per strip stays live. ----
    out_rows = []
    for i in range(out_size):
        ys, ye = _adaptive_bounds(i, H, out_size)
        sh = ye - ys
        xp = pad_ref[ys:ye + 2 * PAD, :]                       # (sh+4, Wt)

        c2 = xp[:, 2:2 + Wc]
        s13 = xp[:, 1:1 + Wc] + xp[:, 3:3 + Wc]
        s04 = xp[:, 0:Wc] + xp[:, 4:4 + Wc]
        u = s13 - 2.0 * c2          # horizontal [1,-2,1] basis (filters 1 & 3)
        v = s04 - 2.0 * c2
        uc = u[PAD:PAD + sh, :]

        # filter3 (x2): [1,-2,1]/2 on the center row -> just uc.
        out3 = uc
        # filter1 (x2): -1/4 * outer([1,-2,1],[1,-2,1])  (rank-1 separable).
        out1 = (-0.5) * (u[1:1 + sh, :] - 2.0 * uc + u[3:3 + sh, :]) + db1_row
        # filter2 (x2): row-symmetric (row0==row4, row1==row3).
        ra = (2.0 * u - v) * (1.0 / 6.0)
        rb = (v - 3.0 * u) * (1.0 / 3.0)
        rc = (4.0 * u - v) * (1.0 / 3.0)
        out2 = (ra[0:sh, :] + rb[1:1 + sh, :] + rc[2:2 + sh, :]
                + rb[3:3 + sh, :] + ra[4:4 + sh, :]) + db2_row

        cmax = jnp.maximum(jnp.maximum(out1, out2), out3)      # (sh, Wc)
        rmax = jnp.max(cmax, axis=0, keepdims=True)            # (1, Wc)

        # Column adaptive max-pool, straight to (1, NB*out_size): image k's
        # conv-output columns live at [k*Wp, k*Wp + W).
        cols = []
        for k in range(NB):
            rk = rmax[:, k * Wp:k * Wp + W]                    # (1, W)
            for j in range(out_size):
                cs, ce = _adaptive_bounds(j, W, out_size)
                cols.append(jnp.max(rk[:, cs:ce], axis=1, keepdims=True))
        out_rows.append(jnp.concatenate(cols, axis=1))         # (1, NB*out)

    pooled2 = jnp.concatenate(out_rows, axis=0)                # (out, NB*out)
    o_ref[...] = jax.nn.sigmoid(0.5 * pooled2 + b3)


# ----------------------------------------------------------------------------
# Wrapper
# ----------------------------------------------------------------------------
def _choose_pack(N, W, lane_cap=1024, min_lanes=160):
    """Number of images packed per grid step along the lane (W) axis."""
    wp = W + 2 * PAD
    fit = [d for d in range(1, N + 1) if N % d == 0 and d * wp <= lane_cap]
    nb = max(fit) if fit else 1
    # v7x has 2 TensorCores: keep >= 2 grid steps when it doesn't starve lanes.
    if N // nb < 2:
        alt = [d for d in fit if N // d >= 2 and d * wp >= min_lanes]
        if alt:
            nb = max(alt)
    return nb


def srm_layer(x, bias):
    N, C, H, W = x.shape
    assert C == IN_CH
    NB = _choose_pack(N, W)
    G = N // NB
    Wp = W + 2 * PAD
    Hp = H + 2 * PAD

    # Pack NB images along the lane dimension (layout plumbing only; the
    # per-image zero gutters are added in-kernel, not in HBM).
    xg = (x.reshape(G, NB, C, H, W)
           .transpose(0, 2, 3, 1, 4)
           .reshape(G, C, H, NB * W))

    kernel = functools.partial(_srm_kernel, H=H, W=W, NB=NB, out_size=POOL_OUT)

    # Explicit scoped-VMEM budget: double-buffered input block + padded plane
    # + working values, with headroom (defaults of 16/32 MiB bind first).
    in_block = 2 * C * H * NB * W * x.dtype.itemsize
    pad_plane = Hp * NB * Wp * 4
    out_block = 2 * POOL_OUT * NB * POOL_OUT * 4
    work = 8 * Hp * NB * Wp * 4
    vmem_limit = int(max(32 << 20,
                         min(2 * (in_block + pad_plane + out_block + work),
                             120 << 20)))

    # TODO(synk): for very large H*W the whole image + padded plane no longer
    # fits VMEM (v7x: 64 MiB) -- add an H-strip grid axis with a 4-row halo
    # (manual strip DMA) so the footprint becomes O(strip_h * W).
    out = pl.pallas_call(
        kernel,
        out_shape=jax.ShapeDtypeStruct((G, POOL_OUT, NB * POOL_OUT), jnp.float32),
        grid=(G,),
        in_specs=[
            pl.BlockSpec(memory_space=pltpu.MemorySpace.SMEM),       # bias (3,)
            pl.BlockSpec((pl.Squeezed(), C, H, NB * W),
                         lambda g: (g, 0, 0, 0)),                    # packed input
        ],
        out_specs=pl.BlockSpec((pl.Squeezed(), POOL_OUT, NB * POOL_OUT),
                               lambda g: (g, 0, 0)),
        scratch_shapes=[pltpu.VMEM((Hp, NB * Wp), jnp.float32)],     # padded plane
        compiler_params=pltpu.CompilerParams(
            dimension_semantics=("parallel",),
            vmem_limit_bytes=vmem_limit),
    )(bias.astype(jnp.float32), xg)

    # Un-pack: (G, 10, NB*10) -> (N, 10, 10).
    return (out.reshape(G, POOL_OUT, NB, POOL_OUT)
               .transpose(0, 2, 1, 3)
               .reshape(N, POOL_OUT, POOL_OUT))


# ----------------------------------------------------------------------------
# Pure-JAX reference (correctness check against the kernel)
# ----------------------------------------------------------------------------
def srm_layer_ref(x, bias):
    w = jnp.asarray(SRM_W)
    out = jax.lax.conv_general_dilated(
        x.astype(jnp.float32), w, window_strides=(1, 1),
        padding=((PAD, PAD), (PAD, PAD)),
        dimension_numbers=("NCHW", "OIHW", "NCHW"))
    out = out + bias[None, :, None, None]
    out = jnp.max(out, axis=1)                       # (N, H, W)
    N, H, W = out.shape
    rows = jnp.stack(
        [jnp.max(out[:, slice(*_adaptive_bounds(i, H, POOL_OUT)), :], axis=1)
         for i in range(POOL_OUT)], axis=1)          # (N, 10, W)
    pooled = jnp.stack(
        [jnp.max(rows[:, :, slice(*_adaptive_bounds(j, W, POOL_OUT))], axis=2)
         for j in range(POOL_OUT)], axis=2)          # (N, 10, 10)
    return jax.nn.sigmoid(pooled)


if __name__ == "__main__":
    key = jax.random.PRNGKey(0)
    kx, kb = jax.random.split(key)

    N, C, H, W = 2, 3, 16, 16
    x = jax.random.normal(kx, (N, C, H, W), dtype=jnp.float32)

    # Conv2d bias (deterministic synthetic init, PyTorch-style uniform bound).
    bound = 1.0 / np.sqrt(IN_CH * KH * KW)
    bias = jax.random.uniform(kb, (OUT_CH,), dtype=jnp.float32,
                              minval=-bound, maxval=bound)

    out = jax.block_until_ready(srm_layer(x, bias))
    ref = jax.block_until_ready(srm_layer_ref(x, bias))
    np.testing.assert_allclose(np.asarray(out), np.asarray(ref),
                               rtol=1e-5, atol=1e-5)

    print("KERNEL_OK")
</pallas_src>

<mosaic_0001>
module attributes {stable_mosaic.version = 11 : i64} {
  func.func @_srm_kernel(%arg0: i32, %arg1: memref<3xf32, #tpu.memory_space<smem>>, %arg2: memref<1x3x16x32xf32, #tpu.memory_space<vmem>>, %arg3: memref<1x10x20xf32, #tpu.memory_space<vmem>>, %arg4: memref<20x40xf32, #tpu.memory_space<vmem>>) attributes {dimension_semantics = [#tpu.dimension_semantics<parallel>], iteration_bounds = array<i64: 1>, scalar_prefetch = 0 : i64, scratch_operands = 1 : i64, tpu.core_type = #tpu.core_type<tc>, window_params = [{transform_indices = @transform_0, window_bounds = array<i64: 3>}, {transform_indices = @transform_1, window_bounds = array<i64: 1, 3, 16, 32>}, {transform_indices = @transform_2, window_bounds = array<i64: 1, 10, 20>}]} {
    %c2 = arith.constant 2 : index
    %0 = memref.load %arg1[%c2] : memref<3xf32, #tpu.memory_space<smem>>
    %c0 = arith.constant 0 : index
    %1 = memref.load %arg1[%c0] : memref<3xf32, #tpu.memory_space<smem>>
    %2 = arith.subf %1, %0 : f32
    %cst = arith.constant 2.000000e+00 : f32
    %3 = arith.mulf %cst, %2 : f32
    %c1 = arith.constant 1 : index
    %4 = memref.load %arg1[%c1] : memref<3xf32, #tpu.memory_space<smem>>
    %5 = arith.subf %4, %0 : f32
    %cst_0 = arith.constant 2.000000e+00 : f32
    %6 = arith.mulf %cst_0, %5 : f32
    %7 = vector.broadcast %3 : f32 to vector<1x36xf32>
    %8 = vector.broadcast %6 : f32 to vector<1x36xf32>
    %c0_1 = arith.constant 0 : index
    %c0_2 = arith.constant 0 : index
    %c0_3 = arith.constant 0 : index
    %c0_4 = arith.constant 0 : index
    %9 = vector.load %arg2[%c0_1, %c0_2, %c0_3, %c0_4] : memref<1x3x16x32xf32, #tpu.memory_space<vmem>>, vector<1x1x16x32xf32>
    %10 = vector.shape_cast %9 : vector<1x1x16x32xf32> to vector<16x32xf32>
    %c0_5 = arith.constant 0 : index
    %c1_6 = arith.constant 1 : index
    %c0_7 = arith.constant 0 : index
    %c0_8 = arith.constant 0 : index
    %11 = vector.load %arg2[%c0_5, %c1_6, %c0_7, %c0_8] : memref<1x3x16x32xf32, #tpu.memory_space<vmem>>, vector<1x1x16x32xf32>
    %12 = vector.shape_cast %11 : vector<1x1x16x32xf32> to vector<16x32xf32>
    %13 = arith.addf %10, %12 : vector<16x32xf32>
    %c0_9 = arith.constant 0 : index
    %c2_10 = arith.constant 2 : index
    %c0_11 = arith.constant 0 : index
    %c0_12 = arith.constant 0 : index
    %14 = vector.load %arg2[%c0_9, %c2_10, %c0_11, %c0_12] : memref<1x3x16x32xf32, #tpu.memory_space<vmem>>, vector<1x1x16x32xf32>
    %15 = vector.shape_cast %14 : vector<1x1x16x32xf32> to vector<16x32xf32>
    %16 = arith.addf %13, %15 : vector<16x32xf32>
    %cst_13 = arith.constant 0.000000e+00 : f32
    %17 = vector.broadcast %cst_13 : f32 to vector<16x2xf32>
    %cst_14 = arith.constant 0.000000e+00 : f32
    %18 = vector.broadcast %cst_14 : f32 to vector<16x4xf32>
    %19 = vector.extract_strided_slice %16 {offsets = [0, 0], sizes = [16, 16], strides = [1, 1]} : vector<16x32xf32> to vector<16x16xf32>
    %20 = vector.extract_strided_slice %16 {offsets = [0, 16], sizes = [16, 16], strides = [1, 1]} : vector<16x32xf32> to vector<16x16xf32>
    %cst_15 = arith.constant 0.000000e+00 : f32
    %21 = vector.broadcast %cst_15 : f32 to vector<2x40xf32>
    %c0_16 = arith.constant 0 : index
    %c0_17 = arith.constant 0 : index
    %22 = vector.load %arg4[%c0_16, %c0_17] : memref<20x40xf32, #tpu.memory_space<vmem>>, vector<2x40xf32>
    tpu.vector_store %arg4[%c0_16, %c0_17], %21 {strides = array<i32>} : memref<20x40xf32, #tpu.memory_space<vmem>>, vector<2x40xf32>,
    %23 = tpu.concatenate %17, %19, %18, %20, %17 in 1 : vector<16x2xf32>, vector<16x16xf32>, vector<16x4xf32>, vector<16x16xf32>, vector<16x2xf32> -> vector<16x40xf32>
    %c2_18 = arith.constant 2 : index
    %c0_19 = arith.constant 0 : index
    %24 = vector.load %arg4[%c2_18, %c0_19] : memref<20x40xf32, #tpu.memory_space<vmem>>, vector<16x40xf32>
    tpu.vector_store %arg4[%c2_18, %c0_19], %23 {strides = array<i32>} : memref<20x40xf32, #tpu.memory_space<vmem>>, vector<16x40xf32>,
    %cst_20 = arith.constant 0.000000e+00 : f32
    %25 = vector.broadcast %cst_20 : f32 to vector<2x40xf32>
    %c18 = arith.constant 18 : index
    %c0_21 = arith.constant 0 : index
    %26 = vector.load %arg4[%c18, %c0_21] : memref<20x40xf32, #tpu.memory_space<vmem>>, vector<2x40xf32>
    tpu.vector_store %arg4[%c18, %c0_21], %25 {strides = array<i32>} : memref<20x40xf32, #tpu.memory_space<vmem>>, vector<2x40xf32>,
    %c0_22 = arith.constant 0 : index
    %c0_23 = arith.constant 0 : index
    %27 = vector.load %arg4[%c0_22, %c0_23] : memref<20x40xf32, #tpu.memory_space<vmem>>, vector<6x40xf32>
    %28 = vector.extract_strided_slice %27 {offsets = [0, 2], sizes = [6, 36], strides = [1, 1]} : vector<6x40xf32> to vector<6x36xf32>
    %29 = vector.extract_strided_slice %27 {offsets = [0, 1], sizes = [6, 36], strides = [1, 1]} : vector<6x40xf32> to vector<6x36xf32>
    %30 = vector.extract_strided_slice %27 {offsets = [0, 3], sizes = [6, 36], strides = [1, 1]} : vector<6x40xf32> to vector<6x36xf32>
    %31 = arith.addf %29, %30 : vector<6x36xf32>
    %32 = vector.extract_strided_slice %27 {offsets = [0, 0], sizes = [6, 36], strides = [1, 1]} : vector<6x40xf32> to vector<6x36xf32>
    %33 = vector.extract_strided_slice %27 {offsets = [0, 4], sizes = [6, 36], strides = [1, 1]} : vector<6x40xf32> to vector<6x36xf32>
    %34 = arith.addf %32, %33 : vector<6x36xf32>
    %cst_24 = arith.constant 2.000000e+00 : f32
    %35 = vector.broadcast %cst_24 : f32 to vector<6x36xf32>
    %36 = arith.mulf %35, %28 : vector<6x36xf32>
    %37 = arith.subf %31, %36 : vector<6x36xf32>
    %cst_25 = arith.constant 2.000000e+00 : f32
    %38 = vector.broadcast %cst_25 : f32 to vector<6x36xf32>
    %39 = arith.mulf %38, %28 : vector<6x36xf32>
    %40 = arith.subf %34, %39 : vector<6x36xf32>
    %41 = vector.extract_strided_slice %37 {offsets = [2, 0], sizes = [2, 36], strides = [1, 1]} : vector<6x36xf32> to vector<2x36xf32>
    %42 = vector.extract_strided_slice %37 {offsets = [1, 0], sizes = [2, 36], strides = [1, 1]} : vector<6x36xf32> to vector<2x36xf32>
    %cst_26 = arith.constant 2.000000e+00 : f32
    %43 = vector.broadcast %cst_26 : f32 to vector<2x36xf32>
    %44 = arith.mulf %43, %41 : vector<2x36xf32>
    %45 = arith.subf %42, %44 : vector<2x36xf32>
    %46 = vector.extract_strided_slice %37 {offsets = [3, 0], sizes = [2, 36], strides = [1, 1]} : vector<6x36xf32> to vector<2x36xf32>
    %47 = arith.addf %45, %46 : vector<2x36xf32>
    %cst_27 = arith.constant -5.000000e-01 : f32
    %48 = vector.broadcast %cst_27 : f32 to vector<2x36xf32>
    %49 = arith.mulf %48, %47 : vector<2x36xf32>
    %50 = vector.broadcast %7 : vector<1x36xf32> to vector<2x36xf32>
    %51 = arith.addf %49, %50 : vector<2x36xf32>
    %cst_28 = arith.constant 2.000000e+00 : f32
    %52 = vector.broadcast %cst_28 : f32 to vector<6x36xf32>
    %53 = arith.mulf %52, %37 : vector<6x36xf32>
    %54 = arith.subf %53, %40 : vector<6x36xf32>
    %cst_29 = arith.constant 0.166666672 : f32
    %55 = vector.broadcast %cst_29 : f32 to vector<6x36xf32>
    %56 = arith.mulf %54, %55 : vector<6x36xf32>
    %cst_30 = arith.constant 3.000000e+00 : f32
    %57 = vector.broadcast %cst_30 : f32 to vector<6x36xf32>
    %58 = arith.mulf %57, %37 : vector<6x36xf32>
    %59 = arith.subf %40, %58 : vector<6x36xf32>
    %cst_31 = arith.constant 0.333333343 : f32
    %60 = vector.broadcast %cst_31 : f32 to vector<6x36xf32>
    %61 = arith.mulf %59, %60 : vector<6x36xf32>
    %cst_32 = arith.constant 4.000000e+00 : f32
    %62 = vector.broadcast %cst_32 : f32 to vector<6x36xf32>
    %63 = arith.mulf %62, %37 : vector<6x36xf32>
    %64 = arith.subf %63, %40 : vector<6x36xf32>
    %cst_33 = arith.constant 0.333333343 : f32
    %65 = vector.broadcast %cst_33 : f32 to vector<6x36xf32>
    %66 = arith.mulf %64, %65 : vector<6x36xf32>
    %67 = vector.extract_strided_slice %56 {offsets = [0, 0], sizes = [2, 36], strides = [1, 1]} : vector<6x36xf32> to vector<2x36xf32>
    %68 = vector.extract_strided_slice %61 {offsets = [1, 0], sizes = [2, 36], strides = [1, 1]} : vector<6x36xf32> to vector<2x36xf32>
    %69 = arith.addf %67, %68 : vector<2x36xf32>
    %70 = vector.extract_strided_slice %66 {offsets = [2, 0], sizes = [2, 36], strides = [1, 1]} : vector<6x36xf32> to vector<2x36xf32>
    %71 = arith.addf %69, %70 : vector<2x36xf32>
    %72 = vector.extract_strided_slice %61 {offsets = [3, 0], sizes = [2, 36], strides = [1, 1]} : vector<6x36xf32> to vector<2x36xf32>
    %73 = arith.addf %71, %72 : vector<2x36xf32>
    %74 = vector.extract_strided_slice %56 {offsets = [4, 0], sizes = [2, 36], strides = [1, 1]} : vector<6x36xf32> to vector<2x36xf32>
    %75 = arith.addf %73, %74 : vector<2x36xf32>
    %76 = vector.broadcast %8 : vector<1x36xf32> to vector<2x36xf32>
    %77 = arith.addf %75, %76 : vector<2x36xf32>
    %78 = arith.maximumf %51, %77 : vector<2x36xf32>
    %79 = arith.maximumf %78, %41 : vector<2x36xf32>
    %cst_34 = arith.constant dense<0xFF800000> : vector<36xf32>
    %80 = vector.multi_reduction <maximumf>, %79, %cst_34 [0] : vector<2x36xf32> to vector<36xf32>
    %81 = vector.shape_cast %80 : vector<36xf32> to vector<1x36xf32>
    %82 = vector.extract_strided_slice %81 {offsets = [0, 0], sizes = [1, 16], strides = [1, 1]} : vector<1x36xf32> to vector<1x16xf32>
    %83 = vector.extract_strided_slice %82 {offsets = [0, 0], sizes = [1, 2], strides = [1, 1]} : vector<1x16xf32> to vector<1x2xf32>
    %cst_35 = arith.constant dense<0xFF800000> : vector<1xf32>
    %84 = vector.multi_reduction <maximumf>, %83, %cst_35 [1] : vector<1x2xf32> to vector<1xf32>
    %85 = vector.shape_cast %84 : vector<1xf32> to vector<1x1xf32>
    %86 = vector.extract_strided_slice %82 {offsets = [0, 1], sizes = [1, 3], strides = [1, 1]} : vector<1x16xf32> to vector<1x3xf32>
    %cst_36 = arith.constant dense<0xFF800000> : vector<1xf32>
    %87 = vector.multi_reduction <maximumf>, %86, %cst_36 [1] : vector<1x3xf32> to vector<1xf32>
    %88 = vector.shape_cast %87 : vector<1xf32> to vector<1x1xf32>
    %89 = vector.extract_strided_slice %82 {offsets = [0, 3], sizes = [1, 2], strides = [1, 1]} : vector<1x16xf32> to vector<1x2xf32>
    %cst_37 = arith.constant dense<0xFF800000> : vector<1xf32>
    %90 = vector.multi_reduction <maximumf>, %89, %cst_37 [1] : vector<1x2xf32> to vector<1xf32>
    %91 = vector.shape_cast %90 : vector<1xf32> to vector<1x1xf32>
    %92 = vector.extract_strided_slice %82 {offsets = [0, 4], sizes = [1, 3], strides = [1, 1]} : vector<1x16xf32> to vector<1x3xf32>
    %cst_38 = arith.constant dense<0xFF800000> : vector<1xf32>
    %93 = vector.multi_reduction <maximumf>, %92, %cst_38 [1] : vector<1x3xf32> to vector<1xf32>
    %94 = vector.shape_cast %93 : vector<1xf32> to vector<1x1xf32>
    %95 = vector.extract_strided_slice %82 {offsets = [0, 6], sizes = [1, 2], strides = [1, 1]} : vector<1x16xf32> to vector<1x2xf32>
    %cst_39 = arith.constant dense<0xFF800000> : vector<1xf32>
    %96 = vector.multi_reduction <maximumf>, %95, %cst_39 [1] : vector<1x2xf32> to vector<1xf32>
    %97 = vector.shape_cast %96 : vector<1xf32> to vector<1x1xf32>
    %98 = vector.extract_strided_slice %82 {offsets = [0, 8], sizes = [1, 2], strides = [1, 1]} : vector<1x16xf32> to vector<1x2xf32>
    %cst_40 = arith.constant dense<0xFF800000> : vector<1xf32>
    %99 = vector.multi_reduction <maximumf>, %98, %cst_40 [1] : vector<1x2xf32> to vector<1xf32>
    %100 = vector.shape_cast %99 : vector<1xf32> to vector<1x1xf32>
    %101 = vector.extract_strided_slice %82 {offsets = [0, 9], sizes = [1, 3], strides = [1, 1]} : vector<1x16xf32> to vector<1x3xf32>
    %cst_41 = arith.constant dense<0xFF800000> : vector<1xf32>
    %102 = vector.multi_reduction <maximumf>, %101, %cst_41 [1] : vector<1x3xf32> to vector<1xf32>
    %103 = vector.shape_cast %102 : vector<1xf32> to vector<1x1xf32>
    %104 = vector.extract_strided_slice %82 {offsets = [0, 11], sizes = [1, 2], strides = [1, 1]} : vector<1x16xf32> to vector<1x2xf32>
    %cst_42 = arith.constant dense<0xFF800000> : vector<1xf32>
    %105 = vector.multi_reduction <maximumf>, %104, %cst_42 [1] : vector<1x2xf32> to vector<1xf32>
    %106 = vector.shape_cast %105 : vector<1xf32> to vector<1x1xf32>
    %107 = vector.extract_strided_slice %82 {offsets = [0, 12], sizes = [1, 3], strides = [1, 1]} : vector<1x16xf32> to vector<1x3xf32>
    %cst_43 = arith.constant dense<0xFF800000> : vector<1xf32>
    %108 = vector.multi_reduction <maximumf>, %107, %cst_43 [1] : vector<1x3xf32> to vector<1xf32>
    %109 = vector.shape_cast %108 : vector<1xf32> to vector<1x1xf32>
    %110 = vector.extract_strided_slice %82 {offsets = [0, 14], sizes = [1, 2], strides = [1, 1]} : vector<1x16xf32> to vector<1x2xf32>
    %cst_44 = arith.constant dense<0xFF800000> : vector<1xf32>
    %111 = vector.multi_reduction <maximumf>, %110, %cst_44 [1] : vector<1x2xf32> to vector<1xf32>
    %112 = vector.shape_cast %111 : vector<1xf32> to vector<1x1xf32>
    %113 = vector.extract_strided_slice %81 {offsets = [0, 20], sizes = [1, 16], strides = [1, 1]} : vector<1x36xf32> to vector<1x16xf32>
    %114 = vector.extract_strided_slice %113 {offsets = [0, 0], sizes = [1, 2], strides = [1, 1]} : vector<1x16xf32> to vector<1x2xf32>
    %cst_45 = arith.constant dense<0xFF800000> : vector<1xf32>
    %115 = vector.multi_reduction <maximumf>, %114, %cst_45 [1] : vector<1x2xf32> to vector<1xf32>
    %116 = vector.shape_cast %115 : vector<1xf32> to vector<1x1xf32>
    %117 = vector.extract_strided_slice %113 {offsets = [0, 1], sizes = [1, 3], strides = [1, 1]} : vector<1x16xf32> to vector<1x3xf32>
    %cst_46 = arith.constant dense<0xFF800000> : vector<1xf32>
    %118 = vector.multi_reduction <maximumf>, %117, %cst_46 [1] : vector<1x3xf32> to vector<1xf32>
    %119 = vector.shape_cast %118 : vector<1xf32> to vector<1x1xf32>
    %120 = vector.extract_strided_slice %113 {offsets = [0, 3], sizes = [1, 2], strides = [1, 1]} : vector<1x16xf32> to vector<1x2xf32>
    %cst_47 = arith.constant dense<0xFF800000> : vector<1xf32>
    %121 = vector.multi_reduction <maximumf>, %120, %cst_47 [1] : vector<1x2xf32> to vector<1xf32>
    %122 = vector.shape_cast %121 : vector<1xf32> to vector<1x1xf32>
    %123 = vector.extract_strided_slice %113 {offsets = [0, 4], sizes = [1, 3], strides = [1, 1]} : vector<1x16xf32> to vector<1x3xf32>
    %cst_48 = arith.constant dense<0xFF800000> : vector<1xf32>
    %124 = vector.multi_reduction <maximumf>, %123, %cst_48 [1] : vector<1x3xf32> to vector<1xf32>
    %125 = vector.shape_cast %124 : vector<1xf32> to vector<1x1xf32>
    %126 = vector.extract_strided_slice %113 {offsets = [0, 6], sizes = [1, 2], strides = [1, 1]} : vector<1x16xf32> to vector<1x2xf32>
    %cst_49 = arith.constant dense<0xFF800000> : vector<1xf32>
    %127 = vector.multi_reduction <maximumf>, %126, %cst_49 [1] : vector<1x2xf32> to vector<1xf32>
    %128 = vector.shape_cast %127 : vector<1xf32> to vector<1x1xf32>
    %129 = vector.extract_strided_slice %113 {offsets = [0, 8], sizes = [1, 2], strides = [1, 1]} : vector<1x16xf32> to vector<1x2xf32>
    %cst_50 = arith.constant dense<0xFF800000> : vector<1xf32>
    %130 = vector.multi_reduction <maximumf>, %129, %cst_50 [1] : vector<1x2xf32> to vector<1xf32>
    %131 = vector.shape_cast %130 : vector<1xf32> to vector<1x1xf32>
    %132 = vector.extract_strided_slice %113 {offsets = [0, 9], sizes = [1, 3], strides = [1, 1]} : vector<1x16xf32> to vector<1x3xf32>
    %cst_51 = arith.constant dense<0xFF800000> : vector<1xf32>
    %133 = vector.multi_reduction <maximumf>, %132, %cst_51 [1] : vector<1x3xf32> to vector<1xf32>
    %134 = vector.shape_cast %133 : vector<1xf32> to vector<1x1xf32>
    %135 = vector.extract_strided_slice %113 {offsets = [0, 11], sizes = [1, 2], strides = [1, 1]} : vector<1x16xf32> to vector<1x2xf32>
    %cst_52 = arith.constant dense<0xFF800000> : vector<1xf32>
    %136 = vector.multi_reduction <maximumf>, %135, %cst_52 [1] : vector<1x2xf32> to vector<1xf32>
    %137 = vector.shape_cast %136 : vector<1xf32> to vector<1x1xf32>
    %138 = vector.extract_strided_slice %113 {offsets = [0, 12], sizes = [1, 3], strides = [1, 1]} : vector<1x16xf32> to vector<1x3xf32>
    %cst_53 = arith.constant dense<0xFF800000> : vector<1xf32>
    %139 = vector.multi_reduction <maximumf>, %138, %cst_53 [1] : vector<1x3xf32> to vector<1xf32>
    %140 = vector.shape_cast %139 : vector<1xf32> to vector<1x1xf32>
    %141 = vector.extract_strided_slice %113 {offsets = [0, 14], sizes = [1, 2], strides = [1, 1]} : vector<1x16xf32> to vector<1x2xf32>
    %cst_54 = arith.constant dense<0xFF800000> : vector<1xf32>
    %142 = vector.multi_reduction <maximumf>, %141, %cst_54 [1] : vector<1x2xf32> to vector<1xf32>
    %143 = vector.shape_cast %142 : vector<1xf32> to vector<1x1xf32>
    %144 = tpu.concatenate %85, %88, %91, %94, %97, %100, %103, %106, %109, %112, %116, %119, %122, %125, %128, %131 in 1 : vector<1x1xf32>, vector<1x1xf32>, vector<1x1xf32>, vector<1x1xf32>, vector<1x1xf32>, vector<1x1xf32>, vector<1x1xf32>, vector<1x1xf32>, vector<1x1xf32>, vector<1x1xf32>, vector<1x1xf32>, vector<1x1xf32>, vector<1x1xf32>, vector<1x1xf32>, vector<1x1xf32>, vector<1x1xf32> -> vector<1x16xf32>
    %145 = tpu.concatenate %134, %137, %140, %143 in 1 : vector<1x1xf32>, vector<1x1xf32>, vector<1x1xf32>, vector<1x1xf32> -> vector<1x4xf32>
    %146 = tpu.concatenate %144, %145 in 1 : vector<1x16xf32>, vector<1x4xf32> -> vector<1x20xf32>
    %c1_55 = arith.constant 1 : index
    %c0_56 = arith.constant 0 : index
    %147 = vector.load %arg4[%c1_55, %c0_56] : memref<20x40xf32, #tpu.memory_space<vmem>>, vector<7x40xf32>
    %148 = vector.extract_strided_slice %147 {offsets = [0, 2], sizes = [7, 36], strides = [1, 1]} : vector<7x40xf32> to vector<7x36xf32>
    %149 = vector.extract_strided_slice %147 {offsets = [0, 1], sizes = [7, 36], strides = [1, 1]} : vector<7x40xf32> to vector<7x36xf32>
    %150 = vector.extract_strided_slice %147 {offsets = [0, 3], sizes = [7, 36], strides = [1, 1]} : vector<7x40xf32> to vector<7x36xf32>
    %151 = arith.addf %149, %150 : vector<7x36xf32>
    %152 = vector.extract_strided_slice %147 {offsets = [0, 0], sizes = [7, 36], strides = [1, 1]} : vector<7x40xf32> to vector<7x36xf32>
    %153 = vector.extract_strided_slice %147 {offsets = [0, 4], sizes = [7, 36], strides = [1, 1]} : vector<7x40xf32> to vector<7x36xf32>
    %154 = arith.addf %152, %153 : vector<7x36xf32>
    %cst_57 = arith.constant 2.000000e+00 : f32
    %155 = vector.broadcast %cst_57 : f32 to vector<7x36xf32>
    %156 = arith.mulf %155, %148 : vector<7x36xf32>
    %157 = arith.subf %151, %156 : vector<7x36xf32>
    %cst_58 = arith.constant 2.000000e+00 : f32
    %158 = vector.broadcast %cst_58 : f32 to vector<7x36xf32>
    %159 = arith.mulf %158, %148 : vector<7x36xf32>
    %160 = arith.subf %154, %159 : vector<7x36xf32>
    %161 = vector.extract_strided_slice %157 {offsets = [2, 0], sizes = [3, 36], strides = [1, 1]} : vector<7x36xf32> to vector<3x36xf32>
    %162 = vector.extract_strided_slice %157 {offsets = [1, 0], sizes = [3, 36], strides = [1, 1]} : vector<7x36xf32> to vector<3x36xf32>
    %cst_59 = arith.constant 2.000000e+00 : f32
    %163 = vector.broadcast %cst_59 : f32 to vector<3x36xf32>
    %164 = arith.mulf %163, %161 : vector<3x36xf32>
    %165 = arith.subf %162, %164 : vector<3x36xf32>
    %166 = vector.extract_strided_slice %157 {offsets = [3, 0], sizes = [3, 36], strides = [1, 1]} : vector<7x36xf32> to vector<3x36xf32>
    %167 = arith.addf %165, %166 : vector<3x36xf32>
    %cst_60 = arith.constant -5.000000e-01 : f32
    %168 = vector.broadcast %cst_60 : f32 to vector<3x36xf32>
    %169 = arith.mulf %168, %167 : vector<3x36xf32>
    %170 = vector.broadcast %7 : vector<1x36xf32> to vector<3x36xf32>
    %171 = arith.addf %169, %170 : vector<3x36xf32>
    %cst_61 = arith.constant 2.000000e+00 : f32
    %172 = vector.broadcast %cst_61 : f32 to vector<7x36xf32>
    %173 = arith.mulf %172, %157 : vector<7x36xf32>
    %174 = arith.subf %173, %160 : vector<7x36xf32>
    %cst_62 = arith.constant 0.166666672 : f32
    %175 = vector.broadcast %cst_62 : f32 to vector<7x36xf32>
    %176 = arith.mulf %174, %175 : vector<7x36xf32>
    %cst_63 = arith.constant 3.000000e+00 : f32
    %177 = vector.broadcast %cst_63 : f32 to vector<7x36xf32>
    %178 = arith.mulf %177, %157 : vector<7x36xf32>
    %179 = arith.subf %160, %178 : vector<7x36xf32>
    %cst_64 = arith.constant 0.333333343 : f32
    %180 = vector.broadcast %cst_64 : f32 to vector<7x36xf32>
    %181 = arith.mulf %179, %180 : vector<7x36xf32>
    %cst_65 = arith.constant 4.000000e+00 : f32
    %182 = vector.broadcast %cst_65 : f32 to vector<7x36xf32>
    %183 = arith.mulf %182, %157 : vector<7x36xf32>
    %184 = arith.subf %183, %160 : vector<7x36xf32>
    %cst_66 = arith.constant 0.333333343 : f32
    %185 = vector.broadcast %cst_66 : f32 to vector<7x36xf32>
    %186 = arith.mulf %184, %185 : vector<7x36xf32>
    %187 = vector.extract_strided_slice %176 {offsets = [0, 0], sizes = [3, 36], strides = [1, 1]} : vector<7x36xf32> to vector<3x36xf32>
    %188 = vector.extract_strided_slice %181 {offsets = [1, 0], sizes = [3, 36], strides = [1, 1]} : vector<7x36xf32> to vector<3x36xf32>
    %189 = arith.addf %187, %188 : vector<3x36xf32>
    %190 = vector.extract_strided_slice %186 {offsets = [2, 0], sizes = [3, 36], strides = [1, 1]} : vector<7x36xf32> to vector<3x36xf32>
    %191 = arith.addf %189, %190 : vector<3x36xf32>
    %192 = vector.extract_strided_slice %181 {offsets = [3, 0], sizes = [3, 36], strides = [1, 1]} : vector<7x36xf32> to vector<3x36xf32>
    %193 = arith.addf %191, %192 : vector<3x36xf32>
    %194 = vector.extract_strided_slice %176 {offsets = [4, 0], sizes = [3, 36], strides = [1, 1]} : vector<7x36xf32> to vector<3x36xf32>
    %195 = arith.addf %193, %194 : vector<3x36xf32>
    %196 = vector.broadcast %8 : vector<1x36xf32> to vector<3x36xf32>
    %197 = arith.addf %195, %196 : vector<3x36xf32>
    %198 = arith.maximumf %171, %197 : vector<3x36xf32>
    %199 = arith.maximumf %198, %161 : vector<3x36xf32>
    %cst_67 = arith.constant dense<0xFF800000> : vector<36xf32>
    %200 = vector.multi_reduction <maximumf>, %199, %cst_67 [0] : vector<3x36xf32> to vector<36xf32>
    %201 = vector.shape_cast %200 : vector<36xf32> to vector<1x36xf32>
    %202 = vector.extract_strided_slice %201 {offsets = [0, 0], sizes = [1, 16], strides = [1, 1]} : vector<1x36xf32> to vector<1x16xf32>
    %203 = vector.extract_strided_slice %202 {offsets = [0, 0], sizes = [1, 2], strides = [1, 1]} : vector<1x16xf32> to vector<1x2xf32>
    %cst_68 = arith.constant dense<0xFF800000> : vector<1xf32>
    %204 = vector.multi_reduction <maximumf>, %203, %cst_68 [1] : vector<1x2xf32> to vector<1xf32>
    %205 = vector.shape_cast %204 : vector<1xf32> to vector<1x1xf32>
    %206 = vector.extract_strided_slice %202 {offsets = [0, 1], sizes = [1, 3], strides = [1, 1]} : vector<1x16xf32> to vector<1x3xf32>
    %cst_69 = arith.constant dense<0xFF800000> : vector<1xf32>
    %207 = vector.multi_reduction <maximumf>, %206, %cst_69 [1] : vector<1x3xf32> to vector<1xf32>
    %208 = vector.shape_cast %207 : vector<1xf32> to vector<1x1xf32>
    %209 = vector.extract_strided_slice %202 {offsets = [0, 3], sizes = [1, 2], strides = [1, 1]} : vector<1x16xf32> to vector<1x2xf32>
    %cst_70 = arith.constant dense<0xFF800000> : vector<1xf32>
    %210 = vector.multi_reduction <maximumf>, %209, %cst_70 [1] : vector<1x2xf32> to vector<1xf32>
    %211 = vector.shape_cast %210 : vector<1xf32> to vector<1x1xf32>
    %212 = vector.extract_strided_slice %202 {offsets = [0, 4], sizes = [1, 3], strides = [1, 1]} : vector<1x16xf32> to vector<1x3xf32>
    %cst_71 = arith.constant dense<0xFF800000> : vector<1xf32>
    %213 = vector.multi_reduction <maximumf>, %212, %cst_71 [1] : vector<1x3xf32> to vector<1xf32>
    %214 = vector.shape_cast %213 : vector<1xf32> to vector<1x1xf32>
    %215 = vector.extract_strided_slice %202 {offsets = [0, 6], sizes = [1, 2], strides = [1, 1]} : vector<1x16xf32> to vector<1x2xf32>
    %cst_72 = arith.constant dense<0xFF800000> : vector<1xf32>
    %216 = vector.multi_reduction <maximumf>, %215, %cst_72 [1] : vector<1x2xf32> to vector<1xf32>
    %217 = vector.shape_cast %216 : vector<1xf32> to vector<1x1xf32>
    %218 = vector.extract_strided_slice %202 {offsets = [0, 8], sizes = [1, 2], strides = [1, 1]} : vector<1x16xf32> to vector<1x2xf32>
    %cst_73 = arith.constant dense<0xFF800000> : vector<1xf32>
    %219 = vector.multi_reduction <maximumf>, %218, %cst_73 [1] : vector<1x2xf32> to vector<1xf32>
    %220 = vector.shape_cast %219 : vector<1xf32> to vector<1x1xf32>
    %221 = vector.extract_strided_slice %202 {offsets = [0, 9], sizes = [1, 3], strides = [1, 1]} : vector<1x16xf32> to vector<1x3xf32>
    %cst_74 = arith.constant dense<0xFF800000> : vector<1xf32>
    %222 = vector.multi_reduction <maximumf>, %221, %cst_74 [1] : vector<1x3xf32> to vector<1xf32>
    %223 = vector.shape_cast %222 : vector<1xf32> to vector<1x1xf32>
    %224 = vector.extract_strided_slice %202 {offsets = [0, 11], sizes = [1, 2], strides = [1, 1]} : vector<1x16xf32> to vector<1x2xf32>
    %cst_75 = arith.constant dense<0xFF800000> : vector<1xf32>
    %225 = vector.multi_reduction <maximumf>, %224, %cst_75 [1] : vector<1x2xf32> to vector<1xf32>
    %226 = vector.shape_cast %225 : vector<1xf32> to vector<1x1xf32>
    %227 = vector.extract_strided_slice %202 {offsets = [0, 12], sizes = [1, 3], strides = [1, 1]} : vector<1x16xf32> to vector<1x3xf32>
    %cst_76 = arith.constant dense<0xFF800000> : vector<1xf32>
    %228 = vector.multi_reduction <maximumf>, %227, %cst_76 [1] : vector<1x3xf32> to vector<1xf32>
    %229 = vector.shape_cast %228 : vector<1xf32> to vector<1x1xf32>
    %230 = vector.extract_strided_slice %202 {offsets = [0, 14], sizes = [1, 2], strides = [1, 1]} : vector<1x16xf32> to vector<1x2xf32>
    %cst_77 = arith.constant dense<0xFF800000> : vector<1xf32>
    %231 = vector.multi_reduction <maximumf>, %230, %cst_77 [1] : vector<1x2xf32> to vector<1xf32>
    %232 = vector.shape_cast %231 : vector<1xf32> to vector<1x1xf32>
    %233 = vector.extract_strided_slice %201 {offsets = [0, 20], sizes = [1, 16], strides = [1, 1]} : vector<1x36xf32> to vector<1x16xf32>
    %234 = vector.extract_strided_slice %233 {offsets = [0, 0], sizes = [1, 2], strides = [1, 1]} : vector<1x16xf32> to vector<1x2xf32>
    %cst_78 = arith.constant dense<0xFF800000> : vector<1xf32>
    %235 = vector.multi_reduction <maximumf>, %234, %cst_78 [1] : vector<1x2xf32> to vector<1xf32>
    %236 = vector.shape_cast %235 : vector<1xf32> to vector<1x1xf32>
    %237 = vector.extract_strided_slice %233 {offsets = [0, 1], sizes = [1, 3], strides = [1, 1]} : vector<1x16xf32> to vector<1x3xf32>
    %cst_79 = arith.constant dense<0xFF800000> : vector<1xf32>
    %238 = vector.multi_reduction <maximumf>, %237, %cst_79 [1] : vector<1x3xf32> to vector<1xf32>
    %239 = vector.shape_cast %238 : vector<1xf32> to vector<1x1xf32>
    %240 = vector.extract_strided_slice %233 {offsets = [0, 3], sizes = [1, 2], strides = [1, 1]} : vector<1x16xf32> to vector<1x2xf32>
    %cst_80 = arith.constant dense<0xFF800000> : vector<1xf32>
    %241 = vector.multi_reduction <maximumf>, %240, %cst_80 [1] : vector<1x2xf32> to vector<1xf32>
    %242 = vector.shape_cast %241 : vector<1xf32> to vector<1x1xf32>
    %243 = vector.extract_strided_slice %233 {offsets = [0, 4], sizes = [1, 3], strides = [1, 1]} : vector<1x16xf32> to vector<1x3xf32>
    %cst_81 = arith.constant dense<0xFF800000> : vector<1xf32>
    %244 = vector.multi_reduction <maximumf>, %243, %cst_81 [1] : vector<1x3xf32> to vector<1xf32>
    %245 = vector.shape_cast %244 : vector<1xf32> to vector<1x1xf32>
    %246 = vector.extract_strided_slice %233 {offsets = [0, 6], sizes = [1, 2], strides = [1, 1]} : vector<1x16xf32> to vector<1x2xf32>
    %cst_82 = arith.constant dense<0xFF800000> : vector<1xf32>
    %247 = vector.multi_reduction <maximumf>, %246, %cst_82 [1] : vector<1x2xf32> to vector<1xf32>
    %248 = vector.shape_cast %247 : vector<1xf32> to vector<1x1xf32>
    %249 = vector.extract_strided_slice %233 {offsets = [0, 8], sizes = [1, 2], strides = [1, 1]} : vector<1x16xf32> to vector<1x2xf32>
    %cst_83 = arith.constant dense<0xFF800000> : vector<1xf32>
    %250 = vector.multi_reduction <maximumf>, %249, %cst_83 [1] : vector<1x2xf32> to vector<1xf32>
    %251 = vector.shape_cast %250 : vector<1xf32> to vector<1x1xf32>
    %252 = vector.extract_strided_slice %233 {offsets = [0, 9], sizes = [1, 3], strides = [1, 1]} : vector<1x16xf32> to vector<1x3xf32>
    %cst_84 = arith.constant dense<0xFF800000> : vector<1xf32>
    %253 = vector.multi_reduction <maximumf>, %252, %cst_84 [1] : vector<1x3xf32> to vector<1xf32>
    %254 = vector.shape_cast %253 : vector<1xf32> to vector<1x1xf32>
    %255 = vector.extract_strided_slice %233 {offsets = [0, 11], sizes = [1, 2], strides = [1, 1]} : vector<1x16xf32> to vector<1x2xf32>
    %cst_85 = arith.constant dense<0xFF800000> : vector<1xf32>
    %256 = vector.multi_reduction <maximumf>, %255, %cst_85 [1] : vector<1x2xf32> to vector<1xf32>
    %257 = vector.shape_cast %256 : vector<1xf32> to vector<1x1xf32>
    %258 = vector.extract_strided_slice %233 {offsets = [0, 12], sizes = [1, 3], strides = [1, 1]} : vector<1x16xf32> to vector<1x3xf32>
    %cst_86 = arith.constant dense<0xFF800000> : vector<1xf32>
    %259 = vector.multi_reduction <maximumf>, %258, %cst_86 [1] : vector<1x3xf32> to vector<1xf32>
    %260 = vector.shape_cast %259 : vector<1xf32> to vector<1x1xf32>
    %261 = vector.extract_strided_slice %233 {offsets = [0, 14], sizes = [1, 2], strides = [1, 1]} : vector<1x16xf32> to vector<1x2xf32>
    %cst_87 = arith.constant dense<0xFF800000> : vector<1xf32>
    %262 = vector.multi_reduction <maximumf>, %261, %cst_87 [1] : vector<1x2xf32> to vector<1xf32>
    %263 = vector.shape_cast %262 : vector<1xf32> to vector<1x1xf32>
    %264 = tpu.concatenate %205, %208, %211, %214, %217, %220, %223, %226, %229, %232, %236, %239, %242, %245, %248, %251 in 1 : vector<1x1xf32>, vector<1x1xf32>, vector<1x1xf32>, vector<1x1xf32>, vector<1x1xf32>, vector<1x1xf32>, vector<1x1xf32>, vector<1x1xf32>, vector<1x1xf32>, vector<1x1xf32>, vector<1x1xf32>, vector<1x1xf32>, vector<1x1xf32>, vector<1x1xf32>, vector<1x1xf32>, vector<1x1xf32> -> vector<1x16xf32>
    %265 = tpu.concatenate %254, %257, %260, %263 in 1 : vector<1x1xf32>, vector<1x1xf32>, vector<1x1xf32>, vector<1x1xf32> -> vector<1x4xf32>
    %266 = tpu.concatenate %264, %265 in 1 : vector<1x16xf32>, vector<1x4xf32> -> vector<1x20xf32>
    %c3 = arith.constant 3 : index
    %c0_88 = arith.constant 0 : index
    %267 = vector.load %arg4[%c3, %c0_88] : memref<20x40xf32, #tpu.memory_space<vmem>>, vector<6x40xf32>
    %268 = vector.extract_strided_slice %267 {offsets = [0, 2], sizes = [6, 36], strides = [1, 1]} : vector<6x40xf32> to vector<6x36xf32>
    %269 = vector.extract_strided_slice %267 {offsets = [0, 1], sizes = [6, 36], strides = [1, 1]} : vector<6x40xf32> to vector<6x36xf32>
    %270 = vector.extract_strided_slice %267 {offsets = [0, 3], sizes = [6, 36], strides = [1, 1]} : vector<6x40xf32> to vector<6x36xf32>
    %271 = arith.addf %269, %270 : vector<6x36xf32>
    %272 = vector.extract_strided_slice %267 {offsets = [0, 0], sizes = [6, 36], strides = [1, 1]} : vector<6x40xf32> to vector<6x36xf32>
    %273 = vector.extract_strided_slice %267 {offsets = [0, 4], sizes = [6, 36], strides = [1, 1]} : vector<6x40xf32> to vector<6x36xf32>
    %274 = arith.addf %272, %273 : vector<6x36xf32>
    %cst_89 = arith.constant 2.000000e+00 : f32
    %275 = vector.broadcast %cst_89 : f32 to vector<6x36xf32>
    %276 = arith.mulf %275, %268 : vector<6x36xf32>
    %277 = arith.subf %271, %276 : vector<6x36xf32>
    %cst_90 = arith.constant 2.000000e+00 : f32
    %278 = vector.broadcast %cst_90 : f32 to vector<6x36xf32>
    %279 = arith.mulf %278, %268 : vector<6x36xf32>
    %280 = arith.subf %274, %279 : vector<6x36xf32>
    %281 = vector.extract_strided_slice %277 {offsets = [2, 0], sizes = [2, 36], strides = [1, 1]} : vector<6x36xf32> to vector<2x36xf32>
    %282 = vector.extract_strided_slice %277 {offsets = [1, 0], sizes = [2, 36], strides = [1, 1]} : vector<6x36xf32> to vector<2x36xf32>
    %cst_91 = arith.constant 2.000000e+00 : f32
    %283 = vector.broadcast %cst_91 : f32 to vector<2x36xf32>
    %284 = arith.mulf %283, %281 : vector<2x36xf32>
    %285 = arith.subf %282, %284 : vector<2x36xf32>
    %286 = vector.extract_strided_slice %277 {offsets = [3, 0], sizes = [2, 36], strides = [1, 1]} : vector<6x36xf32> to vector<2x36xf32>
    %287 = arith.addf %285, %286 : vector<2x36xf32>
    %cst_92 = arith.constant -5.000000e-01 : f32
    %288 = vector.broadcast %cst_92 : f32 to vector<2x36xf32>
    %289 = arith.mulf %288, %287 : vector<2x36xf32>
    %290 = vector.broadcast %7 : vector<1x36xf32> to vector<2x36xf32>
    %291 = arith.addf %289, %290 : vector<2x36xf32>
    %cst_93 = arith.constant 2.000000e+00 : f32
    %292 = vector.broadcast %cst_93 : f32 to vector<6x36xf32>
    %293 = arith.mulf %292, %277 : vector<6x36xf32>
    %294 = arith.subf %293, %280 : vector<6x36xf32>
    %cst_94 = arith.constant 0.166666672 : f32
    %295 = vector.broadcast %cst_94 : f32 to vector<6x36xf32>
    %296 = arith.mulf %294, %295 : vector<6x36xf32>
    %cst_95 = arith.constant 3.000000e+00 : f32
    %297 = vector.broadcast %cst_95 : f32 to vector<6x36xf32>
    %298 = arith.mulf %297, %277 : vector<6x36xf32>
    %299 = arith.subf %280, %298 : vector<6x36xf32>
    %cst_96 = arith.constant 0.333333343 : f32
    %300 = vector.broadcast %cst_96 : f32 to vector<6x36xf32>
    %301 = arith.mulf %299, %300 : vector<6x36xf32>
    %cst_97 = arith.constant 4.000000e+00 : f32
    %302 = vector.broadcast %cst_97 : f32 to vector<6x36xf32>
    %303 = arith.mulf %302, %277 : vector<6x36xf32>
    %304 = arith.subf %303, %280 : vector<6x36xf32>
    %cst_98 = arith.constant 0.333333343 : f32
    %305 = vector.broadcast %cst_98 : f32 to vector<6x36xf32>
    %306 = arith.mulf %304, %305 : vector<6x36xf32>
    %307 = vector.extract_strided_slice %296 {offsets = [0, 0], sizes = [2, 36], strides = [1, 1]} : vector<6x36xf32> to vector<2x36xf32>
    %308 = vector.extract_strided_slice %301 {offsets = [1, 0], sizes = [2, 36], strides = [1, 1]} : vector<6x36xf32> to vector<2x36xf32>
    %309 = arith.addf %307, %308 : vector<2x36xf32>
    %310 = vector.extract_strided_slice %306 {offsets = [2, 0], sizes = [2, 36], strides = [1, 1]} : vector<6x36xf32> to vector<2x36xf32>
    %311 = arith.addf %309, %310 : vector<2x36xf32>
    %312 = vector.extract_strided_slice %301 {offsets = [3, 0], sizes = [2, 36], strides = [1, 1]} : vector<6x36xf32> to vector<2x36xf32>
    %313 = arith.addf %311, %312 : vector<2x36xf32>
    %314 = vector.extract_strided_slice %296 {offsets = [4, 0], sizes = [2, 36], strides = [1, 1]} : vector<6x36xf32> to vector<2x36xf32>
    %315 = arith.addf %313, %314 : vector<2x36xf32>
    %316 = vector.broadcast %8 : vector<1x36xf32> to vector<2x36xf32>
    %317 = arith.addf %315, %316 : vector<2x36xf32>
    %318 = arith.maximumf %291, %317 : vector<2x36xf32>
    %319 = arith.maximumf %318, %281 : vector<2x36xf32>
    %cst_99 = arith.constant dense<0xFF800000> : vector<36xf32>
    %320 = vector.multi_reduction <maximumf>, %319, %cst_99 [0] : vector<2x36xf32> to vector<36xf32>
    %321 = vector.shape_cast %320 : vector<36xf32> to vector<1x36xf32>
    %322 = vector.extract_strided_slice %321 {offsets = [0, 0], sizes = [1, 16], strides = [1, 1]} : vector<1x36xf32> to vector<1x16xf32>
    %323 = vector.extract_strided_slice %322 {offsets = [0, 0], sizes = [1, 2], strides = [1, 1]} : vector<1x16xf32> to vector<1x2xf32>
    %cst_100 = arith.constant dense<0xFF800000> : vector<1xf32>
    %324 = vector.multi_reduction <maximumf>, %323, %cst_100 [1] : vector<1x2xf32> to vector<1xf32>
    %325 = vector.shape_cast %324 : vector<1xf32> to vector<1x1xf32>
    %326 = vector.extract_strided_slice %322 {offsets = [0, 1], sizes = [1, 3], strides = [1, 1]} : vector<1x16xf32> to vector<1x3xf32>
    %cst_101 = arith.constant dense<0xFF800000> : vector<1xf32>
    %327 = vector.multi_reduction <maximumf>, %326, %cst_101 [1] : vector<1x3xf32> to vector<1xf32>
    %328 = vector.shape_cast %327 : vector<1xf32> to vector<1x1xf32>
    %329 = vector.extract_strided_slice %322 {offsets = [0, 3], sizes = [1, 2], strides = [1, 1]} : vector<1x16xf32> to vector<1x2xf32>
    %cst_102 = arith.constant dense<0xFF800000> : vector<1xf32>
    %330 = vector.multi_reduction <maximumf>, %329, %cst_102 [1] : vector<1x2xf32> to vector<1xf32>
    %331 = vector.shape_cast %330 : vector<1xf32> to vector<1x1xf32>
    %332 = vector.extract_strided_slice %322 {offsets = [0, 4], sizes = [1, 3], strides = [1, 1]} : vector<1x16xf32> to vector<1x3xf32>
    %cst_103 = arith.constant dense<0xFF800000> : vector<1xf32>
    %333 = vector.multi_reduction <maximumf>, %332, %cst_103 [1] : vector<1x3xf32> to vector<1xf32>
    %334 = vector.shape_cast %333 : vector<1xf32> to vector<1x1xf32>
    %335 = vector.extract_strided_slice %322 {offsets = [0, 6], sizes = [1, 2], strides = [1, 1]} : vector<1x16xf32> to vector<1x2xf32>
    %cst_104 = arith.constant dense<0xFF800000> : vector<1xf32>
    %336 = vector.multi_reduction <maximumf>, %335, %cst_104 [1] : vector<1x2xf32> to vector<1xf32>
    %337 = vector.shape_cast %336 : vector<1xf32> to vector<1x1xf32>
    %338 = vector.extract_strided_slice %322 {offsets = [0, 8], sizes = [1, 2], strides = [1, 1]} : vector<1x16xf32> to vector<1x2xf32>
    %cst_105 = arith.constant dense<0xFF800000> : vector<1xf32>
    %339 = vector.multi_reduction <maximumf>, %338, %cst_105 [1] : vector<1x2xf32> to vector<1xf32>
    %340 = vector.shape_cast %339 : vector<1xf32> to vector<1x1xf32>
    %341 = vector.extract_strided_slice %322 {offsets = [0, 9], sizes = [1, 3], strides = [1, 1]} : vector<1x16xf32> to vector<1x3xf32>
    %cst_106 = arith.constant dense<0xFF800000> : vector<1xf32>
    %342 = vector.multi_reduction <maximumf>, %341, %cst_106 [1] : vector<1x3xf32> to vector<1xf32>
    %343 = vector.shape_cast %342 : vector<1xf32> to vector<1x1xf32>
    %344 = vector.extract_strided_slice %322 {offsets = [0, 11], sizes = [1, 2], strides = [1, 1]} : vector<1x16xf32> to vector<1x2xf32>
    %cst_107 = arith.constant dense<0xFF800000> : vector<1xf32>
    %345 = vector.multi_reduction <maximumf>, %344, %cst_107 [1] : vector<1x2xf32> to vector<1xf32>
    %346 = vector.shape_cast %345 : vector<1xf32> to vector<1x1xf32>
    %347 = vector.extract_strided_slice %322 {offsets = [0, 12], sizes = [1, 3], strides = [1, 1]} : vector<1x16xf32> to vector<1x3xf32>
    %cst_108 = arith.constant dense<0xFF800000> : vector<1xf32>
    %348 = vector.multi_reduction <maximumf>, %347, %cst_108 [1] : vector<1x3xf32> to vector<1xf32>
    %349 = vector.shape_cast %348 : vector<1xf32> to vector<1x1xf32>
    %350 = vector.extract_strided_slice %322 {offsets = [0, 14], sizes = [1, 2], strides = [1, 1]} : vector<1x16xf32> to vector<1x2xf32>
    %cst_109 = arith.constant dense<0xFF800000> : vector<1xf32>
    %351 = vector.multi_reduction <maximumf>, %350, %cst_109 [1] : vector<1x2xf32> to vector<1xf32>
    %352 = vector.shape_cast %351 : vector<1xf32> to vector<1x1xf32>
    %353 = vector.extract_strided_slice %321 {offsets = [0, 20], sizes = [1, 16], strides = [1, 1]} : vector<1x36xf32> to vector<1x16xf32>
    %354 = vector.extract_strided_slice %353 {offsets = [0, 0], sizes = [1, 2], strides = [1, 1]} : vector<1x16xf32> to vector<1x2xf32>
    %cst_110 = arith.constant dense<0xFF800000> : vector<1xf32>
    %355 = vector.multi_reduction <maximumf>, %354, %cst_110 [1] : vector<1x2xf32> to vector<1xf32>
    %356 = vector.shape_cast %355 : vector<1xf32> to vector<1x1xf32>
    %357 = vector.extract_strided_slice %353 {offsets = [0, 1], sizes = [1, 3], strides = [1, 1]} : vector<1x16xf32> to vector<1x3xf32>
    %cst_111 = arith.constant dense<0xFF800000> : vector<1xf32>
    %358 = vector.multi_reduction <maximumf>, %357, %cst_111 [1] : vector<1x3xf32> to vector<1xf32>
    %359 = vector.shape_cast %358 : vector<1xf32> to vector<1x1xf32>
    %360 = vector.extract_strided_slice %353 {offsets = [0, 3], sizes = [1, 2], strides = [1, 1]} : vector<1x16xf32> to vector<1x2xf32>
    %cst_112 = arith.constant dense<0xFF800000> : vector<1xf32>
    %361 = vector.multi_reduction <maximumf>, %360, %cst_112 [1] : vector<1x2xf32> to vector<1xf32>
    %362 = vector.shape_cast %361 : vector<1xf32> to vector<1x1xf32>
    %363 = vector.extract_strided_slice %353 {offsets = [0, 4], sizes = [1, 3], strides = [1, 1]} : vector<1x16xf32> to vector<1x3xf32>
    %cst_113 = arith.constant dense<0xFF800000> : vector<1xf32>
    %364 = vector.multi_reduction <maximumf>, %363, %cst_113 [1] : vector<1x3xf32> to vector<1xf32>
    %365 = vector.shape_cast %364 : vector<1xf32> to vector<1x1xf32>
    %366 = vector.extract_strided_slice %353 {offsets = [0, 6], sizes = [1, 2], strides = [1, 1]} : vector<1x16xf32> to vector<1x2xf32>
    %cst_114 = arith.constant dense<0xFF800000> : vector<1xf32>
    %367 = vector.multi_reduction <maximumf>, %366, %cst_114 [1] : vector<1x2xf32> to vector<1xf32>
    %368 = vector.shape_cast %367 : vector<1xf32> to vector<1x1xf32>
    %369 = vector.extract_strided_slice %353 {offsets = [0, 8], sizes = [1, 2], strides = [1, 1]} : vector<1x16xf32> to vector<1x2xf32>
    %cst_115 = arith.constant dense<0xFF800000> : vector<1xf32>
    %370 = vector.multi_reduction <maximumf>, %369, %cst_115 [1] : vector<1x2xf32> to vector<1xf32>
    %371 = vector.shape_cast %370 : vector<1xf32> to vector<1x1xf32>
    %372 = vector.extract_strided_slice %353 {offsets = [0, 9], sizes = [1, 3], strides = [1, 1]} : vector<1x16xf32> to vector<1x3xf32>
    %cst_116 = arith.constant dense<0xFF800000> : vector<1xf32>
    %373 = vector.multi_reduction <maximumf>, %372, %cst_116 [1] : vector<1x3xf32> to vector<1xf32>
    %374 = vector.shape_cast %373 : vector<1xf32> to vector<1x1xf32>
    %375 = vector.extract_strided_slice %353 {offsets = [0, 11], sizes = [1, 2], strides = [1, 1]} : vector<1x16xf32> to vector<1x2xf32>
    %cst_117 = arith.constant dense<0xFF800000> : vector<1xf32>
    %376 = vector.multi_reduction <maximumf>, %375, %cst_117 [1] : vector<1x2xf32> to vector<1xf32>
    %377 = vector.shape_cast %376 : vector<1xf32> to vector<1x1xf32>
    %378 = vector.extract_strided_slice %353 {offsets = [0, 12], sizes = [1, 3], strides = [1, 1]} : vector<1x16xf32> to vector<1x3xf32>
    %cst_118 = arith.constant dense<0xFF800000> : vector<1xf32>
    %379 = vector.multi_reduction <maximumf>, %378, %cst_118 [1] : vector<1x3xf32> to vector<1xf32>
    %380 = vector.shape_cast %379 : vector<1xf32> to vector<1x1xf32>
    %381 = vector.extract_strided_slice %353 {offsets = [0, 14], sizes = [1, 2], strides = [1, 1]} : vector<1x16xf32> to vector<1x2xf32>
    %cst_119 = arith.constant dense<0xFF800000> : vector<1xf32>
    %382 = vector.multi_reduction <maximumf>, %381, %cst_119 [1] : vector<1x2xf32> to vector<1xf32>
    %383 = vector.shape_cast %382 : vector<1xf32> to vector<1x1xf32>
    %384 = tpu.concatenate %325, %328, %331, %334, %337, %340, %343, %346, %349, %352, %356, %359, %362, %365, %368, %371 in 1 : vector<1x1xf32>, vector<1x1xf32>, vector<1x1xf32>, vector<1x1xf32>, vector<1x1xf32>, vector<1x1xf32>, vector<1x1xf32>, vector<1x1xf32>, vector<1x1xf32>, vector<1x1xf32>, vector<1x1xf32>, vector<1x1xf32>, vector<1x1xf32>, vector<1x1xf32>, vector<1x1xf32>, vector<1x1xf32> -> vector<1x16xf32>
    %385 = tpu.concatenate %374, %377, %380, %383 in 1 : vector<1x1xf32>, vector<1x1xf32>, vector<1x1xf32>, vector<1x1xf32> -> vector<1x4xf32>
    %386 = tpu.concatenate %384, %385 in 1 : vector<1x16xf32>, vector<1x4xf32> -> vector<1x20xf32>
    %c4 = arith.constant 4 : index
    %c0_120 = arith.constant 0 : index
    %387 = vector.load %arg4[%c4, %c0_120] : memref<20x40xf32, #tpu.memory_space<vmem>>, vector<7x40xf32>
    %388 = vector.extract_strided_slice %387 {offsets = [0, 2], sizes = [7, 36], strides = [1, 1]} : vector<7x40xf32> to vector<7x36xf32>
    %389 = vector.extract_strided_slice %387 {offsets = [0, 1], sizes = [7, 36], strides = [1, 1]} : vector<7x40xf32> to vector<7x36xf32>
    %390 = vector.extract_strided_slice %387 {offsets = [0, 3], sizes = [7, 36], strides = [1, 1]} : vector<7x40xf32> to vector<7x36xf32>
    %391 = arith.addf %389, %390 : vector<7x36xf32>
    %392 = vector.extract_strided_slice %387 {offsets = [0, 0], sizes = [7, 36], strides = [1, 1]} : vector<7x40xf32> to vector<7x36xf32>
    %393 = vector.extract_strided_slice %387 {offsets = [0, 4], sizes = [7, 36], strides = [1, 1]} : vector<7x40xf32> to vector<7x36xf32>
    %394 = arith.addf %392, %393 : vector<7x36xf32>
    %cst_121 = arith.constant 2.000000e+00 : f32
    %395 = vector.broadcast %cst_121 : f32 to vector<7x36xf32>
    %396 = arith.mulf %395, %388 : vector<7x36xf32>
    %397 = arith.subf %391, %396 : vector<7x36xf32>
    %cst_122 = arith.constant 2.000000e+00 : f32
    %398 = vector.broadcast %cst_122 : f32 to vector<7x36xf32>
    %399 = arith.mulf %398, %388 : vector<7x36xf32>
    %400 = arith.subf %394, %399 : vector<7x36xf32>
    %401 = vector.extract_strided_slice %397 {offsets = [2, 0], sizes = [3, 36], strides = [1, 1]} : vector<7x36xf32> to vector<3x36xf32>
    %402 = vector.extract_strided_slice %397 {offsets = [1, 0], sizes = [3, 36], strides = [1, 1]} : vector<7x36xf32> to vector<3x36xf32>
    %cst_123 = arith.constant 2.000000e+00 : f32
    %403 = vector.broadcast %cst_123 : f32 to vector<3x36xf32>
    %404 = arith.mulf %403, %401 : vector<3x36xf32>
    %405 = arith.subf %402, %404 : vector<3x36xf32>
    %406 = vector.extract_strided_slice %397 {offsets = [3, 0], sizes = [3, 36], strides = [1, 1]} : vector<7x36xf32> to vector<3x36xf32>
    %407 = arith.addf %405, %406 : vector<3x36xf32>
    %cst_124 = arith.constant -5.000000e-01 : f32
    %408 = vector.broadcast %cst_124 : f32 to vector<3x36xf32>
    %409 = arith.mulf %408, %407 : vector<3x36xf32>
    %410 = vector.broadcast %7 : vector<1x36xf32> to vector<3x36xf32>
    %411 = arith.addf %409, %410 : vector<3x36xf32>
    %cst_125 = arith.constant 2.000000e+00 : f32
    %412 = vector.broadcast %cst_125 : f32 to vector<7x36xf32>
    %413 = arith.mulf %412, %397 : vector<7x36xf32>
    %414 = arith.subf %413, %400 : vector<7x36xf32>
    %cst_126 = arith.constant 0.166666672 : f32
    %415 = vector.broadcast %cst_126 : f32 to vector<7x36xf32>
    %416 = arith.mulf %414, %415 : vector<7x36xf32>
    %cst_127 = arith.constant 3.000000e+00 : f32
    %417 = vector.broadcast %cst_127 : f32 to vector<7x36xf32>
    %418 = arith.mulf %417, %397 : vector<7x36xf32>
    %419 = arith.subf %400, %418 : vector<7x36xf32>
    %cst_128 = arith.constant 0.333333343 : f32
    %420 = vector.broadcast %cst_128 : f32 to vector<7x36xf32>
    %421 = arith.mulf %419, %420 : vector<7x36xf32>
    %cst_129 = arith.constant 4.000000e+00 : f32
    %422 = vector.broadcast %cst_129 : f32 to vector<7x36xf32>
    %423 = arith.mulf %422, %397 : vector<7x36xf32>
    %424 = arith.subf %423, %400 : vector<7x36xf32>
    %cst_130 = arith.constant 0.333333343 : f32
    %425 = vector.broadcast %cst_130 : f32 to vector<7x36xf32>
    %426 = arith.mulf %424, %425 : vector<7x36xf32>
    %427 = vector.extract_strided_slice %416 {offsets = [0, 0], sizes = [3, 36], strides = [1, 1]} : vector<7x36xf32> to vector<3x36xf32>
    %428 = vector.extract_strided_slice %421 {offsets = [1, 0], sizes = [3, 36], strides = [1, 1]} : vector<7x36xf32> to vector<3x36xf32>
    %429 = arith.addf %427, %428 : vector<3x36xf32>
    %430 = vector.extract_strided_slice %426 {offsets = [2, 0], sizes = [3, 36], strides = [1, 1]} : vector<7x36xf32> to vector<3x36xf32>
    %431 = arith.addf %429, %430 : vector<3x36xf32>
    %432 = vector.extract_strided_slice %421 {offsets = [3, 0], sizes = [3, 36], strides = [1, 1]} : vector<7x36xf32> to vector<3x36xf32>
    %433 = arith.addf %431, %432 : vector<3x36xf32>
    %434 = vector.extract_strided_slice %416 {offsets = [4, 0], sizes = [3, 36], strides = [1, 1]} : vector<7x36xf32> to vector<3x36xf32>
    %435 = arith.addf %433, %434 : vector<3x36xf32>
    %436 = vector.broadcast %8 : vector<1x36xf32> to vector<3x36xf32>
    %437 = arith.addf %435, %436 : vector<3x36xf32>
    %438 = arith.maximumf %411, %437 : vector<3x36xf32>
    %439 = arith.maximumf %438, %401 : vector<3x36xf32>
    %cst_131 = arith.constant dense<0xFF800000> : vector<36xf32>
    %440 = vector.multi_reduction <maximumf>, %439, %cst_131 [0] : vector<3x36xf32> to vector<36xf32>
    %441 = vector.shape_cast %440 : vector<36xf32> to vector<1x36xf32>
    %442 = vector.extract_strided_slice %441 {offsets = [0, 0], sizes = [1, 16], strides = [1, 1]} : vector<1x36xf32> to vector<1x16xf32>
    %443 = vector.extract_strided_slice %442 {offsets = [0, 0], sizes = [1, 2], strides = [1, 1]} : vector<1x16xf32> to vector<1x2xf32>
    %cst_132 = arith.constant dense<0xFF800000> : vector<1xf32>
    %444 = vector.multi_reduction <maximumf>, %443, %cst_132 [1] : vector<1x2xf32> to vector<1xf32>
    %445 = vector.shape_cast %444 : vector<1xf32> to vector<1x1xf32>
    %446 = vector.extract_strided_slice %442 {offsets = [0, 1], sizes = [1, 3], strides = [1, 1]} : vector<1x16xf32> to vector<1x3xf32>
    %cst_133 = arith.constant dense<0xFF800000> : vector<1xf32>
    %447 = vector.multi_reduction <maximumf>, %446, %cst_133 [1] : vector<1x3xf32> to vector<1xf32>
    %448 = vector.shape_cast %447 : vector<1xf32> to vector<1x1xf32>
    %449 = vector.extract_strided_slice %442 {offsets = [0, 3], sizes = [1, 2], strides = [1, 1]} : vector<1x16xf32> to vector<1x2xf32>
    %cst_134 = arith.constant dense<0xFF800000> : vector<1xf32>
    %450 = vector.multi_reduction <maximumf>, %449, %cst_134 [1] : vector<1x2xf32> to vector<1xf32>
    %451 = vector.shape_cast %450 : vector<1xf32> to vector<1x1xf32>
    %452 = vector.extract_strided_slice %442 {offsets = [0, 4], sizes = [1, 3], strides = [1, 1]} : vector<1x16xf32> to vector<1x3xf32>
    %cst_135 = arith.constant dense<0xFF800000> : vector<1xf32>
    %453 = vector.multi_reduction <maximumf>, %452, %cst_135 [1] : vector<1x3xf32> to vector<1xf32>
    %454 = vector.shape_cast %453 : vector<1xf32> to vector<1x1xf32>
    %455 = vector.extract_strided_slice %442 {offsets = [0, 6], sizes = [1, 2], strides = [1, 1]} : vector<1x16xf32> to vector<1x2xf32>
    %cst_136 = arith.constant dense<0xFF800000> : vector<1xf32>
    %456 = vector.multi_reduction <maximumf>, %455, %cst_136 [1] : vector<1x2xf32> to vector<1xf32>
    %457 = vector.shape_cast %456 : vector<1xf32> to vector<1x1xf32>
    %458 = vector.extract_strided_slice %442 {offsets = [0, 8], sizes = [1, 2], strides = [1, 1]} : vector<1x16xf32> to vector<1x2xf32>
    %cst_137 = arith.constant dense<0xFF800000> : vector<1xf32>
    %459 = vector.multi_reduction <maximumf>, %458, %cst_137 [1] : vector<1x2xf32> to vector<1xf32>
    %460 = vector.shape_cast %459 : vector<1xf32> to vector<1x1xf32>
    %461 = vector.extract_strided_slice %442 {offsets = [0, 9], sizes = [1, 3], strides = [1, 1]} : vector<1x16xf32> to vector<1x3xf32>
    %cst_138 = arith.constant dense<0xFF800000> : vector<1xf32>
    %462 = vector.multi_reduction <maximumf>, %461, %cst_138 [1] : vector<1x3xf32> to vector<1xf32>
    %463 = vector.shape_cast %462 : vector<1xf32> to vector<1x1xf32>
    %464 = vector.extract_strided_slice %442 {offsets = [0, 11], sizes = [1, 2], strides = [1, 1]} : vector<1x16xf32> to vector<1x2xf32>
    %cst_139 = arith.constant dense<0xFF800000> : vector<1xf32>
    %465 = vector.multi_reduction <maximumf>, %464, %cst_139 [1] : vector<1x2xf32> to vector<1xf32>
    %466 = vector.shape_cast %465 : vector<1xf32> to vector<1x1xf32>
    %467 = vector.extract_strided_slice %442 {offsets = [0, 12], sizes = [1, 3], strides = [1, 1]} : vector<1x16xf32> to vector<1x3xf32>
    %cst_140 = arith.constant dense<0xFF800000> : vector<1xf32>
    %468 = vector.multi_reduction <maximumf>, %467, %cst_140 [1] : vector<1x3xf32> to vector<1xf32>
    %469 = vector.shape_cast %468 : vector<1xf32> to vector<1x1xf32>
    %470 = vector.extract_strided_slice %442 {offsets = [0, 14], sizes = [1, 2], strides = [1, 1]} : vector<1x16xf32> to vector<1x2xf32>
    %cst_141 = arith.constant dense<0xFF800000> : vector<1xf32>
    %471 = vector.multi_reduction <maximumf>, %470, %cst_141 [1] : vector<1x2xf32> to vector<1xf32>
    %472 = vector.shape_cast %471 : vector<1xf32> to vector<1x1xf32>
    %473 = vector.extract_strided_slice %441 {offsets = [0, 20], sizes = [1, 16], strides = [1, 1]} : vector<1x36xf32> to vector<1x16xf32>
    %474 = vector.extract_strided_slice %473 {offsets = [0, 0], sizes = [1, 2], strides = [1, 1]} : vector<1x16xf32> to vector<1x2xf32>
    %cst_142 = arith.constant dense<0xFF800000> : vector<1xf32>
    %475 = vector.multi_reduction <maximumf>, %474, %cst_142 [1] : vector<1x2xf32> to vector<1xf32>
    %476 = vector.shape_cast %475 : vector<1xf32> to vector<1x1xf32>
    %477 = vector.extract_strided_slice %473 {offsets = [0, 1], sizes = [1, 3], strides = [1, 1]} : vector<1x16xf32> to vector<1x3xf32>
    %cst_143 = arith.constant dense<0xFF800000> : vector<1xf32>
    %478 = vector.multi_reduction <maximumf>, %477, %cst_143 [1] : vector<1x3xf32> to vector<1xf32>
    %479 = vector.shape_cast %478 : vector<1xf32> to vector<1x1xf32>
    %480 = vector.extract_strided_slice %473 {offsets = [0, 3], sizes = [1, 2], strides = [1, 1]} : vector<1x16xf32> to vector<1x2xf32>
    %cst_144 = arith.constant dense<0xFF800000> : vector<1xf32>
    %481 = vector.multi_reduction <maximumf>, %480, %cst_144 [1] : vector<1x2xf32> to vector<1xf32>
    %482 = vector.shape_cast %481 : vector<1xf32> to vector<1x1xf32>
    %483 = vector.extract_strided_slice %473 {offsets = [0, 4], sizes = [1, 3], strides = [1, 1]} : vector<1x16xf32> to vector<1x3xf32>
    %cst_145 = arith.constant dense<0xFF800000> : vector<1xf32>
    %484 = vector.multi_reduction <maximumf>, %483, %cst_145 [1] : vector<1x3xf32> to vector<1xf32>
    %485 = vector.shape_cast %484 : vector<1xf32> to vector<1x1xf32>
    %486 = vector.extract_strided_slice %473 {offsets = [0, 6], sizes = [1, 2], strides = [1, 1]} : vector<1x16xf32> to vector<1x2xf32>
    %cst_146 = arith.constant dense<0xFF800000> : vector<1xf32>
    %487 = vector.multi_reduction <maximumf>, %486, %cst_146 [1] : vector<1x2xf32> to vector<1xf32>
    %488 = vector.shape_cast %487 : vector<1xf32> to vector<1x1xf32>
    %489 = vector.extract_strided_slice %473 {offsets = [0, 8], sizes = [1, 2], strides = [1, 1]} : vector<1x16xf32> to vector<1x2xf32>
    %cst_147 = arith.constant dense<0xFF800000> : vector<1xf32>
    %490 = vector.multi_reduction <maximumf>, %489, %cst_147 [1] : vector<1x2xf32> to vector<1xf32>
    %491 = vector.shape_cast %490 : vector<1xf32> to vector<1x1xf32>
    %492 = vector.extract_strided_slice %473 {offsets = [0, 9], sizes = [1, 3], strides = [1, 1]} : vector<1x16xf32> to vector<1x3xf32>
    %cst_148 = arith.constant dense<0xFF800000> : vector<1xf32>
    %493 = vector.multi_reduction <maximumf>, %492, %cst_148 [1] : vector<1x3xf32> to vector<1xf32>
    %494 = vector.shape_cast %493 : vector<1xf32> to vector<1x1xf32>
    %495 = vector.extract_strided_slice %473 {offsets = [0, 11], sizes = [1, 2], strides = [1, 1]} : vector<1x16xf32> to vector<1x2xf32>
    %cst_149 = arith.constant dense<0xFF800000> : vector<1xf32>
    %496 = vector.multi_reduction <maximumf>, %495, %cst_149 [1] : vector<1x2xf32> to vector<1xf32>
    %497 = vector.shape_cast %496 : vector<1xf32> to vector<1x1xf32>
    %498 = vector.extract_strided_slice %473 {offsets = [0, 12], sizes = [1, 3], strides = [1, 1]} : vector<1x16xf32> to vector<1x3xf32>
    %cst_150 = arith.constant dense<0xFF800000> : vector<1xf32>
    %499 = vector.multi_reduction <maximumf>, %498, %cst_150 [1] : vector<1x3xf32> to vector<1xf32>
    %500 = vector.shape_cast %499 : vector<1xf32> to vector<1x1xf32>
    %501 = vector.extract_strided_slice %473 {offsets = [0, 14], sizes = [1, 2], strides = [1, 1]} : vector<1x16xf32> to vector<1x2xf32>
    %cst_151 = arith.constant dense<0xFF800000> : vector<1xf32>
    %502 = vector.multi_reduction <maximumf>, %501, %cst_151 [1] : vector<1x2xf32> to vector<1xf32>
    %503 = vector.shape_cast %502 : vector<1xf32> to vector<1x1xf32>
    %504 = tpu.concatenate %445, %448, %451, %454, %457, %460, %463, %466, %469, %472, %476, %479, %482, %485, %488, %491 in 1 : vector<1x1xf32>, vector<1x1xf32>, vector<1x1xf32>, vector<1x1xf32>, vector<1x1xf32>, vector<1x1xf32>, vector<1x1xf32>, vector<1x1xf32>, vector<1x1xf32>, vector<1x1xf32>, vector<1x1xf32>, vector<1x1xf32>, vector<1x1xf32>, vector<1x1xf32>, vector<1x1xf32>, vector<1x1xf32> -> vector<1x16xf32>
    %505 = tpu.concatenate %494, %497, %500, %503 in 1 : vector<1x1xf32>, vector<1x1xf32>, vector<1x1xf32>, vector<1x1xf32> -> vector<1x4xf32>
    %506 = tpu.concatenate %504, %505 in 1 : vector<1x16xf32>, vector<1x4xf32> -> vector<1x20xf32>
    %c6 = arith.constant 6 : index
    %c0_152 = arith.constant 0 : index
    %507 = vector.load %arg4[%c6, %c0_152] : memref<20x40xf32, #tpu.memory_space<vmem>>, vector<6x40xf32>
    %508 = vector.extract_strided_slice %507 {offsets = [0, 2], sizes = [6, 36], strides = [1, 1]} : vector<6x40xf32> to vector<6x36xf32>
    %509 = vector.extract_strided_slice %507 {offsets = [0, 1], sizes = [6, 36], strides = [1, 1]} : vector<6x40xf32> to vector<6x36xf32>
    %510 = vector.extract_strided_slice %507 {offsets = [0, 3], sizes = [6, 36], strides = [1, 1]} : vector<6x40xf32> to vector<6x36xf32>
    %511 = arith.addf %509, %510 : vector<6x36xf32>
    %512 = vector.extract_strided_slice %507 {offsets = [0, 0], sizes = [6, 36], strides = [1, 1]} : vector<6x40xf32> to vector<6x36xf32>
    %513 = vector.extract_strided_slice %507 {offsets = [0, 4], sizes = [6, 36], strides = [1, 1]} : vector<6x40xf32> to vector<6x36xf32>
    %514 = arith.addf %512, %513 : vector<6x36xf32>
    %cst_153 = arith.constant 2.000000e+00 : f32
    %515 = vector.broadcast %cst_153 : f32 to vector<6x36xf32>
    %516 = arith.mulf %515, %508 : vector<6x36xf32>
    %517 = arith.subf %511, %516 : vector<6x36xf32>
    %cst_154 = arith.constant 2.000000e+00 : f32
    %518 = vector.broadcast %cst_154 : f32 to vector<6x36xf32>
    %519 = arith.mulf %518, %508 : vector<6x36xf32>
    %520 = arith.subf %514, %519 : vector<6x36xf32>
    %521 = vector.extract_strided_slice %517 {offsets = [2, 0], sizes = [2, 36], strides = [1, 1]} : vector<6x36xf32> to vector<2x36xf32>
    %522 = vector.extract_strided_slice %517 {offsets = [1, 0], sizes = [2, 36], strides = [1, 1]} : vector<6x36xf32> to vector<2x36xf32>
    %cst_155 = arith.constant 2.000000e+00 : f32
    %523 = vector.broadcast %cst_155 : f32 to vector<2x36xf32>
    %524 = arith.mulf %523, %521 : vector<2x36xf32>
    %525 = arith.subf %522, %524 : vector<2x36xf32>
    %526 = vector.extract_strided_slice %517 {offsets = [3, 0], sizes = [2, 36], strides = [1, 1]} : vector<6x36xf32> to vector<2x36xf32>
    %527 = arith.addf %525, %526 : vector<2x36xf32>
    %cst_156 = arith.constant -5.000000e-01 : f32
    %528 = vector.broadcast %cst_156 : f32 to vector<2x36xf32>
    %529 = arith.mulf %528, %527 : vector<2x36xf32>
    %530 = vector.broadcast %7 : vector<1x36xf32> to vector<2x36xf32>
    %531 = arith.addf %529, %530 : vector<2x36xf32>
    %cst_157 = arith.constant 2.000000e+00 : f32
    %532 = vector.broadcast %cst_157 : f32 to vector<6x36xf32>
    %533 = arith.mulf %532, %517 : vector<6x36xf32>
    %534 = arith.subf %533, %520 : vector<6x36xf32>
    %cst_158 = arith.constant 0.166666672 : f32
    %535 = vector.broadcast %cst_158 : f32 to vector<6x36xf32>
    %536 = arith.mulf %534, %535 : vector<6x36xf32>
    %cst_159 = arith.constant 3.000000e+00 : f32
    %537 = vector.broadcast %cst_159 : f32 to vector<6x36xf32>
    %538 = arith.mulf %537, %517 : vector<6x36xf32>
    %539 = arith.subf %520, %538 : vector<6x36xf32>
    %cst_160 = arith.constant 0.333333343 : f32
    %540 = vector.broadcast %cst_160 : f32 to vector<6x36xf32>
    %541 = arith.mulf %539, %540 : vector<6x36xf32>
    %cst_161 = arith.constant 4.000000e+00 : f32
    %542 = vector.broadcast %cst_161 : f32 to vector<6x36xf32>
    %543 = arith.mulf %542, %517 : vector<6x36xf32>
    %544 = arith.subf %543, %520 : vector<6x36xf32>
    %cst_162 = arith.constant 0.333333343 : f32
    %545 = vector.broadcast %cst_162 : f32 to vector<6x36xf32>
    %546 = arith.mulf %544, %545 : vector<6x36xf32>
    %547 = vector.extract_strided_slice %536 {offsets = [0, 0], sizes = [2, 36], strides = [1, 1]} : vector<6x36xf32> to vector<2x36xf32>
    %548 = vector.extract_strided_slice %541 {offsets = [1, 0], sizes = [2, 36], strides = [1, 1]} : vector<6x36xf32> to vector<2x36xf32>
    %549 = arith.addf %547, %548 : vector<2x36xf32>
    %550 = vector.extract_strided_slice %546 {offsets = [2, 0], sizes = [2, 36], strides = [1, 1]} : vector<6x36xf32> to vector<2x36xf32>
    %551 = arith.addf %549, %550 : vector<2x36xf32>
    %552 = vector.extract_strided_slice %541 {offsets = [3, 0], sizes = [2, 36], strides = [1, 1]} : vector<6x36xf32> to vector<2x36xf32>
    %553 = arith.addf %551, %552 : vector<2x36xf32>
    %554 = vector.extract_strided_slice %536 {offsets = [4, 0], sizes = [2, 36], strides = [1, 1]} : vector<6x36xf32> to vector<2x36xf32>
    %555 = arith.addf %553, %554 : vector<2x36xf32>
    %556 = vector.broadcast %8 : vector<1x36xf32> to vector<2x36xf32>
    %557 = arith.addf %555, %556 : vector<2x36xf32>
    %558 = arith.maximumf %531, %557 : vector<2x36xf32>
    %559 = arith.maximumf %558, %521 : vector<2x36xf32>
    %cst_163 = arith.constant dense<0xFF800000> : vector<36xf32>
    %560 = vector.multi_reduction <maximumf>, %559, %cst_163 [0] : vector<2x36xf32> to vector<36xf32>
    %561 = vector.shape_cast %560 : vector<36xf32> to vector<1x36xf32>
    %562 = vector.extract_strided_slice %561 {offsets = [0, 0], sizes = [1, 16], strides = [1, 1]} : vector<1x36xf32> to vector<1x16xf32>
    %563 = vector.extract_strided_slice %562 {offsets = [0, 0], sizes = [1, 2], strides = [1, 1]} : vector<1x16xf32> to vector<1x2xf32>
    %cst_164 = arith.constant dense<0xFF800000> : vector<1xf32>
    %564 = vector.multi_reduction <maximumf>, %563, %cst_164 [1] : vector<1x2xf32> to vector<1xf32>
    %565 = vector.shape_cast %564 : vector<1xf32> to vector<1x1xf32>
    %566 = vector.extract_strided_slice %562 {offsets = [0, 1], sizes = [1, 3], strides = [1, 1]} : vector<1x16xf32> to vector<1x3xf32>
    %cst_165 = arith.constant dense<0xFF800000> : vector<1xf32>
    %567 = vector.multi_reduction <maximumf>, %566, %cst_165 [1] : vector<1x3xf32> to vector<1xf32>
    %568 = vector.shape_cast %567 : vector<1xf32> to vector<1x1xf32>
    %569 = vector.extract_strided_slice %562 {offsets = [0, 3], sizes = [1, 2], strides = [1, 1]} : vector<1x16xf32> to vector<1x2xf32>
    %cst_166 = arith.constant dense<0xFF800000> : vector<1xf32>
    %570 = vector.multi_reduction <maximumf>, %569, %cst_166 [1] : vector<1x2xf32> to vector<1xf32>
    %571 = vector.shape_cast %570 : vector<1xf32> to vector<1x1xf32>
    %572 = vector.extract_strided_slice %562 {offsets = [0, 4], sizes = [1, 3], strides = [1, 1]} : vector<1x16xf32> to vector<1x3xf32>
    %cst_167 = arith.constant dense<0xFF800000> : vector<1xf32>
    %573 = vector.multi_reduction <maximumf>, %572, %cst_167 [1] : vector<1x3xf32> to vector<1xf32>
    %574 = vector.shape_cast %573 : vector<1xf32> to vector<1x1xf32>
    %575 = vector.extract_strided_slice %562 {offsets = [0, 6], sizes = [1, 2], strides = [1, 1]} : vector<1x16xf32> to vector<1x2xf32>
    %cst_168 = arith.constant dense<0xFF800000> : vector<1xf32>
    %576 = vector.multi_reduction <maximumf>, %575, %cst_168 [1] : vector<1x2xf32> to vector<1xf32>
    %577 = vector.shape_cast %576 : vector<1xf32> to vector<1x1xf32>
    %578 = vector.extract_strided_slice %562 {offsets = [0, 8], sizes = [1, 2], strides = [1, 1]} : vector<1x16xf32> to vector<1x2xf32>
    %cst_169 = arith.constant dense<0xFF800000> : vector<1xf32>
    %579 = vector.multi_reduction <maximumf>, %578, %cst_169 [1] : vector<1x2xf32> to vector<1xf32>
    %580 = vector.shape_cast %579 : vector<1xf32> to vector<1x1xf32>
    %581 = vector.extract_strided_slice %562 {offsets = [0, 9], sizes = [1, 3], strides = [1, 1]} : vector<1x16xf32> to vector<1x3xf32>
    %cst_170 = arith.constant dense<0xFF800000> : vector<1xf32>
    %582 = vector.multi_reduction <maximumf>, %581, %cst_170 [1] : vector<1x3xf32> to vector<1xf32>
    %583 = vector.shape_cast %582 : vector<1xf32> to vector<1x1xf32>
    %584 = vector.extract_strided_slice %562 {offsets = [0, 11], sizes = [1, 2], strides = [1, 1]} : vector<1x16xf32> to vector<1x2xf32>
    %cst_171 = arith.constant dense<0xFF800000> : vector<1xf32>
    %585 = vector.multi_reduction <maximumf>, %584, %cst_171 [1] : vector<1x2xf32> to vector<1xf32>
    %586 = vector.shape_cast %585 : vector<1xf32> to vector<1x1xf32>
    %587 = vector.extract_strided_slice %562 {offsets = [0, 12], sizes = [1, 3], strides = [1, 1]} : vector<1x16xf32> to vector<1x3xf32>
    %cst_172 = arith.constant dense<0xFF800000> : vector<1xf32>
    %588 = vector.multi_reduction <maximumf>, %587, %cst_172 [1] : vector<1x3xf32> to vector<1xf32>
    %589 = vector.shape_cast %588 : vector<1xf32> to vector<1x1xf32>
    %590 = vector.extract_strided_slice %562 {offsets = [0, 14], sizes = [1, 2], strides = [1, 1]} : vector<1x16xf32> to vector<1x2xf32>
    %cst_173 = arith.constant dense<0xFF800000> : vector<1xf32>
    %591 = vector.multi_reduction <maximumf>, %590, %cst_173 [1] : vector<1x2xf32> to vector<1xf32>
    %592 = vector.shape_cast %591 : vector<1xf32> to vector<1x1xf32>
    %593 = vector.extract_strided_slice %561 {offsets = [0, 20], sizes = [1, 16], strides = [1, 1]} : vector<1x36xf32> to vector<1x16xf32>
    %594 = vector.extract_strided_slice %593 {offsets = [0, 0], sizes = [1, 2], strides = [1, 1]} : vector<1x16xf32> to vector<1x2xf32>
    %cst_174 = arith.constant dense<0xFF800000> : vector<1xf32>
    %595 = vector.multi_reduction <maximumf>, %594, %cst_174 [1] : vector<1x2xf32> to vector<1xf32>
    %596 = vector.shape_cast %595 : vector<1xf32> to vector<1x1xf32>
    %597 = vector.extract_strided_slice %593 {offsets = [0, 1], sizes = [1, 3], strides = [1, 1]} : vector<1x16xf32> to vector<1x3xf32>
    %cst_175 = arith.constant dense<0xFF800000> : vector<1xf32>
    %598 = vector.multi_reduction <maximumf>, %597, %cst_175 [1] : vector<1x3xf32> to vector<1xf32>
    %599 = vector.shape_cast %598 : vector<1xf32> to vector<1x1xf32>
    %600 = vector.extract_strided_slice %593 {offsets = [0, 3], sizes = [1, 2], strides = [1, 1]} : vector<1x16xf32> to vector<1x2xf32>
    %cst_176 = arith.constant dense<0xFF800000> : vector<1xf32>
    %601 = vector.multi_reduction <maximumf>, %600, %cst_176 [1] : vector<1x2xf32> to vector<1xf32>
    %602 = vector.shape_cast %601 : vector<1xf32> to vector<1x1xf32>
    %603 = vector.extract_strided_slice %593 {offsets = [0, 4], sizes = [1, 3], strides = [1, 1]} : vector<1x16xf32> to vector<1x3xf32>
    %cst_177 = arith.constant dense<0xFF800000> : vector<1xf32>
    %604 = vector.multi_reduction <maximumf>, %603, %cst_177 [1] : vector<1x3xf32> to vector<1xf32>
    %605 = vector.shape_cast %604 : vector<1xf32> to vector<1x1xf32>
    %606 = vector.extract_strided_slice %593 {offsets = [0, 6], sizes = [1, 2], strides = [1, 1]} : vector<1x16xf32> to vector<1x2xf32>
    %cst_178 = arith.constant dense<0xFF800000> : vector<1xf32>
    %607 = vector.multi_reduction <maximumf>, %606, %cst_178 [1] : vector<1x2xf32> to vector<1xf32>
    %608 = vector.shape_cast %607 : vector<1xf32> to vector<1x1xf32>
    %609 = vector.extract_strided_slice %593 {offsets = [0, 8], sizes = [1, 2], strides = [1, 1]} : vector<1x16xf32> to vector<1x2xf32>
    %cst_179 = arith.constant dense<0xFF800000> : vector<1xf32>
    %610 = vector.multi_reduction <maximumf>, %609, %cst_179 [1] : vector<1x2xf32> to vector<1xf32>
    %611 = vector.shape_cast %610 : vector<1xf32> to vector<1x1xf32>
    %612 = vector.extract_strided_slice %593 {offsets = [0, 9], sizes = [1, 3], strides = [1, 1]} : vector<1x16xf32> to vector<1x3xf32>
    %cst_180 = arith.constant dense<0xFF800000> : vector<1xf32>
    %613 = vector.multi_reduction <maximumf>, %612, %cst_180 [1] : vector<1x3xf32> to vector<1xf32>
    %614 = vector.shape_cast %613 : vector<1xf32> to vector<1x1xf32>
    %615 = vector.extract_strided_slice %593 {offsets = [0, 11], sizes = [1, 2], strides = [1, 1]} : vector<1x16xf32> to vector<1x2xf32>
    %cst_181 = arith.constant dense<0xFF800000> : vector<1xf32>
    %616 = vector.multi_reduction <maximumf>, %615, %cst_181 [1] : vector<1x2xf32> to vector<1xf32>
    %617 = vector.shape_cast %616 : vector<1xf32> to vector<1x1xf32>
    %618 = vector.extract_strided_slice %593 {offsets = [0, 12], sizes = [1, 3], strides = [1, 1]} : vector<1x16xf32> to vector<1x3xf32>
    %cst_182 = arith.constant dense<0xFF800000> : vector<1xf32>
    %619 = vector.multi_reduction <maximumf>, %618, %cst_182 [1] : vector<1x3xf32> to vector<1xf32>
    %620 = vector.shape_cast %619 : vector<1xf32> to vector<1x1xf32>
    %621 = vector.extract_strided_slice %593 {offsets = [0, 14], sizes = [1, 2], strides = [1, 1]} : vector<1x16xf32> to vector<1x2xf32>
    %cst_183 = arith.constant dense<0xFF800000> : vector<1xf32>
    %622 = vector.multi_reduction <maximumf>, %621, %cst_183 [1] : vector<1x2xf32> to vector<1xf32>
    %623 = vector.shape_cast %622 : vector<1xf32> to vector<1x1xf32>
    %624 = tpu.concatenate %565, %568, %571, %574, %577, %580, %583, %586, %589, %592, %596, %599, %602, %605, %608, %611 in 1 : vector<1x1xf32>, vector<1x1xf32>, vector<1x1xf32>, vector<1x1xf32>, vector<1x1xf32>, vector<1x1xf32>, vector<1x1xf32>, vector<1x1xf32>, vector<1x1xf32>, vector<1x1xf32>, vector<1x1xf32>, vector<1x1xf32>, vector<1x1xf32>, vector<1x1xf32>, vector<1x1xf32>, vector<1x1xf32> -> vector<1x16xf32>
    %625 = tpu.concatenate %614, %617, %620, %623 in 1 : vector<1x1xf32>, vector<1x1xf32>, vector<1x1xf32>, vector<1x1xf32> -> vector<1x4xf32>
    %626 = tpu.concatenate %624, %625 in 1 : vector<1x16xf32>, vector<1x4xf32> -> vector<1x20xf32>
    %c8 = arith.constant 8 : index
    %c0_184 = arith.constant 0 : index
    %627 = vector.load %arg4[%c8, %c0_184] : memref<20x40xf32, #tpu.memory_space<vmem>>, vector<6x40xf32>
    %628 = vector.extract_strided_slice %627 {offsets = [0, 2], sizes = [6, 36], strides = [1, 1]} : vector<6x40xf32> to vector<6x36xf32>
    %629 = vector.extract_strided_slice %627 {offsets = [0, 1], sizes = [6, 36], strides = [1, 1]} : vector<6x40xf32> to vector<6x36xf32>
    %630 = vector.extract_strided_slice %627 {offsets = [0, 3], sizes = [6, 36], strides = [1, 1]} : vector<6x40xf32> to vector<6x36xf32>
    %631 = arith.addf %629, %630 : vector<6x36xf32>
    %632 = vector.extract_strided_slice %627 {offsets = [0, 0], sizes = [6, 36], strides = [1, 1]} : vector<6x40xf32> to vector<6x36xf32>
    %633 = vector.extract_strided_slice %627 {offsets = [0, 4], sizes = [6, 36], strides = [1, 1]} : vector<6x40xf32> to vector<6x36xf32>
    %634 = arith.addf %632, %633 : vector<6x36xf32>
    %cst_185 = arith.constant 2.000000e+00 : f32
    %635 = vector.broadcast %cst_185 : f32 to vector<6x36xf32>
    %636 = arith.mulf %635, %628 : vector<6x36xf32>
    %637 = arith.subf %631, %636 : vector<6x36xf32>
    %cst_186 = arith.constant 2.000000e+00 : f32
    %638 = vector.broadcast %cst_186 : f32 to vector<6x36xf32>
    %639 = arith.mulf %638, %628 : vector<6x36xf32>
    %640 = arith.subf %634, %639 : vector<6x36xf32>
    %641 = vector.extract_strided_slice %637 {offsets = [2, 0], sizes = [2, 36], strides = [1, 1]} : vector<6x36xf32> to vector<2x36xf32>
    %642 = vector.extract_strided_slice %637 {offsets = [1, 0], sizes = [2, 36], strides = [1, 1]} : vector<6x36xf32> to vector<2x36xf32>
    %cst_187 = arith.constant 2.000000e+00 : f32
    %643 = vector.broadcast %cst_187 : f32 to vector<2x36xf32>
    %644 = arith.mulf %643, %641 : vector<2x36xf32>
    %645 = arith.subf %642, %644 : vector<2x36xf32>
    %646 = vector.extract_strided_slice %637 {offsets = [3, 0], sizes = [2, 36], strides = [1, 1]} : vector<6x36xf32> to vector<2x36xf32>
    %647 = arith.addf %645, %646 : vector<2x36xf32>
    %cst_188 = arith.constant -5.000000e-01 : f32
    %648 = vector.broadcast %cst_188 : f32 to vector<2x36xf32>
    %649 = arith.mulf %648, %647 : vector<2x36xf32>
    %650 = vector.broadcast %7 : vector<1x36xf32> to vector<2x36xf32>
    %651 = arith.addf %649, %650 : vector<2x36xf32>
    %cst_189 = arith.constant 2.000000e+00 : f32
    %652 = vector.broadcast %cst_189 : f32 to vector<6x36xf32>
    %653 = arith.mulf %652, %637 : vector<6x36xf32>
    %654 = arith.subf %653, %640 : vector<6x36xf32>
    %cst_190 = arith.constant 0.166666672 : f32
    %655 = vector.broadcast %cst_190 : f32 to vector<6x36xf32>
    %656 = arith.mulf %654, %655 : vector<6x36xf32>
    %cst_191 = arith.constant 3.000000e+00 : f32
    %657 = vector.broadcast %cst_191 : f32 to vector<6x36xf32>
    %658 = arith.mulf %657, %637 : vector<6x36xf32>
    %659 = arith.subf %640, %658 : vector<6x36xf32>
    %cst_192 = arith.constant 0.333333343 : f32
    %660 = vector.broadcast %cst_192 : f32 to vector<6x36xf32>
    %661 = arith.mulf %659, %660 : vector<6x36xf32>
    %cst_193 = arith.constant 4.000000e+00 : f32
    %662 = vector.broadcast %cst_193 : f32 to vector<6x36xf32>
    %663 = arith.mulf %662, %637 : vector<6x36xf32>
    %664 = arith.subf %663, %640 : vector<6x36xf32>
    %cst_194 = arith.constant 0.333333343 : f32
    %665 = vector.broadcast %cst_194 : f32 to vector<6x36xf32>
    %666 = arith.mulf %664, %665 : vector<6x36xf32>
    %667 = vector.extract_strided_slice %656 {offsets = [0, 0], sizes = [2, 36], strides = [1, 1]} : vector<6x36xf32> to vector<2x36xf32>
    %668 = vector.extract_strided_slice %661 {offsets = [1, 0], sizes = [2, 36], strides = [1, 1]} : vector<6x36xf32> to vector<2x36xf32>
    %669 = arith.addf %667, %668 : vector<2x36xf32>
    %670 = vector.extract_strided_slice %666 {offsets = [2, 0], sizes = [2, 36], strides = [1, 1]} : vector<6x36xf32> to vector<2x36xf32>
    %671 = arith.addf %669, %670 : vector<2x36xf32>
    %672 = vector.extract_strided_slice %661 {offsets = [3, 0], sizes = [2, 36], strides = [1, 1]} : vector<6x36xf32> to vector<2x36xf32>
    %673 = arith.addf %671, %672 : vector<2x36xf32>
    %674 = vector.extract_strided_slice %656 {offsets = [4, 0], sizes = [2, 36], strides = [1, 1]} : vector<6x36xf32> to vector<2x36xf32>
    %675 = arith.addf %673, %674 : vector<2x36xf32>
    %676 = vector.broadcast %8 : vector<1x36xf32> to vector<2x36xf32>
    %677 = arith.addf %675, %676 : vector<2x36xf32>
    %678 = arith.maximumf %651, %677 : vector<2x36xf32>
    %679 = arith.maximumf %678, %641 : vector<2x36xf32>
    %cst_195 = arith.constant dense<0xFF800000> : vector<36xf32>
    %680 = vector.multi_reduction <maximumf>, %679, %cst_195 [0] : vector<2x36xf32> to vector<36xf32>
    %681 = vector.shape_cast %680 : vector<36xf32> to vector<1x36xf32>
    %682 = vector.extract_strided_slice %681 {offsets = [0, 0], sizes = [1, 16], strides = [1, 1]} : vector<1x36xf32> to vector<1x16xf32>
    %683 = vector.extract_strided_slice %682 {offsets = [0, 0], sizes = [1, 2], strides = [1, 1]} : vector<1x16xf32> to vector<1x2xf32>
    %cst_196 = arith.constant dense<0xFF800000> : vector<1xf32>
    %684 = vector.multi_reduction <maximumf>, %683, %cst_196 [1] : vector<1x2xf32> to vector<1xf32>
    %685 = vector.shape_cast %684 : vector<1xf32> to vector<1x1xf32>
    %686 = vector.extract_strided_slice %682 {offsets = [0, 1], sizes = [1, 3], strides = [1, 1]} : vector<1x16xf32> to vector<1x3xf32>
    %cst_197 = arith.constant dense<0xFF800000> : vector<1xf32>
    %687 = vector.multi_reduction <maximumf>, %686, %cst_197 [1] : vector<1x3xf32> to vector<1xf32>
    %688 = vector.shape_cast %687 : vector<1xf32> to vector<1x1xf32>
    %689 = vector.extract_strided_slice %682 {offsets = [0, 3], sizes = [1, 2], strides = [1, 1]} : vector<1x16xf32> to vector<1x2xf32>
    %cst_198 = arith.constant dense<0xFF800000> : vector<1xf32>
    %690 = vector.multi_reduction <maximumf>, %689, %cst_198 [1] : vector<1x2xf32> to vector<1xf32>
    %691 = vector.shape_cast %690 : vector<1xf32> to vector<1x1xf32>
    %692 = vector.extract_strided_slice %682 {offsets = [0, 4], sizes = [1, 3], strides = [1, 1]} : vector<1x16xf32> to vector<1x3xf32>
    %cst_199 = arith.constant dense<0xFF800000> : vector<1xf32>
    %693 = vector.multi_reduction <maximumf>, %692, %cst_199 [1] : vector<1x3xf32> to vector<1xf32>
    %694 = vector.shape_cast %693 : vector<1xf32> to vector<1x1xf32>
    %695 = vector.extract_strided_slice %682 {offsets = [0, 6], sizes = [1, 2], strides = [1, 1]} : vector<1x16xf32> to vector<1x2xf32>
    %cst_200 = arith.constant dense<0xFF800000> : vector<1xf32>
    %696 = vector.multi_reduction <maximumf>, %695, %cst_200 [1] : vector<1x2xf32> to vector<1xf32>
    %697 = vector.shape_cast %696 : vector<1xf32> to vector<1x1xf32>
    %698 = vector.extract_strided_slice %682 {offsets = [0, 8], sizes = [1, 2], strides = [1, 1]} : vector<1x16xf32> to vector<1x2xf32>
    %cst_201 = arith.constant dense<0xFF800000> : vector<1xf32>
    %699 = vector.multi_reduction <maximumf>, %698, %cst_201 [1] : vector<1x2xf32> to vector<1xf32>
    %700 = vector.shape_cast %699 : vector<1xf32> to vector<1x1xf32>
    %701 = vector.extract_strided_slice %682 {offsets = [0, 9], sizes = [1, 3], strides = [1, 1]} : vector<1x16xf32> to vector<1x3xf32>
    %cst_202 = arith.constant dense<0xFF800000> : vector<1xf32>
    %702 = vector.multi_reduction <maximumf>, %701, %cst_202 [1] : vector<1x3xf32> to vector<1xf32>
    %703 = vector.shape_cast %702 : vector<1xf32> to vector<1x1xf32>
    %704 = vector.extract_strided_slice %682 {offsets = [0, 11], sizes = [1, 2], strides = [1, 1]} : vector<1x16xf32> to vector<1x2xf32>
    %cst_203 = arith.constant dense<0xFF800000> : vector<1xf32>
    %705 = vector.multi_reduction <maximumf>, %704, %cst_203 [1] : vector<1x2xf32> to vector<1xf32>
    %706 = vector.shape_cast %705 : vector<1xf32> to vector<1x1xf32>
    %707 = vector.extract_strided_slice %682 {offsets = [0, 12], sizes = [1, 3], strides = [1, 1]} : vector<1x16xf32> to vector<1x3xf32>
    %cst_204 = arith.constant dense<0xFF800000> : vector<1xf32>
    %708 = vector.multi_reduction <maximumf>, %707, %cst_204 [1] : vector<1x3xf32> to vector<1xf32>
    %709 = vector.shape_cast %708 : vector<1xf32> to vector<1x1xf32>
    %710 = vector.extract_strided_slice %682 {offsets = [0, 14], sizes = [1, 2], strides = [1, 1]} : vector<1x16xf32> to vector<1x2xf32>
    %cst_205 = arith.constant dense<0xFF800000> : vector<1xf32>
    %711 = vector.multi_reduction <maximumf>, %710, %cst_205 [1] : vector<1x2xf32> to vector<1xf32>
    %712 = vector.shape_cast %711 : vector<1xf32> to vector<1x1xf32>
    %713 = vector.extract_strided_slice %681 {offsets = [0, 20], sizes = [1, 16], strides = [1, 1]} : vector<1x36xf32> to vector<1x16xf32>
    %714 = vector.extract_strided_slice %713 {offsets = [0, 0], sizes = [1, 2], strides = [1, 1]} : vector<1x16xf32> to vector<1x2xf32>
    %cst_206 = arith.constant dense<0xFF800000> : vector<1xf32>
    %715 = vector.multi_reduction <maximumf>, %714, %cst_206 [1] : vector<1x2xf32> to vector<1xf32>
    %716 = vector.shape_cast %715 : vector<1xf32> to vector<1x1xf32>
    %717 = vector.extract_strided_slice %713 {offsets = [0, 1], sizes = [1, 3], strides = [1, 1]} : vector<1x16xf32> to vector<1x3xf32>
    %cst_207 = arith.constant dense<0xFF800000> : vector<1xf32>
    %718 = vector.multi_reduction <maximumf>, %717, %cst_207 [1] : vector<1x3xf32> to vector<1xf32>
    %719 = vector.shape_cast %718 : vector<1xf32> to vector<1x1xf32>
    %720 = vector.extract_strided_slice %713 {offsets = [0, 3], sizes = [1, 2], strides = [1, 1]} : vector<1x16xf32> to vector<1x2xf32>
    %cst_208 = arith.constant dense<0xFF800000> : vector<1xf32>
    %721 = vector.multi_reduction <maximumf>, %720, %cst_208 [1] : vector<1x2xf32> to vector<1xf32>
    %722 = vector.shape_cast %721 : vector<1xf32> to vector<1x1xf32>
    %723 = vector.extract_strided_slice %713 {offsets = [0, 4], sizes = [1, 3], strides = [1, 1]} : vector<1x16xf32> to vector<1x3xf32>
    %cst_209 = arith.constant dense<0xFF800000> : vector<1xf32>
    %724 = vector.multi_reduction <maximumf>, %723, %cst_209 [1] : vector<1x3xf32> to vector<1xf32>
    %725 = vector.shape_cast %724 : vector<1xf32> to vector<1x1xf32>
    %726 = vector.extract_strided_slice %713 {offsets = [0, 6], sizes = [1, 2], strides = [1, 1]} : vector<1x16xf32> to vector<1x2xf32>
    %cst_210 = arith.constant dense<0xFF800000> : vector<1xf32>
    %727 = vector.multi_reduction <maximumf>, %726, %cst_210 [1] : vector<1x2xf32> to vector<1xf32>
    %728 = vector.shape_cast %727 : vector<1xf32> to vector<1x1xf32>
    %729 = vector.extract_strided_slice %713 {offsets = [0, 8], sizes = [1, 2], strides = [1, 1]} : vector<1x16xf32> to vector<1x2xf32>
    %cst_211 = arith.constant dense<0xFF800000> : vector<1xf32>
    %730 = vector.multi_reduction <maximumf>, %729, %cst_211 [1] : vector<1x2xf32> to vector<1xf32>
    %731 = vector.shape_cast %730 : vector<1xf32> to vector<1x1xf32>
    %732 = vector.extract_strided_slice %713 {offsets = [0, 9], sizes = [1, 3], strides = [1, 1]} : vector<1x16xf32> to vector<1x3xf32>
    %cst_212 = arith.constant dense<0xFF800000> : vector<1xf32>
    %733 = vector.multi_reduction <maximumf>, %732, %cst_212 [1] : vector<1x3xf32> to vector<1xf32>
    %734 = vector.shape_cast %733 : vector<1xf32> to vector<1x1xf32>
    %735 = vector.extract_strided_slice %713 {offsets = [0, 11], sizes = [1, 2], strides = [1, 1]} : vector<1x16xf32> to vector<1x2xf32>
    %cst_213 = arith.constant dense<0xFF800000> : vector<1xf32>
    %736 = vector.multi_reduction <maximumf>, %735, %cst_213 [1] : vector<1x2xf32> to vector<1xf32>
    %737 = vector.shape_cast %736 : vector<1xf32> to vector<1x1xf32>
    %738 = vector.extract_strided_slice %713 {offsets = [0, 12], sizes = [1, 3], strides = [1, 1]} : vector<1x16xf32> to vector<1x3xf32>
    %cst_214 = arith.constant dense<0xFF800000> : vector<1xf32>
    %739 = vector.multi_reduction <maximumf>, %738, %cst_214 [1] : vector<1x3xf32> to vector<1xf32>
    %740 = vector.shape_cast %739 : vector<1xf32> to vector<1x1xf32>
    %741 = vector.extract_strided_slice %713 {offsets = [0, 14], sizes = [1, 2], strides = [1, 1]} : vector<1x16xf32> to vector<1x2xf32>
    %cst_215 = arith.constant dense<0xFF800000> : vector<1xf32>
    %742 = vector.multi_reduction <maximumf>, %741, %cst_215 [1] : vector<1x2xf32> to vector<1xf32>
    %743 = vector.shape_cast %742 : vector<1xf32> to vector<1x1xf32>
    %744 = tpu.concatenate %685, %688, %691, %694, %697, %700, %703, %706, %709, %712, %716, %719, %722, %725, %728, %731 in 1 : vector<1x1xf32>, vector<1x1xf32>, vector<1x1xf32>, vector<1x1xf32>, vector<1x1xf32>, vector<1x1xf32>, vector<1x1xf32>, vector<1x1xf32>, vector<1x1xf32>, vector<1x1xf32>, vector<1x1xf32>, vector<1x1xf32>, vector<1x1xf32>, vector<1x1xf32>, vector<1x1xf32>, vector<1x1xf32> -> vector<1x16xf32>
    %745 = tpu.concatenate %734, %737, %740, %743 in 1 : vector<1x1xf32>, vector<1x1xf32>, vector<1x1xf32>, vector<1x1xf32> -> vector<1x4xf32>
    %746 = tpu.concatenate %744, %745 in 1 : vector<1x16xf32>, vector<1x4xf32> -> vector<1x20xf32>
    %c9 = arith.constant 9 : index
    %c0_216 = arith.constant 0 : index
    %747 = vector.load %arg4[%c9, %c0_216] : memref<20x40xf32, #tpu.memory_space<vmem>>, vector<7x40xf32>
    %748 = vector.extract_strided_slice %747 {offsets = [0, 2], sizes = [7, 36], strides = [1, 1]} : vector<7x40xf32> to vector<7x36xf32>
    %749 = vector.extract_strided_slice %747 {offsets = [0, 1], sizes = [7, 36], strides = [1, 1]} : vector<7x40xf32> to vector<7x36xf32>
    %750 = vector.extract_strided_slice %747 {offsets = [0, 3], sizes = [7, 36], strides = [1, 1]} : vector<7x40xf32> to vector<7x36xf32>
    %751 = arith.addf %749, %750 : vector<7x36xf32>
    %752 = vector.extract_strided_slice %747 {offsets = [0, 0], sizes = [7, 36], strides = [1, 1]} : vector<7x40xf32> to vector<7x36xf32>
    %753 = vector.extract_strided_slice %747 {offsets = [0, 4], sizes = [7, 36], strides = [1, 1]} : vector<7x40xf32> to vector<7x36xf32>
    %754 = arith.addf %752, %753 : vector<7x36xf32>
    %cst_217 = arith.constant 2.000000e+00 : f32
    %755 = vector.broadcast %cst_217 : f32 to vector<7x36xf32>
    %756 = arith.mulf %755, %748 : vector<7x36xf32>
    %757 = arith.subf %751, %756 : vector<7x36xf32>
    %cst_218 = arith.constant 2.000000e+00 : f32
    %758 = vector.broadcast %cst_218 : f32 to vector<7x36xf32>
    %759 = arith.mulf %758, %748 : vector<7x36xf32>
    %760 = arith.subf %754, %759 : vector<7x36xf32>
    %761 = vector.extract_strided_slice %757 {offsets = [2, 0], sizes = [3, 36], strides = [1, 1]} : vector<7x36xf32> to vector<3x36xf32>
    %762 = vector.extract_strided_slice %757 {offsets = [1, 0], sizes = [3, 36], strides = [1, 1]} : vector<7x36xf32> to vector<3x36xf32>
    %cst_219 = arith.constant 2.000000e+00 : f32
    %763 = vector.broadcast %cst_219 : f32 to vector<3x36xf32>
    %764 = arith.mulf %763, %761 : vector<3x36xf32>
    %765 = arith.subf %762, %764 : vector<3x36xf32>
    %766 = vector.extract_strided_slice %757 {offsets = [3, 0], sizes = [3, 36], strides = [1, 1]} : vector<7x36xf32> to vector<3x36xf32>
    %767 = arith.addf %765, %766 : vector<3x36xf32>
    %cst_220 = arith.constant -5.000000e-01 : f32
    %768 = vector.broadcast %cst_220 : f32 to vector<3x36xf32>
    %769 = arith.mulf %768, %767 : vector<3x36xf32>
    %770 = vector.broadcast %7 : vector<1x36xf32> to vector<3x36xf32>
    %771 = arith.addf %769, %770 : vector<3x36xf32>
    %cst_221 = arith.constant 2.000000e+00 : f32
    %772 = vector.broadcast %cst_221 : f32 to vector<7x36xf32>
    %773 = arith.mulf %772, %757 : vector<7x36xf32>
    %774 = arith.subf %773, %760 : vector<7x36xf32>
    %cst_222 = arith.constant 0.166666672 : f32
    %775 = vector.broadcast %cst_222 : f32 to vector<7x36xf32>
    %776 = arith.mulf %774, %775 : vector<7x36xf32>
    %cst_223 = arith.constant 3.000000e+00 : f32
    %777 = vector.broadcast %cst_223 : f32 to vector<7x36xf32>
    %778 = arith.mulf %777, %757 : vector<7x36xf32>
    %779 = arith.subf %760, %778 : vector<7x36xf32>
    %cst_224 = arith.constant 0.333333343 : f32
    %780 = vector.broadcast %cst_224 : f32 to vector<7x36xf32>
    %781 = arith.mulf %779, %780 : vector<7x36xf32>
    %cst_225 = arith.constant 4.000000e+00 : f32
    %782 = vector.broadcast %cst_225 : f32 to vector<7x36xf32>
    %783 = arith.mulf %782, %757 : vector<7x36xf32>
    %784 = arith.subf %783, %760 : vector<7x36xf32>
    %cst_226 = arith.constant 0.333333343 : f32
    %785 = vector.broadcast %cst_226 : f32 to vector<7x36xf32>
    %786 = arith.mulf %784, %785 : vector<7x36xf32>
    %787 = vector.extract_strided_slice %776 {offsets = [0, 0], sizes = [3, 36], strides = [1, 1]} : vector<7x36xf32> to vector<3x36xf32>
    %788 = vector.extract_strided_slice %781 {offsets = [1, 0], sizes = [3, 36], strides = [1, 1]} : vector<7x36xf32> to vector<3x36xf32>
    %789 = arith.addf %787, %788 : vector<3x36xf32>
    %790 = vector.extract_strided_slice %786 {offsets = [2, 0], sizes = [3, 36], strides = [1, 1]} : vector<7x36xf32> to vector<3x36xf32>
    %791 = arith.addf %789, %790 : vector<3x36xf32>
    %792 = vector.extract_strided_slice %781 {offsets = [3, 0], sizes = [3, 36], strides = [1, 1]} : vector<7x36xf32> to vector<3x36xf32>
    %793 = arith.addf %791, %792 : vector<3x36xf32>
    %794 = vector.extract_strided_slice %776 {offsets = [4, 0], sizes = [3, 36], strides = [1, 1]} : vector<7x36xf32> to vector<3x36xf32>
    %795 = arith.addf %793, %794 : vector<3x36xf32>
    %796 = vector.broadcast %8 : vector<1x36xf32> to vector<3x36xf32>
    %797 = arith.addf %795, %796 : vector<3x36xf32>
    %798 = arith.maximumf %771, %797 : vector<3x36xf32>
    %799 = arith.maximumf %798, %761 : vector<3x36xf32>
    %cst_227 = arith.constant dense<0xFF800000> : vector<36xf32>
    %800 = vector.multi_reduction <maximumf>, %799, %cst_227 [0] : vector<3x36xf32> to vector<36xf32>
    %801 = vector.shape_cast %800 : vector<36xf32> to vector<1x36xf32>
    %802 = vector.extract_strided_slice %801 {offsets = [0, 0], sizes = [1, 16], strides = [1, 1]} : vector<1x36xf32> to vector<1x16xf32>
    %803 = vector.extract_strided_slice %802 {offsets = [0, 0], sizes = [1, 2], strides = [1, 1]} : vector<1x16xf32> to vector<1x2xf32>
    %cst_228 = arith.constant dense<0xFF800000> : vector<1xf32>
    %804 = vector.multi_reduction <maximumf>, %803, %cst_228 [1] : vector<1x2xf32> to vector<1xf32>
    %805 = vector.shape_cast %804 : vector<1xf32> to vector<1x1xf32>
    %806 = vector.extract_strided_slice %802 {offsets = [0, 1], sizes = [1, 3], strides = [1, 1]} : vector<1x16xf32> to vector<1x3xf32>
    %cst_229 = arith.constant dense<0xFF800000> : vector<1xf32>
    %807 = vector.multi_reduction <maximumf>, %806, %cst_229 [1] : vector<1x3xf32> to vector<1xf32>
    %808 = vector.shape_cast %807 : vector<1xf32> to vector<1x1xf32>
    %809 = vector.extract_strided_slice %802 {offsets = [0, 3], sizes = [1, 2], strides = [1, 1]} : vector<1x16xf32> to vector<1x2xf32>
    %cst_230 = arith.constant dense<0xFF800000> : vector<1xf32>
    %810 = vector.multi_reduction <maximumf>, %809, %cst_230 [1] : vector<1x2xf32> to vector<1xf32>
    %811 = vector.shape_cast %810 : vector<1xf32> to vector<1x1xf32>
    %812 = vector.extract_strided_slice %802 {offsets = [0, 4], sizes = [1, 3], strides = [1, 1]} : vector<1x16xf32> to vector<1x3xf32>
    %cst_231 = arith.constant dense<0xFF800000> : vector<1xf32>
    %813 = vector.multi_reduction <maximumf>, %812, %cst_231 [1] : vector<1x3xf32> to vector<1xf32>
    %814 = vector.shape_cast %813 : vector<1xf32> to vector<1x1xf32>
    %815 = vector.extract_strided_slice %802 {offsets = [0, 6], sizes = [1, 2], strides = [1, 1]} : vector<1x16xf32> to vector<1x2xf32>
    %cst_232 = arith.constant dense<0xFF800000> : vector<1xf32>
    %816 = vector.multi_reduction <maximumf>, %815, %cst_232 [1] : vector<1x2xf32> to vector<1xf32>
    %817 = vector.shape_cast %816 : vector<1xf32> to vector<1x1xf32>
    %818 = vector.extract_strided_slice %802 {offsets = [0, 8], sizes = [1, 2], strides = [1, 1]} : vector<1x16xf32> to vector<1x2xf32>
    %cst_233 = arith.constant dense<0xFF800000> : vector<1xf32>
    %819 = vector.multi_reduction <maximumf>, %818, %cst_233 [1] : vector<1x2xf32> to vector<1xf32>
    %820 = vector.shape_cast %819 : vector<1xf32> to vector<1x1xf32>
    %821 = vector.extract_strided_slice %802 {offsets = [0, 9], sizes = [1, 3], strides = [1, 1]} : vector<1x16xf32> to vector<1x3xf32>
    %cst_234 = arith.constant dense<0xFF800000> : vector<1xf32>
    %822 = vector.multi_reduction <maximumf>, %821, %cst_234 [1] : vector<1x3xf32> to vector<1xf32>
    %823 = vector.shape_cast %822 : vector<1xf32> to vector<1x1xf32>
    %824 = vector.extract_strided_slice %802 {offsets = [0, 11], sizes = [1, 2], strides = [1, 1]} : vector<1x16xf32> to vector<1x2xf32>
    %cst_235 = arith.constant dense<0xFF800000> : vector<1xf32>
    %825 = vector.multi_reduction <maximumf>, %824, %cst_235 [1] : vector<1x2xf32> to vector<1xf32>
    %826 = vector.shape_cast %825 : vector<1xf32> to vector<1x1xf32>
    %827 = vector.extract_strided_slice %802 {offsets = [0, 12], sizes = [1, 3], strides = [1, 1]} : vector<1x16xf32> to vector<1x3xf32>
    %cst_236 = arith.constant dense<0xFF800000> : vector<1xf32>
    %828 = vector.multi_reduction <maximumf>, %827, %cst_236 [1] : vector<1x3xf32> to vector<1xf32>
    %829 = vector.shape_cast %828 : vector<1xf32> to vector<1x1xf32>
    %830 = vector.extract_strided_slice %802 {offsets = [0, 14], sizes = [1, 2], strides = [1, 1]} : vector<1x16xf32> to vector<1x2xf32>
    %cst_237 = arith.constant dense<0xFF800000> : vector<1xf32>
    %831 = vector.multi_reduction <maximumf>, %830, %cst_237 [1] : vector<1x2xf32> to vector<1xf32>
    %832 = vector.shape_cast %831 : vector<1xf32> to vector<1x1xf32>
    %833 = vector.extract_strided_slice %801 {offsets = [0, 20], sizes = [1, 16], strides = [1, 1]} : vector<1x36xf32> to vector<1x16xf32>
    %834 = vector.extract_strided_slice %833 {offsets = [0, 0], sizes = [1, 2], strides = [1, 1]} : vector<1x16xf32> to vector<1x2xf32>
    %cst_238 = arith.constant dense<0xFF800000> : vector<1xf32>
    %835 = vector.multi_reduction <maximumf>, %834, %cst_238 [1] : vector<1x2xf32> to vector<1xf32>
    %836 = vector.shape_cast %835 : vector<1xf32> to vector<1x1xf32>
    %837 = vector.extract_strided_slice %833 {offsets = [0, 1], sizes = [1, 3], strides = [1, 1]} : vector<1x16xf32> to vector<1x3xf32>
    %cst_239 = arith.constant dense<0xFF800000> : vector<1xf32>
    %838 = vector.multi_reduction <maximumf>, %837, %cst_239 [1] : vector<1x3xf32> to vector<1xf32>
    %839 = vector.shape_cast %838 : vector<1xf32> to vector<1x1xf32>
    %840 = vector.extract_strided_slice %833 {offsets = [0, 3], sizes = [1, 2], strides = [1, 1]} : vector<1x16xf32> to vector<1x2xf32>
    %cst_240 = arith.constant dense<0xFF800000> : vector<1xf32>
    %841 = vector.multi_reduction <maximumf>, %840, %cst_240 [1] : vector<1x2xf32> to vector<1xf32>
    %842 = vector.shape_cast %841 : vector<1xf32> to vector<1x1xf32>
    %843 = vector.extract_strided_slice %833 {offsets = [0, 4], sizes = [1, 3], strides = [1, 1]} : vector<1x16xf32> to vector<1x3xf32>
    %cst_241 = arith.constant dense<0xFF800000> : vector<1xf32>
    %844 = vector.multi_reduction <maximumf>, %843, %cst_241 [1] : vector<1x3xf32> to vector<1xf32>
    %845 = vector.shape_cast %844 : vector<1xf32> to vector<1x1xf32>
    %846 = vector.extract_strided_slice %833 {offsets = [0, 6], sizes = [1, 2], strides = [1, 1]} : vector<1x16xf32> to vector<1x2xf32>
    %cst_242 = arith.constant dense<0xFF800000> : vector<1xf32>
    %847 = vector.multi_reduction <maximumf>, %846, %cst_242 [1] : vector<1x2xf32> to vector<1xf32>
    %848 = vector.shape_cast %847 : vector<1xf32> to vector<1x1xf32>
    %849 = vector.extract_strided_slice %833 {offsets = [0, 8], sizes = [1, 2], strides = [1, 1]} : vector<1x16xf32> to vector<1x2xf32>
    %cst_243 = arith.constant dense<0xFF800000> : vector<1xf32>
    %850 = vector.multi_reduction <maximumf>, %849, %cst_243 [1] : vector<1x2xf32> to vector<1xf32>
    %851 = vector.shape_cast %850 : vector<1xf32> to vector<1x1xf32>
    %852 = vector.extract_strided_slice %833 {offsets = [0, 9], sizes = [1, 3], strides = [1, 1]} : vector<1x16xf32> to vector<1x3xf32>
    %cst_244 = arith.constant dense<0xFF800000> : vector<1xf32>
    %853 = vector.multi_reduction <maximumf>, %852, %cst_244 [1] : vector<1x3xf32> to vector<1xf32>
    %854 = vector.shape_cast %853 : vector<1xf32> to vector<1x1xf32>
    %855 = vector.extract_strided_slice %833 {offsets = [0, 11], sizes = [1, 2], strides = [1, 1]} : vector<1x16xf32> to vector<1x2xf32>
    %cst_245 = arith.constant dense<0xFF800000> : vector<1xf32>
    %856 = vector.multi_reduction <maximumf>, %855, %cst_245 [1] : vector<1x2xf32> to vector<1xf32>
    %857 = vector.shape_cast %856 : vector<1xf32> to vector<1x1xf32>
    %858 = vector.extract_strided_slice %833 {offsets = [0, 12], sizes = [1, 3], strides = [1, 1]} : vector<1x16xf32> to vector<1x3xf32>
    %cst_246 = arith.constant dense<0xFF800000> : vector<1xf32>
    %859 = vector.multi_reduction <maximumf>, %858, %cst_246 [1] : vector<1x3xf32> to vector<1xf32>
    %860 = vector.shape_cast %859 : vector<1xf32> to vector<1x1xf32>
    %861 = vector.extract_strided_slice %833 {offsets = [0, 14], sizes = [1, 2], strides = [1, 1]} : vector<1x16xf32> to vector<1x2xf32>
    %cst_247 = arith.constant dense<0xFF800000> : vector<1xf32>
    %862 = vector.multi_reduction <maximumf>, %861, %cst_247 [1] : vector<1x2xf32> to vector<1xf32>
    %863 = vector.shape_cast %862 : vector<1xf32> to vector<1x1xf32>
    %864 = tpu.concatenate %805, %808, %811, %814, %817, %820, %823, %826, %829, %832, %836, %839, %842, %845, %848, %851 in 1 : vector<1x1xf32>, vector<1x1xf32>, vector<1x1xf32>, vector<1x1xf32>, vector<1x1xf32>, vector<1x1xf32>, vector<1x1xf32>, vector<1x1xf32>, vector<1x1xf32>, vector<1x1xf32>, vector<1x1xf32>, vector<1x1xf32>, vector<1x1xf32>, vector<1x1xf32>, vector<1x1xf32>, vector<1x1xf32> -> vector<1x16xf32>
    %865 = tpu.concatenate %854, %857, %860, %863 in 1 : vector<1x1xf32>, vector<1x1xf32>, vector<1x1xf32>, vector<1x1xf32> -> vector<1x4xf32>
    %866 = tpu.concatenate %864, %865 in 1 : vector<1x16xf32>, vector<1x4xf32> -> vector<1x20xf32>
    %c11 = arith.constant 11 : index
    %c0_248 = arith.constant 0 : index
    %867 = vector.load %arg4[%c11, %c0_248] : memref<20x40xf32, #tpu.memory_space<vmem>>, vector<6x40xf32>
    %868 = vector.extract_strided_slice %867 {offsets = [0, 2], sizes = [6, 36], strides = [1, 1]} : vector<6x40xf32> to vector<6x36xf32>
    %869 = vector.extract_strided_slice %867 {offsets = [0, 1], sizes = [6, 36], strides = [1, 1]} : vector<6x40xf32> to vector<6x36xf32>
    %870 = vector.extract_strided_slice %867 {offsets = [0, 3], sizes = [6, 36], strides = [1, 1]} : vector<6x40xf32> to vector<6x36xf32>
    %871 = arith.addf %869, %870 : vector<6x36xf32>
    %872 = vector.extract_strided_slice %867 {offsets = [0, 0], sizes = [6, 36], strides = [1, 1]} : vector<6x40xf32> to vector<6x36xf32>
    %873 = vector.extract_strided_slice %867 {offsets = [0, 4], sizes = [6, 36], strides = [1, 1]} : vector<6x40xf32> to vector<6x36xf32>
    %874 = arith.addf %872, %873 : vector<6x36xf32>
    %cst_249 = arith.constant 2.000000e+00 : f32
    %875 = vector.broadcast %cst_249 : f32 to vector<6x36xf32>
    %876 = arith.mulf %875, %868 : vector<6x36xf32>
    %877 = arith.subf %871, %876 : vector<6x36xf32>
    %cst_250 = arith.constant 2.000000e+00 : f32
    %878 = vector.broadcast %cst_250 : f32 to vector<6x36xf32>
    %879 = arith.mulf %878, %868 : vector<6x36xf32>
    %880 = arith.subf %874, %879 : vector<6x36xf32>
    %881 = vector.extract_strided_slice %877 {offsets = [2, 0], sizes = [2, 36], strides = [1, 1]} : vector<6x36xf32> to vector<2x36xf32>
    %882 = vector.extract_strided_slice %877 {offsets = [1, 0], sizes = [2, 36], strides = [1, 1]} : vector<6x36xf32> to vector<2x36xf32>
    %cst_251 = arith.constant 2.000000e+00 : f32
    %883 = vector.broadcast %cst_251 : f32 to vector<2x36xf32>
    %884 = arith.mulf %883, %881 : vector<2x36xf32>
    %885 = arith.subf %882, %884 : vector<2x36xf32>
    %886 = vector.extract_strided_slice %877 {offsets = [3, 0], sizes = [2, 36], strides = [1, 1]} : vector<6x36xf32> to vector<2x36xf32>
    %887 = arith.addf %885, %886 : vector<2x36xf32>
    %cst_252 = arith.constant -5.000000e-01 : f32
    %888 = vector.broadcast %cst_252 : f32 to vector<2x36xf32>
    %889 = arith.mulf %888, %887 : vector<2x36xf32>
    %890 = vector.broadcast %7 : vector<1x36xf32> to vector<2x36xf32>
    %891 = arith.addf %889, %890 : vector<2x36xf32>
    %cst_253 = arith.constant 2.000000e+00 : f32
    %892 = vector.broadcast %cst_253 : f32 to vector<6x36xf32>
    %893 = arith.mulf %892, %877 : vector<6x36xf32>
    %894 = arith.subf %893, %880 : vector<6x36xf32>
    %cst_254 = arith.constant 0.166666672 : f32
    %895 = vector.broadcast %cst_254 : f32 to vector<6x36xf32>
    %896 = arith.mulf %894, %895 : vector<6x36xf32>
    %cst_255 = arith.constant 3.000000e+00 : f32
    %897 = vector.broadcast %cst_255 : f32 to vector<6x36xf32>
    %898 = arith.mulf %897, %877 : vector<6x36xf32>
    %899 = arith.subf %880, %898 : vector<6x36xf32>
    %cst_256 = arith.constant 0.333333343 : f32
    %900 = vector.broadcast %cst_256 : f32 to vector<6x36xf32>
    %901 = arith.mulf %899, %900 : vector<6x36xf32>
    %cst_257 = arith.constant 4.000000e+00 : f32
    %902 = vector.broadcast %cst_257 : f32 to vector<6x36xf32>
    %903 = arith.mulf %902, %877 : vector<6x36xf32>
    %904 = arith.subf %903, %880 : vector<6x36xf32>
    %cst_258 = arith.constant 0.333333343 : f32
    %905 = vector.broadcast %cst_258 : f32 to vector<6x36xf32>
    %906 = arith.mulf %904, %905 : vector<6x36xf32>
    %907 = vector.extract_strided_slice %896 {offsets = [0, 0], sizes = [2, 36], strides = [1, 1]} : vector<6x36xf32> to vector<2x36xf32>
    %908 = vector.extract_strided_slice %901 {offsets = [1, 0], sizes = [2, 36], strides = [1, 1]} : vector<6x36xf32> to vector<2x36xf32>
    %909 = arith.addf %907, %908 : vector<2x36xf32>
    %910 = vector.extract_strided_slice %906 {offsets = [2, 0], sizes = [2, 36], strides = [1, 1]} : vector<6x36xf32> to vector<2x36xf32>
    %911 = arith.addf %909, %910 : vector<2x36xf32>
    %912 = vector.extract_strided_slice %901 {offsets = [3, 0], sizes = [2, 36], strides = [1, 1]} : vector<6x36xf32> to vector<2x36xf32>
    %913 = arith.addf %911, %912 : vector<2x36xf32>
    %914 = vector.extract_strided_slice %896 {offsets = [4, 0], sizes = [2, 36], strides = [1, 1]} : vector<6x36xf32> to vector<2x36xf32>
    %915 = arith.addf %913, %914 : vector<2x36xf32>
    %916 = vector.broadcast %8 : vector<1x36xf32> to vector<2x36xf32>
    %917 = arith.addf %915, %916 : vector<2x36xf32>
    %918 = arith.maximumf %891, %917 : vector<2x36xf32>
    %919 = arith.maximumf %918, %881 : vector<2x36xf32>
    %cst_259 = arith.constant dense<0xFF800000> : vector<36xf32>
    %920 = vector.multi_reduction <maximumf>, %919, %cst_259 [0] : vector<2x36xf32> to vector<36xf32>
    %921 = vector.shape_cast %920 : vector<36xf32> to vector<1x36xf32>
    %922 = vector.extract_strided_slice %921 {offsets = [0, 0], sizes = [1, 16], strides = [1, 1]} : vector<1x36xf32> to vector<1x16xf32>
    %923 = vector.extract_strided_slice %922 {offsets = [0, 0], sizes = [1, 2], strides = [1, 1]} : vector<1x16xf32> to vector<1x2xf32>
    %cst_260 = arith.constant dense<0xFF800000> : vector<1xf32>
    %924 = vector.multi_reduction <maximumf>, %923, %cst_260 [1] : vector<1x2xf32> to vector<1xf32>
    %925 = vector.shape_cast %924 : vector<1xf32> to vector<1x1xf32>
    %926 = vector.extract_strided_slice %922 {offsets = [0, 1], sizes = [1, 3], strides = [1, 1]} : vector<1x16xf32> to vector<1x3xf32>
    %cst_261 = arith.constant dense<0xFF800000> : vector<1xf32>
    %927 = vector.multi_reduction <maximumf>, %926, %cst_261 [1] : vector<1x3xf32> to vector<1xf32>
    %928 = vector.shape_cast %927 : vector<1xf32> to vector<1x1xf32>
    %929 = vector.extract_strided_slice %922 {offsets = [0, 3], sizes = [1, 2], strides = [1, 1]} : vector<1x16xf32> to vector<1x2xf32>
    %cst_262 = arith.constant dense<0xFF800000> : vector<1xf32>
    %930 = vector.multi_reduction <maximumf>, %929, %cst_262 [1] : vector<1x2xf32> to vector<1xf32>
    %931 = vector.shape_cast %930 : vector<1xf32> to vector<1x1xf32>
    %932 = vector.extract_strided_slice %922 {offsets = [0, 4], sizes = [1, 3], strides = [1, 1]} : vector<1x16xf32> to vector<1x3xf32>
    %cst_263 = arith.constant dense<0xFF800000> : vector<1xf32>
    %933 = vector.multi_reduction <maximumf>, %932, %cst_263 [1] : vector<1x3xf32> to vector<1xf32>
    %934 = vector.shape_cast %933 : vector<1xf32> to vector<1x1xf32>
    %935 = vector.extract_strided_slice %922 {offsets = [0, 6], sizes = [1, 2], strides = [1, 1]} : vector<1x16xf32> to vector<1x2xf32>
    %cst_264 = arith.constant dense<0xFF800000> : vector<1xf32>
    %936 = vector.multi_reduction <maximumf>, %935, %cst_264 [1] : vector<1x2xf32> to vector<1xf32>
    %937 = vector.shape_cast %936 : vector<1xf32> to vector<1x1xf32>
    %938 = vector.extract_strided_slice %922 {offsets = [0, 8], sizes = [1, 2], strides = [1, 1]} : vector<1x16xf32> to vector<1x2xf32>
    %cst_265 = arith.constant dense<0xFF800000> : vector<1xf32>
    %939 = vector.multi_reduction <maximumf>, %938, %cst_265 [1] : vector<1x2xf32> to vector<1xf32>
    %940 = vector.shape_cast %939 : vector<1xf32> to vector<1x1xf32>
    %941 = vector.extract_strided_slice %922 {offsets = [0, 9], sizes = [1, 3], strides = [1, 1]} : vector<1x16xf32> to vector<1x3xf32>
    %cst_266 = arith.constant dense<0xFF800000> : vector<1xf32>
    %942 = vector.multi_reduction <maximumf>, %941, %cst_266 [1] : vector<1x3xf32> to vector<1xf32>
    %943 = vector.shape_cast %942 : vector<1xf32> to vector<1x1xf32>
    %944 = vector.extract_strided_slice %922 {offsets = [0, 11], sizes = [1, 2], strides = [1, 1]} : vector<1x16xf32> to vector<1x2xf32>
    %cst_267 = arith.constant dense<0xFF800000> : vector<1xf32>
    %945 = vector.multi_reduction <maximumf>, %944, %cst_267 [1] : vector<1x2xf32> to vector<1xf32>
    %946 = vector.shape_cast %945 : vector<1xf32> to vector<1x1xf32>
    %947 = vector.extract_strided_slice %922 {offsets = [0, 12], sizes = [1, 3], strides = [1, 1]} : vector<1x16xf32> to vector<1x3xf32>
    %cst_268 = arith.constant dense<0xFF800000> : vector<1xf32>
    %948 = vector.multi_reduction <maximumf>, %947, %cst_268 [1] : vector<1x3xf32> to vector<1xf32>
    %949 = vector.shape_cast %948 : vector<1xf32> to vector<1x1xf32>
    %950 = vector.extract_strided_slice %922 {offsets = [0, 14], sizes = [1, 2], strides = [1, 1]} : vector<1x16xf32> to vector<1x2xf32>
    %cst_269 = arith.constant dense<0xFF800000> : vector<1xf32>
    %951 = vector.multi_reduction <maximumf>, %950, %cst_269 [1] : vector<1x2xf32> to vector<1xf32>
    %952 = vector.shape_cast %951 : vector<1xf32> to vector<1x1xf32>
    %953 = vector.extract_strided_slice %921 {offsets = [0, 20], sizes = [1, 16], strides = [1, 1]} : vector<1x36xf32> to vector<1x16xf32>
    %954 = vector.extract_strided_slice %953 {offsets = [0, 0], sizes = [1, 2], strides = [1, 1]} : vector<1x16xf32> to vector<1x2xf32>
    %cst_270 = arith.constant dense<0xFF800000> : vector<1xf32>
    %955 = vector.multi_reduction <maximumf>, %954, %cst_270 [1] : vector<1x2xf32> to vector<1xf32>
    %956 = vector.shape_cast %955 : vector<1xf32> to vector<1x1xf32>
    %957 = vector.extract_strided_slice %953 {offsets = [0, 1], sizes = [1, 3], strides = [1, 1]} : vector<1x16xf32> to vector<1x3xf32>
    %cst_271 = arith.constant dense<0xFF800000> : vector<1xf32>
    %958 = vector.multi_reduction <maximumf>, %957, %cst_271 [1] : vector<1x3xf32> to vector<1xf32>
    %959 = vector.shape_cast %958 : vector<1xf32> to vector<1x1xf32>
    %960 = vector.extract_strided_slice %953 {offsets = [0, 3], sizes = [1, 2], strides = [1, 1]} : vector<1x16xf32> to vector<1x2xf32>
    %cst_272 = arith.constant dense<0xFF800000> : vector<1xf32>
    %961 = vector.multi_reduction <maximumf>, %960, %cst_272 [1] : vector<1x2xf32> to vector<1xf32>
    %962 = vector.shape_cast %961 : vector<1xf32> to vector<1x1xf32>
    %963 = vector.extract_strided_slice %953 {offsets = [0, 4], sizes = [1, 3], strides = [1, 1]} : vector<1x16xf32> to vector<1x3xf32>
    %cst_273 = arith.constant dense<0xFF800000> : vector<1xf32>
    %964 = vector.multi_reduction <maximumf>, %963, %cst_273 [1] : vector<1x3xf32> to vector<1xf32>
    %965 = vector.shape_cast %964 : vector<1xf32> to vector<1x1xf32>
    %966 = vector.extract_strided_slice %953 {offsets = [0, 6], sizes = [1, 2], strides = [1, 1]} : vector<1x16xf32> to vector<1x2xf32>
    %cst_274 = arith.constant dense<0xFF800000> : vector<1xf32>
    %967 = vector.multi_reduction <maximumf>, %966, %cst_274 [1] : vector<1x2xf32> to vector<1xf32>
    %968 = vector.shape_cast %967 : vector<1xf32> to vector<1x1xf32>
    %969 = vector.extract_strided_slice %953 {offsets = [0, 8], sizes = [1, 2], strides = [1, 1]} : vector<1x16xf32> to vector<1x2xf32>
    %cst_275 = arith.constant dense<0xFF800000> : vector<1xf32>
    %970 = vector.multi_reduction <maximumf>, %969, %cst_275 [1] : vector<1x2xf32> to vector<1xf32>
    %971 = vector.shape_cast %970 : vector<1xf32> to vector<1x1xf32>
    %972 = vector.extract_strided_slice %953 {offsets = [0, 9], sizes = [1, 3], strides = [1, 1]} : vector<1x16xf32> to vector<1x3xf32>
    %cst_276 = arith.constant dense<0xFF800000> : vector<1xf32>
    %973 = vector.multi_reduction <maximumf>, %972, %cst_276 [1] : vector<1x3xf32> to vector<1xf32>
    %974 = vector.shape_cast %973 : vector<1xf32> to vector<1x1xf32>
    %975 = vector.extract_strided_slice %953 {offsets = [0, 11], sizes = [1, 2], strides = [1, 1]} : vector<1x16xf32> to vector<1x2xf32>
    %cst_277 = arith.constant dense<0xFF800000> : vector<1xf32>
    %976 = vector.multi_reduction <maximumf>, %975, %cst_277 [1] : vector<1x2xf32> to vector<1xf32>
    %977 = vector.shape_cast %976 : vector<1xf32> to vector<1x1xf32>
    %978 = vector.extract_strided_slice %953 {offsets = [0, 12], sizes = [1, 3], strides = [1, 1]} : vector<1x16xf32> to vector<1x3xf32>
    %cst_278 = arith.constant dense<0xFF800000> : vector<1xf32>
    %979 = vector.multi_reduction <maximumf>, %978, %cst_278 [1] : vector<1x3xf32> to vector<1xf32>
    %980 = vector.shape_cast %979 : vector<1xf32> to vector<1x1xf32>
    %981 = vector.extract_strided_slice %953 {offsets = [0, 14], sizes = [1, 2], strides = [1, 1]} : vector<1x16xf32> to vector<1x2xf32>
    %cst_279 = arith.constant dense<0xFF800000> : vector<1xf32>
    %982 = vector.multi_reduction <maximumf>, %981, %cst_279 [1] : vector<1x2xf32> to vector<1xf32>
    %983 = vector.shape_cast %982 : vector<1xf32> to vector<1x1xf32>
    %984 = tpu.concatenate %925, %928, %931, %934, %937, %940, %943, %946, %949, %952, %956, %959, %962, %965, %968, %971 in 1 : vector<1x1xf32>, vector<1x1xf32>, vector<1x1xf32>, vector<1x1xf32>, vector<1x1xf32>, vector<1x1xf32>, vector<1x1xf32>, vector<1x1xf32>, vector<1x1xf32>, vector<1x1xf32>, vector<1x1xf32>, vector<1x1xf32>, vector<1x1xf32>, vector<1x1xf32>, vector<1x1xf32>, vector<1x1xf32> -> vector<1x16xf32>
    %985 = tpu.concatenate %974, %977, %980, %983 in 1 : vector<1x1xf32>, vector<1x1xf32>, vector<1x1xf32>, vector<1x1xf32> -> vector<1x4xf32>
    %986 = tpu.concatenate %984, %985 in 1 : vector<1x16xf32>, vector<1x4xf32> -> vector<1x20xf32>
    %c12 = arith.constant 12 : index
    %c0_280 = arith.constant 0 : index
    %987 = vector.load %arg4[%c12, %c0_280] : memref<20x40xf32, #tpu.memory_space<vmem>>, vector<7x40xf32>
    %988 = vector.extract_strided_slice %987 {offsets = [0, 2], sizes = [7, 36], strides = [1, 1]} : vector<7x40xf32> to vector<7x36xf32>
    %989 = vector.extract_strided_slice %987 {offsets = [0, 1], sizes = [7, 36], strides = [1, 1]} : vector<7x40xf32> to vector<7x36xf32>
    %990 = vector.extract_strided_slice %987 {offsets = [0, 3], sizes = [7, 36], strides = [1, 1]} : vector<7x40xf32> to vector<7x36xf32>
    %991 = arith.addf %989, %990 : vector<7x36xf32>
    %992 = vector.extract_strided_slice %987 {offsets = [0, 0], sizes = [7, 36], strides = [1, 1]} : vector<7x40xf32> to vector<7x36xf32>
    %993 = vector.extract_strided_slice %987 {offsets = [0, 4], sizes = [7, 36], strides = [1, 1]} : vector<7x40xf32> to vector<7x36xf32>
    %994 = arith.addf %992, %993 : vector<7x36xf32>
    %cst_281 = arith.constant 2.000000e+00 : f32
    %995 = vector.broadcast %cst_281 : f32 to vector<7x36xf32>
    %996 = arith.mulf %995, %988 : vector<7x36xf32>
    %997 = arith.subf %991, %996 : vector<7x36xf32>
    %cst_282 = arith.constant 2.000000e+00 : f32
    %998 = vector.broadcast %cst_282 : f32 to vector<7x36xf32>
    %999 = arith.mulf %998, %988 : vector<7x36xf32>
    %1000 = arith.subf %994, %999 : vector<7x36xf32>
    %1001 = vector.extract_strided_slice %997 {offsets = [2, 0], sizes = [3, 36], strides = [1, 1]} : vector<7x36xf32> to vector<3x36xf32>
    %1002 = vector.extract_strided_slice %997 {offsets = [1, 0], sizes = [3, 36], strides = [1, 1]} : vector<7x36xf32> to vector<3x36xf32>
    %cst_283 = arith.constant 2.000000e+00 : f32
    %1003 = vector.broadcast %cst_283 : f32 to vector<3x36xf32>
    %1004 = arith.mulf %1003, %1001 : vector<3x36xf32>
    %1005 = arith.subf %1002, %1004 : vector<3x36xf32>
    %1006 = vector.extract_strided_slice %997 {offsets = [3, 0], sizes = [3, 36], strides = [1, 1]} : vector<7x36xf32> to vector<3x36xf32>
    %1007 = arith.addf %1005, %1006 : vector<3x36xf32>
    %cst_284 = arith.constant -5.000000e-01 : f32
    %1008 = vector.broadcast %cst_284 : f32 to vector<3x36xf32>
    %1009 = arith.mulf %1008, %1007 : vector<3x36xf32>
    %1010 = vector.broadcast %7 : vector<1x36xf32> to vector<3x36xf32>
    %1011 = arith.addf %1009, %1010 : vector<3x36xf32>
    %cst_285 = arith.constant 2.000000e+00 : f32
    %1012 = vector.broadcast %cst_285 : f32 to vector<7x36xf32>
    %1013 = arith.mulf %1012, %997 : vector<7x36xf32>
    %1014 = arith.subf %1013, %1000 : vector<7x36xf32>
    %cst_286 = arith.constant 0.166666672 : f32
    %1015 = vector.broadcast %cst_286 : f32 to vector<7x36xf32>
    %1016 = arith.mulf %1014, %1015 : vector<7x36xf32>
    %cst_287 = arith.constant 3.000000e+00 : f32
    %1017 = vector.broadcast %cst_287 : f32 to vector<7x36xf32>
    %1018 = arith.mulf %1017, %997 : vector<7x36xf32>
    %1019 = arith.subf %1000, %1018 : vector<7x36xf32>
    %cst_288 = arith.constant 0.333333343 : f32
    %1020 = vector.broadcast %cst_288 : f32 to vector<7x36xf32>
    %1021 = arith.mulf %1019, %1020 : vector<7x36xf32>
    %cst_289 = arith.constant 4.000000e+00 : f32
    %1022 = vector.broadcast %cst_289 : f32 to vector<7x36xf32>
    %1023 = arith.mulf %1022, %997 : vector<7x36xf32>
    %1024 = arith.subf %1023, %1000 : vector<7x36xf32>
    %cst_290 = arith.constant 0.333333343 : f32
    %1025 = vector.broadcast %cst_290 : f32 to vector<7x36xf32>
    %1026 = arith.mulf %1024, %1025 : vector<7x36xf32>
    %1027 = vector.extract_strided_slice %1016 {offsets = [0, 0], sizes = [3, 36], strides = [1, 1]} : vector<7x36xf32> to vector<3x36xf32>
    %1028 = vector.extract_strided_slice %1021 {offsets = [1, 0], sizes = [3, 36], strides = [1, 1]} : vector<7x36xf32> to vector<3x36xf32>
    %1029 = arith.addf %1027, %1028 : vector<3x36xf32>
    %1030 = vector.extract_strided_slice %1026 {offsets = [2, 0], sizes = [3, 36], strides = [1, 1]} : vector<7x36xf32> to vector<3x36xf32>
    %1031 = arith.addf %1029, %1030 : vector<3x36xf32>
    %1032 = vector.extract_strided_slice %1021 {offsets = [3, 0], sizes = [3, 36], strides = [1, 1]} : vector<7x36xf32> to vector<3x36xf32>
    %1033 = arith.addf %1031, %1032 : vector<3x36xf32>
    %1034 = vector.extract_strided_slice %1016 {offsets = [4, 0], sizes = [3, 36], strides = [1, 1]} : vector<7x36xf32> to vector<3x36xf32>
    %1035 = arith.addf %1033, %1034 : vector<3x36xf32>
    %1036 = vector.broadcast %8 : vector<1x36xf32> to vector<3x36xf32>
    %1037 = arith.addf %1035, %1036 : vector<3x36xf32>
    %1038 = arith.maximumf %1011, %1037 : vector<3x36xf32>
    %1039 = arith.maximumf %1038, %1001 : vector<3x36xf32>
    %cst_291 = arith.constant dense<0xFF800000> : vector<36xf32>
    %1040 = vector.multi_reduction <maximumf>, %1039, %cst_291 [0] : vector<3x36xf32> to vector<36xf32>
    %1041 = vector.shape_cast %1040 : vector<36xf32> to vector<1x36xf32>
    %1042 = vector.extract_strided_slice %1041 {offsets = [0, 0], sizes = [1, 16], strides = [1, 1]} : vector<1x36xf32> to vector<1x16xf32>
    %1043 = vector.extract_strided_slice %1042 {offsets = [0, 0], sizes = [1, 2], strides = [1, 1]} : vector<1x16xf32> to vector<1x2xf32>
    %cst_292 = arith.constant dense<0xFF800000> : vector<1xf32>
    %1044 = vector.multi_reduction <maximumf>, %1043, %cst_292 [1] : vector<1x2xf32> to vector<1xf32>
    %1045 = vector.shape_cast %1044 : vector<1xf32> to vector<1x1xf32>
    %1046 = vector.extract_strided_slice %1042 {offsets = [0, 1], sizes = [1, 3], strides = [1, 1]} : vector<1x16xf32> to vector<1x3xf32>
    %cst_293 = arith.constant dense<0xFF800000> : vector<1xf32>
    %1047 = vector.multi_reduction <maximumf>, %1046, %cst_293 [1] : vector<1x3xf32> to vector<1xf32>
    %1048 = vector.shape_cast %1047 : vector<1xf32> to vector<1x1xf32>
    %1049 = vector.extract_strided_slice %1042 {offsets = [0, 3], sizes = [1, 2], strides = [1, 1]} : vector<1x16xf32> to vector<1x2xf32>
    %cst_294 = arith.constant dense<0xFF800000> : vector<1xf32>
    %1050 = vector.multi_reduction <maximumf>, %1049, %cst_294 [1] : vector<1x2xf32> to vector<1xf32>
    %1051 = vector.shape_cast %1050 : vector<1xf32> to vector<1x1xf32>
    %1052 = vector.extract_strided_slice %1042 {offsets = [0, 4], sizes = [1, 3], strides = [1, 1]} : vector<1x16xf32> to vector<1x3xf32>
    %cst_295 = arith.constant dense<0xFF800000> : vector<1xf32>
    %1053 = vector.multi_reduction <maximumf>, %1052, %cst_295 [1] : vector<1x3xf32> to vector<1xf32>
    %1054 = vector.shape_cast %1053 : vector<1xf32> to vector<1x1xf32>
    %1055 = vector.extract_strided_slice %1042 {offsets = [0, 6], sizes = [1, 2], strides = [1, 1]} : vector<1x16xf32> to vector<1x2xf32>
    %cst_296 = arith.constant dense<0xFF800000> : vector<1xf32>
    %1056 = vector.multi_reduction <maximumf>, %1055, %cst_296 [1] : vector<1x2xf32> to vector<1xf32>
    %1057 = vector.shape_cast %1056 : vector<1xf32> to vector<1x1xf32>
    %1058 = vector.extract_strided_slice %1042 {offsets = [0, 8], sizes = [1, 2], strides = [1, 1]} : vector<1x16xf32> to vector<1x2xf32>
    %cst_297 = arith.constant dense<0xFF800000> : vector<1xf32>
    %1059 = vector.multi_reduction <maximumf>, %1058, %cst_297 [1] : vector<1x2xf32> to vector<1xf32>
    %1060 = vector.shape_cast %1059 : vector<1xf32> to vector<1x1xf32>
    %1061 = vector.extract_strided_slice %1042 {offsets = [0, 9], sizes = [1, 3], strides = [1, 1]} : vector<1x16xf32> to vector<1x3xf32>
    %cst_298 = arith.constant dense<0xFF800000> : vector<1xf32>
    %1062 = vector.multi_reduction <maximumf>, %1061, %cst_298 [1] : vector<1x3xf32> to vector<1xf32>
    %1063 = vector.shape_cast %1062 : vector<1xf32> to vector<1x1xf32>
    %1064 = vector.extract_strided_slice %1042 {offsets = [0, 11], sizes = [1, 2], strides = [1, 1]} : vector<1x16xf32> to vector<1x2xf32>
    %cst_299 = arith.constant dense<0xFF800000> : vector<1xf32>
    %1065 = vector.multi_reduction <maximumf>, %1064, %cst_299 [1] : vector<1x2xf32> to vector<1xf32>
    %1066 = vector.shape_cast %1065 : vector<1xf32> to vector<1x1xf32>
    %1067 = vector.extract_strided_slice %1042 {offsets = [0, 12], sizes = [1, 3], strides = [1, 1]} : vector<1x16xf32> to vector<1x3xf32>
    %cst_300 = arith.constant dense<0xFF800000> : vector<1xf32>
    %1068 = vector.multi_reduction <maximumf>, %1067, %cst_300 [1] : vector<1x3xf32> to vector<1xf32>
    %1069 = vector.shape_cast %1068 : vector<1xf32> to vector<1x1xf32>
    %1070 = vector.extract_strided_slice %1042 {offsets = [0, 14], sizes = [1, 2], strides = [1, 1]} : vector<1x16xf32> to vector<1x2xf32>
    %cst_301 = arith.constant dense<0xFF800000> : vector<1xf32>
    %1071 = vector.multi_reduction <maximumf>, %1070, %cst_301 [1] : vector<1x2xf32> to vector<1xf32>
    %1072 = vector.shape_cast %1071 : vector<1xf32> to vector<1x1xf32>
    %1073 = vector.extract_strided_slice %1041 {offsets = [0, 20], sizes = [1, 16], strides = [1, 1]} : vector<1x36xf32> to vector<1x16xf32>
    %1074 = vector.extract_strided_slice %1073 {offsets = [0, 0], sizes = [1, 2], strides = [1, 1]} : vector<1x16xf32> to vector<1x2xf32>
    %cst_302 = arith.constant dense<0xFF800000> : vector<1xf32>
    %1075 = vector.multi_reduction <maximumf>, %1074, %cst_302 [1] : vector<1x2xf32> to vector<1xf32>
    %1076 = vector.shape_cast %1075 : vector<1xf32> to vector<1x1xf32>
    %1077 = vector.extract_strided_slice %1073 {offsets = [0, 1], sizes = [1, 3], strides = [1, 1]} : vector<1x16xf32> to vector<1x3xf32>
    %cst_303 = arith.constant dense<0xFF800000> : vector<1xf32>
    %1078 = vector.multi_reduction <maximumf>, %1077, %cst_303 [1] : vector<1x3xf32> to vector<1xf32>
    %1079 = vector.shape_cast %1078 : vector<1xf32> to vector<1x1xf32>
    %1080 = vector.extract_strided_slice %1073 {offsets = [0, 3], sizes = [1, 2], strides = [1, 1]} : vector<1x16xf32> to vector<1x2xf32>
    %cst_304 = arith.constant dense<0xFF800000> : vector<1xf32>
    %1081 = vector.multi_reduction <maximumf>, %1080, %cst_304 [1] : vector<1x2xf32> to vector<1xf32>
    %1082 = vector.shape_cast %1081 : vector<1xf32> to vector<1x1xf32>
    %1083 = vector.extract_strided_slice %1073 {offsets = [0, 4], sizes = [1, 3], strides = [1, 1]} : vector<1x16xf32> to vector<1x3xf32>
    %cst_305 = arith.constant dense<0xFF800000> : vector<1xf32>
    %1084 = vector.multi_reduction <maximumf>, %1083, %cst_305 [1] : vector<1x3xf32> to vector<1xf32>
    %1085 = vector.shape_cast %1084 : vector<1xf32> to vector<1x1xf32>
    %1086 = vector.extract_strided_slice %1073 {offsets = [0, 6], sizes = [1, 2], strides = [1, 1]} : vector<1x16xf32> to vector<1x2xf32>
    %cst_306 = arith.constant dense<0xFF800000> : vector<1xf32>
    %1087 = vector.multi_reduction <maximumf>, %1086, %cst_306 [1] : vector<1x2xf32> to vector<1xf32>
    %1088 = vector.shape_cast %1087 : vector<1xf32> to vector<1x1xf32>
    %1089 = vector.extract_strided_slice %1073 {offsets = [0, 8], sizes = [1, 2], strides = [1, 1]} : vector<1x16xf32> to vector<1x2xf32>
    %cst_307 = arith.constant dense<0xFF800000> : vector<1xf32>
    %1090 = vector.multi_reduction <maximumf>, %1089, %cst_307 [1] : vector<1x2xf32> to vector<1xf32>
    %1091 = vector.shape_cast %1090 : vector<1xf32> to vector<1x1xf32>
    %1092 = vector.extract_strided_slice %1073 {offsets = [0, 9], sizes = [1, 3], strides = [1, 1]} : vector<1x16xf32> to vector<1x3xf32>
    %cst_308 = arith.constant dense<0xFF800000> : vector<1xf32>
    %1093 = vector.multi_reduction <maximumf>, %1092, %cst_308 [1] : vector<1x3xf32> to vector<1xf32>
    %1094 = vector.shape_cast %1093 : vector<1xf32> to vector<1x1xf32>
    %1095 = vector.extract_strided_slice %1073 {offsets = [0, 11], sizes = [1, 2], strides = [1, 1]} : vector<1x16xf32> to vector<1x2xf32>
    %cst_309 = arith.constant dense<0xFF800000> : vector<1xf32>
    %1096 = vector.multi_reduction <maximumf>, %1095, %cst_309 [1] : vector<1x2xf32> to vector<1xf32>
    %1097 = vector.shape_cast %1096 : vector<1xf32> to vector<1x1xf32>
    %1098 = vector.extract_strided_slice %1073 {offsets = [0, 12], sizes = [1, 3], strides = [1, 1]} : vector<1x16xf32> to vector<1x3xf32>
    %cst_310 = arith.constant dense<0xFF800000> : vector<1xf32>
    %1099 = vector.multi_reduction <maximumf>, %1098, %cst_310 [1] : vector<1x3xf32> to vector<1xf32>
    %1100 = vector.shape_cast %1099 : vector<1xf32> to vector<1x1xf32>
    %1101 = vector.extract_strided_slice %1073 {offsets = [0, 14], sizes = [1, 2], strides = [1, 1]} : vector<1x16xf32> to vector<1x2xf32>
    %cst_311 = arith.constant dense<0xFF800000> : vector<1xf32>
    %1102 = vector.multi_reduction <maximumf>, %1101, %cst_311 [1] : vector<1x2xf32> to vector<1xf32>
    %1103 = vector.shape_cast %1102 : vector<1xf32> to vector<1x1xf32>
    %1104 = tpu.concatenate %1045, %1048, %1051, %1054, %1057, %1060, %1063, %1066, %1069, %1072, %1076, %1079, %1082, %1085, %1088, %1091 in 1 : vector<1x1xf32>, vector<1x1xf32>, vector<1x1xf32>, vector<1x1xf32>, vector<1x1xf32>, vector<1x1xf32>, vector<1x1xf32>, vector<1x1xf32>, vector<1x1xf32>, vector<1x1xf32>, vector<1x1xf32>, vector<1x1xf32>, vector<1x1xf32>, vector<1x1xf32>, vector<1x1xf32>, vector<1x1xf32> -> vector<1x16xf32>
    %1105 = tpu.concatenate %1094, %1097, %1100, %1103 in 1 : vector<1x1xf32>, vector<1x1xf32>, vector<1x1xf32>, vector<1x1xf32> -> vector<1x4xf32>
    %1106 = tpu.concatenate %1104, %1105 in 1 : vector<1x16xf32>, vector<1x4xf32> -> vector<1x20xf32>
    %c14 = arith.constant 14 : index
    %c0_312 = arith.constant 0 : index
    %1107 = vector.load %arg4[%c14, %c0_312] : memref<20x40xf32, #tpu.memory_space<vmem>>, vector<6x40xf32>
    %1108 = vector.extract_strided_slice %1107 {offsets = [0, 2], sizes = [6, 36], strides = [1, 1]} : vector<6x40xf32> to vector<6x36xf32>
    %1109 = vector.extract_strided_slice %1107 {offsets = [0, 1], sizes = [6, 36], strides = [1, 1]} : vector<6x40xf32> to vector<6x36xf32>
    %1110 = vector.extract_strided_slice %1107 {offsets = [0, 3], sizes = [6, 36], strides = [1, 1]} : vector<6x40xf32> to vector<6x36xf32>
    %1111 = arith.addf %1109, %1110 : vector<6x36xf32>
    %1112 = vector.extract_strided_slice %1107 {offsets = [0, 0], sizes = [6, 36], strides = [1, 1]} : vector<6x40xf32> to vector<6x36xf32>
    %1113 = vector.extract_strided_slice %1107 {offsets = [0, 4], sizes = [6, 36], strides = [1, 1]} : vector<6x40xf32> to vector<6x36xf32>
    %1114 = arith.addf %1112, %1113 : vector<6x36xf32>
    %cst_313 = arith.constant 2.000000e+00 : f32
    %1115 = vector.broadcast %cst_313 : f32 to vector<6x36xf32>
    %1116 = arith.mulf %1115, %1108 : vector<6x36xf32>
    %1117 = arith.subf %1111, %1116 : vector<6x36xf32>
    %cst_314 = arith.constant 2.000000e+00 : f32
    %1118 = vector.broadcast %cst_314 : f32 to vector<6x36xf32>
    %1119 = arith.mulf %1118, %1108 : vector<6x36xf32>
    %1120 = arith.subf %1114, %1119 : vector<6x36xf32>
    %1121 = vector.extract_strided_slice %1117 {offsets = [2, 0], sizes = [2, 36], strides = [1, 1]} : vector<6x36xf32> to vector<2x36xf32>
    %1122 = vector.extract_strided_slice %1117 {offsets = [1, 0], sizes = [2, 36], strides = [1, 1]} : vector<6x36xf32> to vector<2x36xf32>
    %cst_315 = arith.constant 2.000000e+00 : f32
    %1123 = vector.broadcast %cst_315 : f32 to vector<2x36xf32>
    %1124 = arith.mulf %1123, %1121 : vector<2x36xf32>
    %1125 = arith.subf %1122, %1124 : vector<2x36xf32>
    %1126 = vector.extract_strided_slice %1117 {offsets = [3, 0], sizes = [2, 36], strides = [1, 1]} : vector<6x36xf32> to vector<2x36xf32>
    %1127 = arith.addf %1125, %1126 : vector<2x36xf32>
    %cst_316 = arith.constant -5.000000e-01 : f32
    %1128 = vector.broadcast %cst_316 : f32 to vector<2x36xf32>
    %1129 = arith.mulf %1128, %1127 : vector<2x36xf32>
    %1130 = vector.broadcast %7 : vector<1x36xf32> to vector<2x36xf32>
    %1131 = arith.addf %1129, %1130 : vector<2x36xf32>
    %cst_317 = arith.constant 2.000000e+00 : f32
    %1132 = vector.broadcast %cst_317 : f32 to vector<6x36xf32>
    %1133 = arith.mulf %1132, %1117 : vector<6x36xf32>
    %1134 = arith.subf %1133, %1120 : vector<6x36xf32>
    %cst_318 = arith.constant 0.166666672 : f32
    %1135 = vector.broadcast %cst_318 : f32 to vector<6x36xf32>
    %1136 = arith.mulf %1134, %1135 : vector<6x36xf32>
    %cst_319 = arith.constant 3.000000e+00 : f32
    %1137 = vector.broadcast %cst_319 : f32 to vector<6x36xf32>
    %1138 = arith.mulf %1137, %1117 : vector<6x36xf32>
    %1139 = arith.subf %1120, %1138 : vector<6x36xf32>
    %cst_320 = arith.constant 0.333333343 : f32
    %1140 = vector.broadcast %cst_320 : f32 to vector<6x36xf32>
    %1141 = arith.mulf %1139, %1140 : vector<6x36xf32>
    %cst_321 = arith.constant 4.000000e+00 : f32
    %1142 = vector.broadcast %cst_321 : f32 to vector<6x36xf32>
    %1143 = arith.mulf %1142, %1117 : vector<6x36xf32>
    %1144 = arith.subf %1143, %1120 : vector<6x36xf32>
    %cst_322 = arith.constant 0.333333343 : f32
    %1145 = vector.broadcast %cst_322 : f32 to vector<6x36xf32>
    %1146 = arith.mulf %1144, %1145 : vector<6x36xf32>
    %1147 = vector.extract_strided_slice %1136 {offsets = [0, 0], sizes = [2, 36], strides = [1, 1]} : vector<6x36xf32> to vector<2x36xf32>
    %1148 = vector.extract_strided_slice %1141 {offsets = [1, 0], sizes = [2, 36], strides = [1, 1]} : vector<6x36xf32> to vector<2x36xf32>
    %1149 = arith.addf %1147, %1148 : vector<2x36xf32>
    %1150 = vector.extract_strided_slice %1146 {offsets = [2, 0], sizes = [2, 36], strides = [1, 1]} : vector<6x36xf32> to vector<2x36xf32>
    %1151 = arith.addf %1149, %1150 : vector<2x36xf32>
    %1152 = vector.extract_strided_slice %1141 {offsets = [3, 0], sizes = [2, 36], strides = [1, 1]} : vector<6x36xf32> to vector<2x36xf32>
    %1153 = arith.addf %1151, %1152 : vector<2x36xf32>
    %1154 = vector.extract_strided_slice %1136 {offsets = [4, 0], sizes = [2, 36], strides = [1, 1]} : vector<6x36xf32> to vector<2x36xf32>
    %1155 = arith.addf %1153, %1154 : vector<2x36xf32>
    %1156 = vector.broadcast %8 : vector<1x36xf32> to vector<2x36xf32>
    %1157 = arith.addf %1155, %1156 : vector<2x36xf32>
    %1158 = arith.maximumf %1131, %1157 : vector<2x36xf32>
    %1159 = arith.maximumf %1158, %1121 : vector<2x36xf32>
    %cst_323 = arith.constant dense<0xFF800000> : vector<36xf32>
    %1160 = vector.multi_reduction <maximumf>, %1159, %cst_323 [0] : vector<2x36xf32> to vector<36xf32>
    %1161 = vector.shape_cast %1160 : vector<36xf32> to vector<1x36xf32>
    %1162 = vector.extract_strided_slice %1161 {offsets = [0, 0], sizes = [1, 16], strides = [1, 1]} : vector<1x36xf32> to vector<1x16xf32>
    %1163 = vector.extract_strided_slice %1162 {offsets = [0, 0], sizes = [1, 2], strides = [1, 1]} : vector<1x16xf32> to vector<1x2xf32>
    %cst_324 = arith.constant dense<0xFF800000> : vector<1xf32>
    %1164 = vector.multi_reduction <maximumf>, %1163, %cst_324 [1] : vector<1x2xf32> to vector<1xf32>
    %1165 = vector.shape_cast %1164 : vector<1xf32> to vector<1x1xf32>
    %1166 = vector.extract_strided_slice %1162 {offsets = [0, 1], sizes = [1, 3], strides = [1, 1]} : vector<1x16xf32> to vector<1x3xf32>
    %cst_325 = arith.constant dense<0xFF800000> : vector<1xf32>
    %1167 = vector.multi_reduction <maximumf>, %1166, %cst_325 [1] : vector<1x3xf32> to vector<1xf32>
    %1168 = vector.shape_cast %1167 : vector<1xf32> to vector<1x1xf32>
    %1169 = vector.extract_strided_slice %1162 {offsets = [0, 3], sizes = [1, 2], strides = [1, 1]} : vector<1x16xf32> to vector<1x2xf32>
    %cst_326 = arith.constant dense<0xFF800000> : vector<1xf32>
    %1170 = vector.multi_reduction <maximumf>, %1169, %cst_326 [1] : vector<1x2xf32> to vector<1xf32>
    %1171 = vector.shape_cast %1170 : vector<1xf32> to vector<1x1xf32>
    %1172 = vector.extract_strided_slice %1162 {offsets = [0, 4], sizes = [1, 3], strides = [1, 1]} : vector<1x16xf32> to vector<1x3xf32>
    %cst_327 = arith.constant dense<0xFF800000> : vector<1xf32>
    %1173 = vector.multi_reduction <maximumf>, %1172, %cst_327 [1] : vector<1x3xf32> to vector<1xf32>
    %1174 = vector.shape_cast %1173 : vector<1xf32> to vector<1x1xf32>
    %1175 = vector.extract_strided_slice %1162 {offsets = [0, 6], sizes = [1, 2], strides = [1, 1]} : vector<1x16xf32> to vector<1x2xf32>
    %cst_328 = arith.constant dense<0xFF800000> : vector<1xf32>
    %1176 = vector.multi_reduction <maximumf>, %1175, %cst_328 [1] : vector<1x2xf32> to vector<1xf32>
    %1177 = vector.shape_cast %1176 : vector<1xf32> to vector<1x1xf32>
    %1178 = vector.extract_strided_slice %1162 {offsets = [0, 8], sizes = [1, 2], strides = [1, 1]} : vector<1x16xf32> to vector<1x2xf32>
    %cst_329 = arith.constant dense<0xFF800000> : vector<1xf32>
    %1179 = vector.multi_reduction <maximumf>, %1178, %cst_329 [1] : vector<1x2xf32> to vector<1xf32>
    %1180 = vector.shape_cast %1179 : vector<1xf32> to vector<1x1xf32>
    %1181 = vector.extract_strided_slice %1162 {offsets = [0, 9], sizes = [1, 3], strides = [1, 1]} : vector<1x16xf32> to vector<1x3xf32>
    %cst_330 = arith.constant dense<0xFF800000> : vector<1xf32>
    %1182 = vector.multi_reduction <maximumf>, %1181, %cst_330 [1] : vector<1x3xf32> to vector<1xf32>
    %1183 = vector.shape_cast %1182 : vector<1xf32> to vector<1x1xf32>
    %1184 = vector.extract_strided_slice %1162 {offsets = [0, 11], sizes = [1, 2], strides = [1, 1]} : vector<1x16xf32> to vector<1x2xf32>
    %cst_331 = arith.constant dense<0xFF800000> : vector<1xf32>
    %1185 = vector.multi_reduction <maximumf>, %1184, %cst_331 [1] : vector<1x2xf32> to vector<1xf32>
    %1186 = vector.shape_cast %1185 : vector<1xf32> to vector<1x1xf32>
    %1187 = vector.extract_strided_slice %1162 {offsets = [0, 12], sizes = [1, 3], strides = [1, 1]} : vector<1x16xf32> to vector<1x3xf32>
    %cst_332 = arith.constant dense<0xFF800000> : vector<1xf32>
    %1188 = vector.multi_reduction <maximumf>, %1187, %cst_332 [1] : vector<1x3xf32> to vector<1xf32>
    %1189 = vector.shape_cast %1188 : vector<1xf32> to vector<1x1xf32>
    %1190 = vector.extract_strided_slice %1162 {offsets = [0, 14], sizes = [1, 2], strides = [1, 1]} : vector<1x16xf32> to vector<1x2xf32>
    %cst_333 = arith.constant dense<0xFF800000> : vector<1xf32>
    %1191 = vector.multi_reduction <maximumf>, %1190, %cst_333 [1] : vector<1x2xf32> to vector<1xf32>
    %1192 = vector.shape_cast %1191 : vector<1xf32> to vector<1x1xf32>
    %1193 = vector.extract_strided_slice %1161 {offsets = [0, 20], sizes = [1, 16], strides = [1, 1]} : vector<1x36xf32> to vector<1x16xf32>
    %1194 = vector.extract_strided_slice %1193 {offsets = [0, 0], sizes = [1, 2], strides = [1, 1]} : vector<1x16xf32> to vector<1x2xf32>
    %cst_334 = arith.constant dense<0xFF800000> : vector<1xf32>
    %1195 = vector.multi_reduction <maximumf>, %1194, %cst_334 [1] : vector<1x2xf32> to vector<1xf32>
    %1196 = vector.shape_cast %1195 : vector<1xf32> to vector<1x1xf32>
    %1197 = vector.extract_strided_slice %1193 {offsets = [0, 1], sizes = [1, 3], strides = [1, 1]} : vector<1x16xf32> to vector<1x3xf32>
    %cst_335 = arith.constant dense<0xFF800000> : vector<1xf32>
    %1198 = vector.multi_reduction <maximumf>, %1197, %cst_335 [1] : vector<1x3xf32> to vector<1xf32>
    %1199 = vector.shape_cast %1198 : vector<1xf32> to vector<1x1xf32>
    %1200 = vector.extract_strided_slice %1193 {offsets = [0, 3], sizes = [1, 2], strides = [1, 1]} : vector<1x16xf32> to vector<1x2xf32>
    %cst_336 = arith.constant dense<0xFF800000> : vector<1xf32>
    %1201 = vector.multi_reduction <maximumf>, %1200, %cst_336 [1] : vector<1x2xf32> to vector<1xf32>
    %1202 = vector.shape_cast %1201 : vector<1xf32> to vector<1x1xf32>
    %1203 = vector.extract_strided_slice %1193 {offsets = [0, 4], sizes = [1, 3], strides = [1, 1]} : vector<1x16xf32> to vector<1x3xf32>
    %cst_337 = arith.constant dense<0xFF800000> : vector<1xf32>
    %1204 = vector.multi_reduction <maximumf>, %1203, %cst_337 [1] : vector<1x3xf32> to vector<1xf32>
    %1205 = vector.shape_cast %1204 : vector<1xf32> to vector<1x1xf32>
    %1206 = vector.extract_strided_slice %1193 {offsets = [0, 6], sizes = [1, 2], strides = [1, 1]} : vector<1x16xf32> to vector<1x2xf32>
    %cst_338 = arith.constant dense<0xFF800000> : vector<1xf32>
    %1207 = vector.multi_reduction <maximumf>, %1206, %cst_338 [1] : vector<1x2xf32> to vector<1xf32>
    %1208 = vector.shape_cast %1207 : vector<1xf32> to vector<1x1xf32>
    %1209 = vector.extract_strided_slice %1193 {offsets = [0, 8], sizes = [1, 2], strides = [1, 1]} : vector<1x16xf32> to vector<1x2xf32>
    %cst_339 = arith.constant dense<0xFF800000> : vector<1xf32>
    %1210 = vector.multi_reduction <maximumf>, %1209, %cst_339 [1] : vector<1x2xf32> to vector<1xf32>
    %1211 = vector.shape_cast %1210 : vector<1xf32> to vector<1x1xf32>
    %1212 = vector.extract_strided_slice %1193 {offsets = [0, 9], sizes = [1, 3], strides = [1, 1]} : vector<1x16xf32> to vector<1x3xf32>
    %cst_340 = arith.constant dense<0xFF800000> : vector<1xf32>
    %1213 = vector.multi_reduction <maximumf>, %1212, %cst_340 [1] : vector<1x3xf32> to vector<1xf32>
    %1214 = vector.shape_cast %1213 : vector<1xf32> to vector<1x1xf32>
    %1215 = vector.extract_strided_slice %1193 {offsets = [0, 11], sizes = [1, 2], strides = [1, 1]} : vector<1x16xf32> to vector<1x2xf32>
    %cst_341 = arith.constant dense<0xFF800000> : vector<1xf32>
    %1216 = vector.multi_reduction <maximumf>, %1215, %cst_341 [1] : vector<1x2xf32> to vector<1xf32>
    %1217 = vector.shape_cast %1216 : vector<1xf32> to vector<1x1xf32>
    %1218 = vector.extract_strided_slice %1193 {offsets = [0, 12], sizes = [1, 3], strides = [1, 1]} : vector<1x16xf32> to vector<1x3xf32>
    %cst_342 = arith.constant dense<0xFF800000> : vector<1xf32>
    %1219 = vector.multi_reduction <maximumf>, %1218, %cst_342 [1] : vector<1x3xf32> to vector<1xf32>
    %1220 = vector.shape_cast %1219 : vector<1xf32> to vector<1x1xf32>
    %1221 = vector.extract_strided_slice %1193 {offsets = [0, 14], sizes = [1, 2], strides = [1, 1]} : vector<1x16xf32> to vector<1x2xf32>
    %cst_343 = arith.constant dense<0xFF800000> : vector<1xf32>
    %1222 = vector.multi_reduction <maximumf>, %1221, %cst_343 [1] : vector<1x2xf32> to vector<1xf32>
    %1223 = vector.shape_cast %1222 : vector<1xf32> to vector<1x1xf32>
    %1224 = tpu.concatenate %1165, %1168, %1171, %1174, %1177, %1180, %1183, %1186, %1189, %1192, %1196, %1199, %1202, %1205, %1208, %1211 in 1 : vector<1x1xf32>, vector<1x1xf32>, vector<1x1xf32>, vector<1x1xf32>, vector<1x1xf32>, vector<1x1xf32>, vector<1x1xf32>, vector<1x1xf32>, vector<1x1xf32>, vector<1x1xf32>, vector<1x1xf32>, vector<1x1xf32>, vector<1x1xf32>, vector<1x1xf32>, vector<1x1xf32>, vector<1x1xf32> -> vector<1x16xf32>
    %1225 = tpu.concatenate %1214, %1217, %1220, %1223 in 1 : vector<1x1xf32>, vector<1x1xf32>, vector<1x1xf32>, vector<1x1xf32> -> vector<1x4xf32>
    %1226 = tpu.concatenate %1224, %1225 in 1 : vector<1x16xf32>, vector<1x4xf32> -> vector<1x20xf32>
    %1227 = tpu.concatenate %146, %266, %386, %506, %626, %746, %866, %986, %1106, %1226 in 0 : vector<1x20xf32>, vector<1x20xf32>, vector<1x20xf32>, vector<1x20xf32>, vector<1x20xf32>, vector<1x20xf32>, vector<1x20xf32>, vector<1x20xf32>, vector<1x20xf32>, vector<1x20xf32> -> vector<10x20xf32>
    %cst_344 = arith.constant 5.000000e-01 : f32
    %1228 = vector.broadcast %cst_344 : f32 to vector<10x20xf32>
    %1229 = arith.mulf %1228, %1227 : vector<10x20xf32>
    %1230 = vector.broadcast %0 : f32 to vector<10x20xf32>
    %1231 = arith.addf %1229, %1230 : vector<10x20xf32>
    %1232 = arith.negf %1231 : vector<10x20xf32>
    %1233 = math.exp %1232 : vector<10x20xf32>
    %cst_345 = arith.constant 1.000000e+00 : f32
    %1234 = vector.broadcast %cst_345 : f32 to vector<10x20xf32>
    %1235 = arith.addf %1234, %1233 : vector<10x20xf32>
    %1236 = arith.divf %1234, %1235 : vector<10x20xf32>
    %c0_346 = arith.constant 0 : index
    %c0_347 = arith.constant 0 : index
    %c0_348 = arith.constant 0 : index
    %1237 = vector.load %arg3[%c0_346, %c0_347, %c0_348] : memref<1x10x20xf32, #tpu.memory_space<vmem>>, vector<1x10x20xf32>
    %1238 = vector.shape_cast %1237 : vector<1x10x20xf32> to vector<10x20xf32>
    %1239 = vector.shape_cast %1236 : vector<10x20xf32> to vector<1x10x20xf32>
    tpu.vector_store %arg3[%c0_346, %c0_347, %c0_348], %1239 {strides = array<i32>} : memref<1x10x20xf32, #tpu.memory_space<vmem>>, vector<1x10x20xf32>,
    return
  }
  func.func @transform_0(%arg0: i32) -> i32 {
    %c0_i32 = arith.constant 0 : i32
    %c0_i32_0 = arith.constant 0 : i32
    return %c0_i32 : i32
  }
  func.func @transform_1(%arg0: i32) -> (i32, i32, i32, i32) {
    %c0_i32 = arith.constant 0 : i32
    %c0_i32_0 = arith.constant 0 : i32
    %c0_i32_1 = arith.constant 0 : i32
    %c0_i32_2 = arith.constant 0 : i32
    return %arg0, %c0_i32, %c0_i32_0, %c0_i32_1 : i32, i32, i32, i32
  }
  func.func @transform_2(%arg0: i32) -> (i32, i32, i32) {
    %c0_i32 = arith.constant 0 : i32
    %c0_i32_0 = arith.constant 0 : i32
    %c0_i32_1 = arith.constant 0 : i32
    return %arg0, %c0_i32, %c0_i32_0 : i32, i32, i32
  }
}

</mosaic_0001>

<bundles_post_ra>
// kernel: tpu_custom_call.1
= control target key start
LH: loop header
LB: loop body
LE: loop exit
PB: predicated region body
PF: predicated region fallthrough
CT: control target
= control target key end

     0   :  { %7 = vsyncpa [#allocation5], 0  ;;  %s3199_s0 = inlined_call_operand.hbm [shape: f32[3], index: 0, kind: input, shape index: {}]   ;;  %s3200_s1 = inlined_call_operand.hbm [shape: f32[1,3,16,32], index: 1, kind: input, shape index: {}]   ;;  %s3201_s2 = inlined_call_operand.vmem [shape: f32[1,10,20], index: 2, kind: output, shape index: {}]  }
   0x1   :  { %8 = vsyncpa [#allocation4], 0  ;;  %s1892_s9 = smov [#allocation3]   ;;  %s1893_s12 = smov [#allocation6]  }
   0x2   :  { %16 = dma.hbm_to_smem %s3199_s0, 16, %s1892_s9, [#allocation5]  }
   0x3   :  { %s22_s13 = sshll.u32 %s1893_s12, 4  ;;  %s23_s13 = int_to_ptr.vmem [resolvable:$true] %s22_s13 }
   0x4   :  { %s1876_s14 = scalar_lea.vmem %s23_s13, 768  ;;  %p1881_p1 = scmp.lt.s32.totalorder %s23_s13, %s23_s13 }
   0x5   :  { %p1877_p0 = scmp.ne.s32.totalorder %s23_s13, %s1876_s14  ;;  %p1882_p2 = scmp.lt.s32.totalorder %s1876_s14, %s1876_s14 }
   0x7   :  { %p1883_p3 = por %p1882_p2, %p1881_p1 }
   0x9   :  { %p1884_p4 = pnand %p1883_p3, %p1877_p0 }
   0xb   :  { %1887 = shalt.err (!%p1884_p4)
}
   0xc   :  { %s1894_s15 = smov 128   ;;  %s1895_s16 = smov 8  }
   0xd   :  { %28 = dma.hbm_to_vmem [thread:$0]  %s3200_s1, 768, %s23_s13, [#allocation4], %s1894_s15, %s1894_s15, %s1895_s16  }
   0xe   :  { %1888 = dma.done.wait [#allocation5], 16  }
   0xf   :  { %1889 = vsyncadd [#allocation5], 4294967280 }
  0x10   :  { %1890 = dma.done.wait [#allocation4], 768  }
  0x11   :  { %1891 = vsyncadd [#allocation4], 4294966528 }
  0x12   :  { %35 = sfence }
  0x13   :  { %v43_v0 = vld [vmem:[#allocation6] sm:$0xff]  ;;  %v46_v1 = vld [vmem:[#allocation6 + $0x10] sm:$0xff]  ;;  %v44_v4 = vld [vmem:[#allocation6 + $0x8] sm:$0xff]  ;;  %vm55_vm0 = vcmask 320512   ;;  %v1896_v9 = vmov 0.0   ;;  %s1897_s0 = smov 2  }
  0x14   :  { %v51_v2 = vld [vmem:[#allocation6 + $0x20] sm:$0xff]  ;;  %v48_v3 = vadd.f32 %v46_v1, %v43_v0  ;;  %v47_v5 = vld [vmem:[#allocation6 + $0x18] sm:$0xff]  ;;  %v52_v7 = vld [vmem:[#allocation6 + $0x28] sm:$0xff]  ;;  %56 = vst.msk [vmem:[#allocation2] sm:$0x3] %vm55_vm0, %v1896_v9  ;;  %s1898_s1 = smov 6  }
  0x15   :  { %v49_v6 = vadd.f32 %v47_v5, %v44_v4  ;;  %86 = vst.msk [vmem:[#allocation2 + $0x12] sm:$0x3] %vm55_vm0, %v1896_v9  ;;  %vm3202_vm1 = vcmask 15360   ;;  %vm74_vm2 = vcmask 146432   ;;  %vm77_vm3 = vcmask 179200   ;;  %s1899_s19 = smov 124  }
  0x16   :  { %v53_v8 = vadd.f32 %v51_v2, %v48_v3  ;;  %vm80_vm4 = vcmask 310272   ;;  %vm83_vm5 = vcmask 326656   ;;  %s1900_s20 = smov 126   ;;  %s1901_s21 = smov 127   ;;  %vm3209_vm6 = vcmask 296969  }
  0x17   :  { %v54_v10 = vadd.f32 %v52_v7, %v49_v6  ;;  %s1902_s22 = smov 1   ;;  %s1833_s23 = sld [smem:[#allocation3 + $0x1]]  ;;  %vm3218_vm7 = vcmask 39952   ;;  %vm3219_vm8 = vcmask 23560   ;;  %vm187_vm9 = vcmask 72760  }
  0x18   :  { %59 = vrot.lane.b32.xlu0 %v53_v8, %s1897_s0  ;;  %65 = vrot.lane.b32.xlu1 %v53_v8, %s1898_s1  ;;  %s2087_s24 = sld [smem:[#allocation3 + $0x2]]  ;;  %vm3217_vm10 = vcmask 48160   ;;  %vm195_vm11 = vcmask 105552   ;;  %vm3203_vm12 = vcmask 297993   ;;  %vm3216_vm13 = vcmask 64552   ;;  %s1903_s30 = smov 16  }
  0x19   :  { %s37_s25 = sld [smem:[#allocation3]]  ;;  %vm3208_vm14 = vcmask 130152   ;;  %vm191_vm15 = vcmask 89160   ;;  %vm3206_vm0 = vcmask 187560  }
  0x1c   :  { %61 = vrot.lane.b32.xlu0 %v54_v10, %s1897_s0  ;;  %67 = vrot.lane.b32.xlu1 %v54_v10, %s1898_s1 }
  0x1e   :  { %s41_s26 = ssub.f32 %s1833_s23, %s2087_s24 }
  0x1f   :  { %s38_s27 = ssub.f32 %s37_s25, %s2087_s24 }
  0x20   :  { %s42_s28 = smul.f32 2.0, %s41_s26 }
  0x21   :  { %s39_s29 = smul.f32 2.0, %s38_s27 }
  0x8a   :  { %v60_v11 = vpop.permute.xlu0 %59  ;;  %v66_v12 = vpop.permute.xlu1 %65 }
  0x8b   :  { %v72_v13 = vsel %vm3202_vm1, 0.0, %v60_v11 }
  0x8c   :  { %v75_v14 = vsel %vm74_vm2, %v72_v13, 0.0 }
  0x8d   :  { %v78_v15 = vsel %vm77_vm3, %v75_v14, %v66_v12 }
  0x8e   :  { %v81_v16 = vsel %vm80_vm4, %v78_v15, 0.0  ;;  %v62_v17 = vpop.permute.xlu0 %61  ;;  %v68_v18 = vpop.permute.xlu1 %67 }
  0x8f   :  { %84 = vst.msk [vmem:[#allocation2 + $0x2] sm:$0xff] %vm83_vm5, %v81_v16  ;;  %v73_v19 = vsel %vm3202_vm1, 0.0, %v62_v17  ;;  %vm3210_vm1 = vcmask 203952  }
  0x90   :  { %v76_v20 = vsel %vm74_vm2, %v73_v19, 0.0  ;;  %vm199_vm2 = vcmask 113760  }
  0x91   :  { %v79_v21 = vsel %vm77_vm3, %v76_v20, %v68_v18  ;;  %vm3204_vm3 = vcmask 212160  }
  0x92   :  { %v82_v22 = vsel %vm80_vm4, %v79_v21, 0.0  ;;  %vm207_vm4 = vcmask 138360  }
  0x93   :  { %85 = vst.msk [vmem:[#allocation2 + $0xa] sm:$0xff] %vm83_vm5, %v82_v22  ;;  %vm3205_vm5 = vcmask 236760  }
  0x96   :  { %v1927_v23 = vld [vmem:[#allocation2] sm:$0x3f] }
  0x97   :  { %93 = vrot.lane.b32.xlu1 %v1927_v23, %s1899_s19  ;;  %89 = vrot.lane.b32.xlu0 %v1927_v23, %s1900_s20  ;;  %v1933_v24 = vld [vmem:[#allocation2 + $0x1] sm:$0x7f]  ;;  %v97_v33 = vmul.f32 2.0, %v1927_v23 }
  0x98   :  { %v1939_v25 = vld [vmem:[#allocation2 + $0x3] sm:$0x3f]  ;;  %v299_v34 = vmul.f32 2.0, %v1933_v24 }
  0x99   :  { %v464_v35 = vmul.f32 2.0, %v1939_v25 }
  0x9a   :  { %v1941_v26 = vld [vmem:[#allocation2 + $0x4] sm:$0x7f]  ;;  %v1274_v30 = vld [vmem:[#allocation2 + $0xb] sm:$0x3f] }
  0x9b   :  { %295 = vrot.lane.b32.xlu1 %v1933_v24, %s1899_s19  ;;  %291 = vrot.lane.b32.xlu0 %v1933_v24, %s1900_s20  ;;  %v1947_v27 = vld [vmem:[#allocation2 + $0x8] sm:$0x3f]  ;;  %v1602_v31 = vld [vmem:[#allocation2 + $0xe] sm:$0x3f]  ;;  %v628_v36 = vmul.f32 2.0, %v1941_v26  ;;  %v1989_v40 = vmul.f32 2.0, %v1274_v30 }
  0x9c   :  { %v1110_v28 = vld [vmem:[#allocation2 + $0x9] sm:$0x7f]  ;;  %v956_v38 = vmul.f32 2.0, %v1947_v27 }
  0x9d   :  { %v1956_v29 = vld [vmem:[#allocation2 + $0x6] sm:$0x3f]  ;;  %v1438_v32 = vld [vmem:[#allocation2 + $0xc] sm:$0x7f]  ;;  %v1985_v39 = vmul.f32 2.0, %v1110_v28 }
  0x9e   :  { %v792_v37 = vmul.f32 2.0, %v1956_v29 }
  0x9f   :  { %456 = vrot.lane.b32.xlu1 %v1939_v25, %s1900_s20  ;;  %620 = vrot.lane.b32.xlu0 %v1941_v26, %s1900_s20 }
  0xa3   :  { %460 = vrot.lane.b32.xlu1 %v1939_v25, %s1899_s19  ;;  %948 = vrot.lane.b32.xlu0 %v1947_v27, %s1900_s20 }
  0xa7   :  { %624 = vrot.lane.b32.xlu1 %v1941_v26, %s1899_s19  ;;  %1112 = vrot.lane.b32.xlu0 %v1110_v28, %s1900_s20 }
  0xab   :  { %784 = vrot.lane.b32.xlu1 %v1956_v29, %s1900_s20  ;;  %1276 = vrot.lane.b32.xlu0 %v1274_v30, %s1900_s20 }
  0xaf   :  { %788 = vrot.lane.b32.xlu1 %v1956_v29, %s1899_s19  ;;  %1604 = vrot.lane.b32.xlu0 %v1602_v31, %s1900_s20 }
  0xb3   :  { %952 = vrot.lane.b32.xlu1 %v1947_v27, %s1899_s19  ;;  %1440 = vrot.lane.b32.xlu0 %v1438_v32, %s1900_s20 }
  0xb7   :  { %103 = vrot.lane.b32.xlu1 %v97_v33, %s1900_s20  ;;  %99 = vrot.lane.b32.xlu0 %v97_v33, %s1901_s21 }
  0xbb   :  { %301 = vrot.lane.b32.xlu1 %v299_v34, %s1901_s21  ;;  %305 = vrot.lane.b32.xlu0 %v299_v34, %s1900_s20 }
  0xbf   :  { %470 = vrot.lane.b32.xlu1 %v464_v35, %s1900_s20  ;;  %466 = vrot.lane.b32.xlu0 %v464_v35, %s1901_s21 }
  0xc3   :  { %634 = vrot.lane.b32.xlu0 %v628_v36, %s1900_s20  ;;  %630 = vrot.lane.b32.xlu1 %v628_v36, %s1901_s21 }
  0xc7   :  { %794 = vrot.lane.b32.xlu0 %v792_v37, %s1901_s21  ;;  %798 = vrot.lane.b32.xlu1 %v792_v37, %s1900_s20 }
  0xcb   :  { %962 = vrot.lane.b32.xlu0 %v956_v38, %s1900_s20  ;;  %958 = vrot.lane.b32.xlu1 %v956_v38, %s1901_s21 }
  0xcf   :  { %1122 = vrot.lane.b32.xlu0 %v1985_v39, %s1901_s21 }
  0xd3   :  { %1286 = vrot.lane.b32.xlu0 %v1989_v40, %s1901_s21 }
 0x109   :  { %v94_v41 = vpop.permute.xlu1 %93  ;;  %v90_v42 = vpop.permute.xlu0 %89 }
 0x10a   :  { %v96_v57 = vadd.f32 %v94_v41, %v1927_v23  ;;  %v92_v15 = vadd.f32 %v90_v42, %v1927_v23 }
 0x10d   :  { %v296_v43 = vpop.permute.xlu1 %295  ;;  %v292_v44 = vpop.permute.xlu0 %291 }
 0x10e   :  { %v298_v61 = vadd.f32 %v296_v43, %v1933_v24  ;;  %v294_v9 = vadd.f32 %v292_v44, %v1933_v24 }
 0x111   :  { %v457_v45 = vpop.permute.xlu1 %456  ;;  %v621_v46 = vpop.permute.xlu0 %620 }
 0x112   :  { %v623_v16 = vadd.f32 %v621_v46, %v1941_v26  ;;  %v459_v28 = vadd.f32 %v457_v45, %v1939_v25 }
 0x115   :  { %v461_v47 = vpop.permute.xlu1 %460  ;;  %v949_v48 = vpop.permute.xlu0 %948 }
 0x116   :  { %v463_v1 = vadd.f32 %v461_v47, %v1939_v25  ;;  %v951_v23 = vadd.f32 %v949_v48, %v1947_v27 }
 0x119   :  { %v625_v49 = vpop.permute.xlu1 %624  ;;  %v1993_v50 = vpop.permute.xlu0 %1112 }
 0x11a   :  { %v627_v5 = vadd.f32 %v625_v49, %v1941_v26 }
 0x11d   :  { %v785_v51 = vpop.permute.xlu1 %784  ;;  %v1995_v52 = vpop.permute.xlu0 %1276 }
 0x11e   :  { %v787_v33 = vadd.f32 %v785_v51, %v1956_v29 }
 0x121   :  { %v789_v53 = vpop.permute.xlu1 %788  ;;  %v1997_v54 = vpop.permute.xlu0 %1604 }
 0x122   :  { %v791_v10 = vadd.f32 %v789_v53, %v1956_v29 }
 0x125   :  { %v953_v55 = vpop.permute.xlu1 %952  ;;  %v1999_v56 = vpop.permute.xlu0 %1440 }
 0x126   :  { %v955_v17 = vadd.f32 %v953_v55, %v1947_v27 }
 0x129   :  { %v104_v58 = vpop.permute.xlu1 %103  ;;  %v100_v59 = vpop.permute.xlu0 %99 }
 0x12a   :  { %v2002_v60 = vsub.f32 %v96_v57, %v104_v58  ;;  %v2029_v19 = vsub.f32 %v92_v15, %v100_v59 }
 0x12c   :  { %120 = vrot.lane.b32.xlu0 %v2002_v60, %s1902_s22  ;;  %v125_v32 = vmul.f32 3.0, %v2029_v19 }
 0x12d   :  { %v302_v62 = vpop.permute.xlu1 %301  ;;  %v306_v63 = vpop.permute.xlu0 %305 }
 0x12e   :  { %v308_v0 = vsub.f32 %v298_v61, %v306_v63  ;;  %v2020_v13 = vsub.f32 %v294_v9, %v302_v62 }
 0x130   :  { %321 = vrot.lane.b32.xlu1 %v308_v0, %s1902_s22  ;;  %v326_v22 = vmul.f32 3.0, %v2020_v13 }
 0x131   :  { %v471_v2 = vpop.permute.xlu1 %470  ;;  %v467_v3 = vpop.permute.xlu0 %466 }
 0x132   :  { %v2009_v4 = vsub.f32 %v463_v1, %v471_v2  ;;  %v2038_v26 = vsub.f32 %v459_v28, %v467_v3 }
 0x134   :  { %486 = vrot.lane.b32.xlu0 %v2009_v4, %s1902_s22  ;;  %v491_v34 = vmul.f32 3.0, %v2038_v26 }
 0x135   :  { %v631_v6 = vpop.permute.xlu1 %630  ;;  %v635_v7 = vpop.permute.xlu0 %634 }
 0x136   :  { %v2014_v8 = vsub.f32 %v627_v5, %v635_v7  ;;  %v2031_v20 = vsub.f32 %v623_v16, %v631_v6  ;;  %v107_v16 = vmul.f32 2.0, %v2029_v19 }
 0x138   :  { %650 = vrot.lane.b32.xlu1 %v2014_v8, %s1902_s22  ;;  %v655_v31 = vmul.f32 3.0, %v2031_v20 }
 0x139   :  { %v799_v11 = vpop.permute.xlu1 %798  ;;  %v795_v12 = vpop.permute.xlu0 %794 }
 0x13a   :  { %v2022_v14 = vsub.f32 %v791_v10, %v799_v11  ;;  %v2047_v25 = vsub.f32 %v787_v33, %v795_v12 }
 0x13c   :  { %814 = vrot.lane.b32.xlu0 %v2022_v14, %s1902_s22  ;;  %v819_v35 = vmul.f32 3.0, %v2047_v25 }
 0x13d   :  { %v963_v18 = vpop.permute.xlu0 %962  ;;  %v959_v24 = vpop.permute.xlu1 %958 }
 0x13e   :  { %v965_v21 = vsub.f32 %v955_v17, %v963_v18  ;;  %v2040_v30 = vsub.f32 %v951_v23, %v959_v24  ;;  %v132_v17 = vmul.f32 4.0, %v2029_v19 }
 0x140   :  { %328 = vrot.lane.b32.xlu0 %v326_v22, %s1901_s21  ;;  %978 = vrot.lane.b32.xlu1 %v965_v21, %s1902_s22  ;;  %v983_v27 = vmul.f32 3.0, %v2040_v30 }
 0x141   :  { %v2055_v36 = vpop.permute.xlu0 %1122 }
 0x144   :  { %657 = vrot.lane.b32.xlu0 %v655_v31, %s1901_s21  ;;  %127 = vrot.lane.b32.xlu1 %v125_v32, %s1901_s21  ;;  %v309_v31 = vmul.f32 2.0, %v2020_v13  ;;  %v333_v32 = vmul.f32 4.0, %v2020_v13 }
 0x145   :  { %v2057_v29 = vpop.permute.xlu0 %1286 }
 0x148   :  { %985 = vrot.lane.b32.xlu0 %v983_v27, %s1901_s21  ;;  %493 = vrot.lane.b32.xlu1 %v491_v34, %s1901_s21  ;;  %v113_v34 = vrot.slane %v2029_v19, 2 }
 0x14c   :  { %821 = vrot.lane.b32.xlu1 %v819_v35, %s1901_s21 }
 0x19e   :  { %v121_v37 = vpop.permute.xlu0 %120 }
 0x19f   :  { %v133_v18 = vsub.f32 %v132_v17, %v121_v37  ;;  %v123_v22 = vsub.f32 %v107_v16, %v121_v37 }
 0x1a1   :  { %v134_v24 = vmul.f32 0.33333334, %v133_v18  ;;  %v124_v23 = vmul.f32 0.16666667, %v123_v22 }
 0x1a2   :  { %v2059_v38 = vpop.permute.xlu1 %321 }
 0x1a3   :  { %v142_v35 = vrot.slane %v134_v24, 2  ;;  %v334_v37 = vsub.f32 %v333_v32, %v2059_v38 }
 0x1a6   :  { %v2061_v41 = vpop.permute.xlu0 %486 }
 0x1aa   :  { %v2063_v42 = vpop.permute.xlu1 %650 }
 0x1ae   :  { %v2065_v43 = vpop.permute.xlu0 %814 }
 0x1b2   :  { %v2067_v44 = vpop.permute.xlu1 %978  ;;  %v329_v45 = vpop.permute.xlu0 %328 }
 0x1b3   :  { %v331_v47 = vsub.f32 %v308_v0, %v329_v45 }
 0x1b5   :  { %v332_v53 = vmul.f32 0.33333334, %v331_v47 }
 0x1b6   :  { %v128_v46 = vpop.permute.xlu1 %127  ;;  %v658_v59 = vpop.permute.xlu0 %657 }
 0x1b7   :  { %v130_v48 = vsub.f32 %v2002_v60, %v128_v46  ;;  %v660_v61 = vsub.f32 %v2014_v8, %v658_v59  ;;  %v346_v63 = vrot.slane %v332_v53, 3  ;;  %v337_v1 = vrot.slane %v332_v53, 1 }
 0x1b8   :  { %v324_v46 = vsub.f32 %v309_v31, %v2059_v38 }
 0x1b9   :  { %v131_v49 = vmul.f32 0.33333334, %v130_v48  ;;  %v661_v60 = vmul.f32 0.33333334, %v660_v61 }
 0x1ba   :  { %v494_v51 = vpop.permute.xlu1 %493  ;;  %v986_v5 = vpop.permute.xlu0 %985 }
 0x1bb   :  { %v496_v55 = vsub.f32 %v2009_v4, %v494_v51  ;;  %v145_v57 = vrot.slane %v131_v49, 3  ;;  %v136_v58 = vrot.slane %v131_v49, 1  ;;  %v988_v6 = vsub.f32 %v965_v21, %v986_v5 }
 0x1bc   :  { %v675_v8 = vrot.slane %v661_v60, 3  ;;  %v666_v9 = vrot.slane %v661_v60, 1  ;;  %v109_v21 = vrot.slane %v107_v16, 1  ;;  %v151_v49 = vrot.slane %v124_v23, 4 }
 0x1bd   :  { %146 = vrot.lane.b32.xlu1 %v145_v57, %s1902_s22  ;;  %137 = vrot.lane.b32.xlu0 %v136_v58, %s1902_s22  ;;  %v497_v62 = vmul.f32 0.33333334, %v496_v55  ;;  %v989_v10 = vmul.f32 0.33333334, %v988_v6  ;;  %v335_v55 = vmul.f32 0.33333334, %v334_v37  ;;  %v2097_v57 = vstv %s42_s28 }
 0x1be   :  { %v822_v0 = vpop.permute.xlu1 %821  ;;  %v111_v28 = vsub.f32 %v2029_v19, %v109_v21  ;;  %v325_v58 = vmul.f32 0.16666667, %v324_v46  ;;  %v311_v5 = vrot.slane %v309_v31, 1  ;;  %v474_v37 = vmul.f32 2.0, %v2038_v26 }
 0x1bf   :  { %v824_v2 = vsub.f32 %v2022_v14, %v822_v0  ;;  %v502_v3 = vrot.slane %v497_v62, 1  ;;  %v511_v4 = vrot.slane %v497_v62, 3  ;;  %v1003_v14 = vrot.slane %v989_v10, 3 }
 0x1c0   :  { %v994_v15 = vrot.slane %v989_v10, 1  ;;  %v115_v47 = vadd.f32 %v113_v34, %v111_v28  ;;  %v2099_v62 = vstv %s39_s29  ;;  %v343_v0 = vrot.slane %v335_v55, 2 }
 0x1c1   :  { %347 = vrot.lane.b32.xlu0 %v346_v63, %s1902_s22  ;;  %338 = vrot.lane.b32.xlu1 %v337_v1, %s1902_s22  ;;  %v825_v7 = vmul.f32 0.33333334, %v824_v2  ;;  %v313_v10 = vsub.f32 %v2020_v13, %v311_v5  ;;  %v360_v34 = vrot.slane %v2020_v13, 1 }
 0x1c2   :  { %v116_v59 = vmul.f32 -0.5, %v115_v47 }
 0x1c3   :  { %v830_v11 = vrot.slane %v825_v7, 1  ;;  %v839_v12 = vrot.slane %v825_v7, 3 }
 0x1c4   :  { %v118_v38 = vadd.f32 %v2099_v62, %v116_v59 }
 0x1c5   :  { %503 = vrot.lane.b32.xlu0 %v502_v3, %s1902_s22  ;;  %512 = vrot.lane.b32.xlu1 %v511_v4, %s1902_s22  ;;  %v160_v3 = vrot.slane %v2029_v19, 1 }
 0x1c9   :  { %676 = vrot.lane.b32.xlu0 %v675_v8, %s1902_s22  ;;  %667 = vrot.lane.b32.xlu1 %v666_v9, %s1902_s22 }
 0x1cd   :  { %831 = vrot.lane.b32.xlu0 %v830_v11, %s1902_s22  ;;  %840 = vrot.lane.b32.xlu1 %v839_v12, %s1902_s22  ;;  %v352_v12 = vrot.slane %v325_v58, 4 }
 0x1d1   :  { %1004 = vrot.lane.b32.xlu0 %v1003_v14, %s1902_s22  ;;  %995 = vrot.lane.b32.xlu1 %v994_v15, %s1902_s22  ;;  %v315_v14 = vrot.slane %v2020_v13, 2 }
 0x1d3   :  { %v317_v17 = vadd.f32 %v315_v14, %v313_v10 }
 0x1d5   :  { %v318_v22 = vmul.f32 -0.5, %v317_v17 }
 0x1d7   :  { %v319_v31 = vadd.f32 %v318_v22, %v2099_v62 }
 0x22f   :  { %v147_v33 = vpop.permute.xlu1 %146  ;;  %v138_v27 = vpop.permute.xlu0 %137 }
 0x230   :  { %v140_v45 = vadd.f32 %v138_v27, %v124_v23 }
 0x232   :  { %v144_v48 = vadd.f32 %v142_v35, %v140_v45 }
 0x233   :  { %v339_v53 = vpop.permute.xlu1 %338  ;;  %v348_v7 = vpop.permute.xlu0 %347 }
 0x234   :  { %v149_v51 = vadd.f32 %v147_v33, %v144_v48  ;;  %v341_v63 = vadd.f32 %v339_v53, %v325_v58  ;;  %v498_v48 = vmul.f32 4.0, %v2038_v26 }
 0x236   :  { %v153_v61 = vadd.f32 %v151_v49, %v149_v51  ;;  %v345_v2 = vadd.f32 %v343_v0, %v341_v63  ;;  %v489_v51 = vsub.f32 %v474_v37, %v2061_v41  ;;  %v499_v53 = vsub.f32 %v498_v48, %v2061_v41 }
 0x237   :  { %v525_v48 = vrot.slane %v2038_v26, 1 }
 0x238   :  { %v155_v1 = vadd.f32 %v2097_v57, %v153_v61  ;;  %v350_v8 = vadd.f32 %v348_v7, %v345_v2  ;;  %v504_v61 = vpop.permute.xlu0 %503  ;;  %v500_v63 = vmul.f32 0.33333334, %v499_v53  ;;  %v476_v7 = vrot.slane %v474_v37, 1 }
 0x23a   :  { %v157_v60 = vrot.slane %v155_v1, 7  ;;  %v354_v16 = vadd.f32 %v352_v12, %v350_v8  ;;  %v490_v1 = vmul.f32 0.16666667, %v489_v51  ;;  %v508_v2 = vrot.slane %v500_v63, 2 }
 0x23b   :  { %v478_v14 = vsub.f32 %v2038_v26, %v476_v7  ;;  %v662_v51 = vmul.f32 4.0, %v2031_v20 }
 0x23c   :  { %v159_v4 = vmax.f32 %v118_v38, %v157_v60  ;;  %v355_v19 = vadd.f32 %v354_v16, %v2097_v57  ;;  %v506_v60 = vadd.f32 %v504_v61, %v490_v1 }
 0x23e   :  { %v162_v6 = vmax.f32 %v159_v4, %v160_v3  ;;  %v357_v23 = vrot.slane %v355_v19, 7  ;;  %v510_v5 = vadd.f32 %v508_v2, %v506_v60 }
 0x240   :  { %v164_v9 = vsel %vm3209_vm6, %v162_v6, -inf  ;;  %v359_v27 = vmax.f32 %v319_v31, %v357_v23 }
 0x241   :  { %v165_v11 = vrot.slane %v164_v9, 4 }
 0x242   :  { %v362_v45 = vmax.f32 %v359_v27, %v360_v34 }
 0x243   :  { %v166_v15 = vmax.f32 %v164_v9, %v165_v11  ;;  %v513_v9 = vpop.permute.xlu1 %512 }
 0x244   :  { %v364_v13 = vsel %vm3203_vm12, %v362_v45, -inf  ;;  %v515_v11 = vadd.f32 %v513_v9, %v510_v5  ;;  %vm3207_vm12 = vcmask 269552   ;;  %v677_v9 = vpop.permute.xlu0 %676 }
 0x245   :  { %v167_v18 = vrot.slane %v166_v15, 2  ;;  %v365_v55 = vrot.slane %v364_v13, 4 }
 0x247   :  { %v168_v21 = vmax.f32 %v166_v15, %v167_v18  ;;  %v366_v0 = vmax.f32 %v364_v13, %v365_v55  ;;  %v517_v15 = vrot.slane %v490_v1, 4  ;;  %v480_v18 = vrot.slane %v2038_v26, 2  ;;  %v668_v63 = vpop.permute.xlu1 %667 }
 0x249   :  { %v169_v24 = vrot.slane %v168_v21, 1  ;;  %v367_v3 = vrot.slane %v366_v0, 2  ;;  %v482_v22 = vadd.f32 %v480_v18, %v478_v14  ;;  %v644_v18 = vrot.slane %v2031_v20, 2 }
 0x24b   :  { %v2108_v28 = vmax.f32 %v168_v21, %v169_v24  ;;  %v368_v8 = vmax.f32 %v366_v0, %v367_v3  ;;  %v519_v21 = vadd.f32 %v517_v15, %v515_v11 }
 0x24d   :  { %v176_v32 = vsel %vm3218_vm7, %v2108_v28, -inf  ;;  %v172_v33 = vsel %vm3219_vm8, %v2108_v28, -inf  ;;  %v188_v35 = vsel %vm187_vm9, %v2108_v28, -inf  ;;  %v180_v46 = vsel %vm3217_vm10, %v2108_v28, -inf }
 0x24e   :  { %177 = vmax.xlane.f32.xlu1 %v176_v32  ;;  %173 = vmax.xlane.f32.xlu0 %v172_v33  ;;  %v196_v47 = vsel %vm195_vm11, %v2108_v28, -inf  ;;  %v184_v49 = vsel %vm3216_vm13, %v2108_v28, -inf  ;;  %v204_v58 = vsel %vm3208_vm14, %v2108_v28, -inf  ;;  %v192_v59 = vsel %vm191_vm15, %v2108_v28, -inf }
 0x24f   :  { %v212_v38 = vsel %vm3206_vm0, %v2108_v28, -inf  ;;  %v200_v41 = vsel %vm199_vm2, %v2108_v28, -inf  ;;  %v220_v4 = vsel %vm3204_vm3, %v2108_v28, -inf  ;;  %v208_v6 = vsel %vm207_vm4, %v2108_v28, -inf }
 0x250   :  { %v228_v10 = vsel %vm3205_vm5, %v2108_v28, -inf  ;;  %v216_v12 = vsel %vm3210_vm1, %v2108_v28, -inf  ;;  %vm3221_vm3 = vcmask 228552   ;;  %v369_v16 = vrot.slane %v368_v8, 1 }
 0x251   :  { %v236_v17 = vsel %vm3207_vm12, %v2108_v28, -inf  ;;  %v224_v19 = vsel %vm3221_vm3, %v2108_v28, -inf  ;;  %vm243_vm5 = vcmask 294152   ;;  %vm3212_vm0 = vcmask 253160  }
 0x252   :  { %189 = vmax.xlane.f32.xlu1 %v188_v35  ;;  %181 = vmax.xlane.f32.xlu0 %v180_v46  ;;  %v2151_v24 = vmax.f32 %v368_v8, %v369_v16  ;;  %v244_v23 = vsel %vm243_vm5, %v2108_v28, -inf  ;;  %v520_v31 = vadd.f32 %v519_v21, %v2097_v57  ;;  %v232_v32 = vsel %vm3212_vm0, %v2108_v28, -inf }
 0x253   :  { %vm3213_vm12 = vcmask 277760   ;;  %v483_v33 = vmul.f32 -0.5, %v482_v22  ;;  %vm247_vm14 = vcmask 302360  }
 0x254   :  { %v371_v27 = vsel %vm3219_vm8, %v2151_v24, -inf  ;;  %v522_v34 = vrot.slane %v520_v31, 7  ;;  %v240_v35 = vsel %vm3213_vm12, %v2108_v28, -inf  ;;  %v380_v46 = vsel %vm3216_vm13, %v2151_v24, -inf }
 0x255   :  { %v484_v45 = vadd.f32 %v483_v33, %v2099_v62  ;;  %v386_v13 = vsel %vm191_vm15, %v2151_v24, -inf  ;;  %v374_v55 = vsel %vm3218_vm7, %v2151_v24, -inf  ;;  %v392_v26 = vsel %vm199_vm2, %v2151_v24, -inf }
 0x256   :  { %197 = vmax.xlane.f32.xlu1 %v196_v47  ;;  %185 = vmax.xlane.f32.xlu0 %v184_v49  ;;  %v248_v47 = vsel %vm247_vm14, %v2108_v28, -inf  ;;  %v638_v49 = vmul.f32 2.0, %v2031_v20  ;;  %v663_v28 = vsub.f32 %v662_v51, %v2063_v42  ;;  %v377_v61 = vsel %vm3217_vm10, %v2151_v24, -inf }
 0x257   :  { %v524_v37 = vmax.f32 %v484_v45, %v522_v34  ;;  %v398_v60 = vsel %vm207_vm4, %v2151_v24, -inf  ;;  %v422_v31 = vsel %vm3213_vm12, %v2151_v24, -inf }
 0x258   :  { %v664_v1 = vmul.f32 0.33333334, %v663_v28  ;;  %v640_v7 = vrot.slane %v638_v49, 1  ;;  %v802_v28 = vmul.f32 2.0, %v2047_v25 }
 0x259   :  { %v527_v53 = vmax.f32 %v524_v37, %v525_v48 }
 0x25a   :  { %205 = vmax.xlane.f32.xlu1 %v204_v58  ;;  %193 = vmax.xlane.f32.xlu0 %v192_v59  ;;  %v653_v58 = vsub.f32 %v638_v49, %v2063_v42  ;;  %v383_v42 = vsel %vm187_vm9, %v2151_v24, -inf  ;;  %v672_v2 = vrot.slane %v664_v1, 2  ;;  %v642_v14 = vsub.f32 %v2031_v20, %v640_v7 }
 0x25b   :  { %v528_v59 = vsel %vm3209_vm6, %v527_v53, -inf  ;;  %vm3228_vm6 = vcmask 130152   ;;  %v689_v49 = vrot.slane %v2031_v20, 1 }
 0x25c   :  { %v654_v0 = vmul.f32 0.16666667, %v653_v58  ;;  %v646_v22 = vadd.f32 %v644_v18, %v642_v14 }
 0x25e   :  { %213 = vmax.xlane.f32.xlu1 %v212_v38  ;;  %201 = vmax.xlane.f32.xlu0 %v200_v41  ;;  %v529_v38 = vrot.slane %v528_v59, 4  ;;  %v670_v41 = vadd.f32 %v668_v63, %v654_v0  ;;  %v681_v15 = vrot.slane %v654_v0, 4 }
 0x260   :  { %v530_v3 = vmax.f32 %v528_v59, %v529_v38  ;;  %v674_v5 = vadd.f32 %v672_v2, %v670_v41  ;;  %v832_v38 = vpop.permute.xlu0 %831 }
 0x262   :  { %221 = vmax.xlane.f32.xlu1 %v220_v4  ;;  %209 = vmax.xlane.f32.xlu0 %v208_v6  ;;  %v404_v4 = vsel %vm3210_vm1, %v2151_v24, -inf  ;;  %v389_v6 = vsel %vm195_vm11, %v2151_v24, -inf  ;;  %v531_v8 = vrot.slane %v530_v3, 2  ;;  %v679_v11 = vadd.f32 %v677_v9, %v674_v5 }
 0x263   :  { %vm3229_vm1 = vcmask 187560   ;;  %v804_v9 = vrot.slane %v802_v28, 1 }
 0x264   :  { %v532_v16 = vmax.f32 %v530_v3, %v531_v8  ;;  %v683_v21 = vadd.f32 %v681_v15, %v679_v11  ;;  %v841_v11 = vpop.permute.xlu1 %840 }
 0x266   :  { %229 = vmax.xlane.f32.xlu1 %v228_v10  ;;  %217 = vmax.xlane.f32.xlu0 %v216_v12  ;;  %v410_v10 = vsel %vm3221_vm3, %v2151_v24, -inf  ;;  %v395_v12 = vsel %vm3228_vm6, %v2151_v24, -inf  ;;  %vm3230_vm6 = vcmask 212160  }
 0x267   :  { %v407_v33 = vsel %vm3230_vm6, %v2151_v24, -inf  ;;  %vm3232_vm6 = vcmask 269552  }
 0x26a   :  { %237 = vmax.xlane.f32.xlu1 %v236_v17  ;;  %225 = vmax.xlane.f32.xlu0 %v224_v19  ;;  %v416_v17 = vsel %vm3212_vm0, %v2151_v24, -inf  ;;  %v401_v19 = vsel %vm3229_vm1, %v2151_v24, -inf  ;;  %vm3231_vm1 = vcmask 236760  }
 0x26e   :  { %245 = vmax.xlane.f32.xlu1 %v244_v23  ;;  %233 = vmax.xlane.f32.xlu0 %v232_v32  ;;  %v533_v23 = vrot.slane %v532_v16, 1  ;;  %v684_v32 = vadd.f32 %v683_v21, %v2097_v57 }
 0x270   :  { %v2204_v34 = vmax.f32 %v532_v16, %v533_v23  ;;  %v686_v45 = vrot.slane %v684_v32, 7  ;;  %v806_v16 = vsub.f32 %v2047_v25, %v804_v9 }
 0x272   :  { %372 = vmax.xlane.f32.xlu1 %v371_v27  ;;  %241 = vmax.xlane.f32.xlu0 %v240_v35  ;;  %v647_v27 = vmul.f32 -0.5, %v646_v22  ;;  %v428_v35 = vsel %vm247_vm14, %v2151_v24, -inf  ;;  %v547_v51 = vsel %vm187_vm9, %v2204_v34, -inf  ;;  %v553_v58 = vsel %vm195_vm11, %v2204_v34, -inf }
 0x273   :  { %v535_v20 = vsel %vm3219_vm8, %v2204_v34, -inf  ;;  %v541_v0 = vsel %vm3217_vm10, %v2204_v34, -inf  ;;  %v550_v8 = vsel %vm191_vm15, %v2204_v34, -inf  ;;  %v556_v15 = vsel %vm199_vm2, %v2204_v34, -inf }
 0x274   :  { %v648_v37 = vadd.f32 %v647_v27, %v2099_v62  ;;  %v562_v23 = vsel %vm207_vm4, %v2204_v34, -inf }
 0x276   :  { %381 = vmax.xlane.f32.xlu1 %v380_v46  ;;  %249 = vmax.xlane.f32.xlu0 %v248_v47  ;;  %v413_v46 = vsel %vm3231_vm1, %v2151_v24, -inf  ;;  %v538_v47 = vsel %vm3218_vm7, %v2204_v34, -inf  ;;  %v688_v48 = vmax.f32 %v648_v37, %v686_v45  ;;  %vm3233_vm1 = vcmask 297993  }
 0x278   :  { %v691_v53 = vmax.f32 %v688_v48, %v689_v49 }
 0x27a   :  { %387 = vmax.xlane.f32.xlu1 %v386_v13  ;;  %375 = vmax.xlane.f32.xlu0 %v374_v55  ;;  %v419_v13 = vsel %vm3232_vm6, %v2151_v24, -inf  ;;  %v425_v55 = vsel %vm243_vm5, %v2151_v24, -inf  ;;  %v692_v59 = vsel %vm3233_vm1, %v691_v53, -inf  ;;  %vm3234_vm6 = vcmask 130152  }
 0x27b   :  { %v693_v24 = vrot.slane %v692_v59, 4  ;;  %v559_v1 = vsel %vm3234_vm6, %v2204_v34, -inf  ;;  %vm3235_vm1 = vcmask 187560   ;;  %vm3236_vm6 = vcmask 212160  }
 0x27c   :  { %v565_v2 = vsel %vm3235_vm1, %v2204_v34, -inf  ;;  %vm3237_vm1 = vcmask 236760   ;;  %v853_v53 = vrot.slane %v2047_v25, 1 }
 0x27e   :  { %393 = vmax.xlane.f32.xlu1 %v392_v26  ;;  %378 = vmax.xlane.f32.xlu0 %v377_v61  ;;  %v826_v26 = vmul.f32 4.0, %v2047_v25  ;;  %v817_v61 = vsub.f32 %v802_v28, %v2065_v43  ;;  %v990_v28 = vmul.f32 4.0, %v2040_v30 }
 0x280   :  { %v827_v63 = vsub.f32 %v826_v26, %v2065_v43  ;;  %v818_v41 = vmul.f32 0.16666667, %v817_v61  ;;  %v544_v43 = vsel %vm3216_vm13, %v2204_v34, -inf  ;;  %v991_v61 = vsub.f32 %v990_v28, %v2067_v44 }
 0x282   :  { %399 = vmax.xlane.f32.xlu1 %v398_v60  ;;  %384 = vmax.xlane.f32.xlu0 %v383_v42  ;;  %v828_v60 = vmul.f32 0.33333334, %v827_v63  ;;  %v694_v42 = vmax.f32 %v692_v59, %v693_v24  ;;  %v834_v3 = vadd.f32 %v832_v38, %v818_v41  ;;  %v586_v59 = vsel %vm3213_vm12, %v2204_v34, -inf }
 0x283   :  { %v592_v24 = vsel %vm247_vm14, %v2204_v34, -inf }
 0x284   :  { %v695_v5 = vrot.slane %v694_v42, 2 }
 0x286   :  { %405 = vmax.xlane.f32.xlu1 %v404_v4  ;;  %390 = vmax.xlane.f32.xlu0 %v389_v6  ;;  %v836_v4 = vrot.slane %v828_v60, 2  ;;  %v571_v6 = vsel %vm3236_vm6, %v2204_v34, -inf  ;;  %vm3238_vm6 = vcmask 269552  }
 0x287   :  { %v583_v21 = vsel %vm3238_vm6, %v2204_v34, -inf  ;;  %vm3240_vm6 = vcmask 296969  }
 0x288   :  { %v838_v7 = vadd.f32 %v836_v4, %v834_v3 }
 0x28a   :  { %411 = vmax.xlane.f32.xlu1 %v410_v10  ;;  %396 = vmax.xlane.f32.xlu0 %v395_v12  ;;  %v696_v10 = vmax.f32 %v694_v42, %v695_v5  ;;  %v577_v12 = vsel %vm3237_vm1, %v2204_v34, -inf  ;;  %v843_v14 = vadd.f32 %v841_v11, %v838_v7  ;;  %vm3239_vm1 = vcmask 203952  }
 0x28c   :  { %v697_v18 = vrot.slane %v696_v10, 1 }
 0x28e   :  { %417 = vmax.xlane.f32.xlu1 %v416_v17  ;;  %402 = vmax.xlane.f32.xlu0 %v401_v19  ;;  %v845_v17 = vrot.slane %v818_v41, 4  ;;  %v808_v19 = vrot.slane %v2047_v25, 2  ;;  %v2251_v32 = vmax.f32 %v696_v10, %v697_v18 }
 0x290   :  { %v847_v22 = vadd.f32 %v845_v17, %v843_v14  ;;  %v720_v25 = vsel %vm199_vm2, %v2251_v32, -inf  ;;  %v726_v41 = vsel %vm207_vm4, %v2251_v32, -inf  ;;  %v705_v4 = vsel %vm3217_vm10, %v2251_v32, -inf }
 0x291   :  { %v711_v10 = vsel %vm187_vm9, %v2251_v32, -inf  ;;  %v744_v18 = vsel %vm3212_vm0, %v2251_v32, -inf }
 0x292   :  { %423 = vmax.xlane.f32.xlu1 %v422_v31  ;;  %408 = vmax.xlane.f32.xlu0 %v407_v33  ;;  %v810_v31 = vadd.f32 %v808_v19, %v806_v16  ;;  %v589_v33 = vsel %vm243_vm5, %v2204_v34, -inf  ;;  %v848_v27 = vadd.f32 %v847_v22, %v2097_v57  ;;  %v717_v22 = vsel %vm195_vm11, %v2251_v32, -inf }
 0x294   :  { %v811_v45 = vmul.f32 -0.5, %v810_v31  ;;  %v850_v37 = vrot.slane %v848_v27, 7 }
 0x296   :  { %429 = vmax.xlane.f32.xlu1 %v428_v35  ;;  %414 = vmax.xlane.f32.xlu0 %v413_v46  ;;  %v568_v35 = vsel %vm3239_vm1, %v2204_v34, -inf  ;;  %v699_v46 = vsel %vm3219_vm8, %v2251_v32, -inf  ;;  %v812_v48 = vadd.f32 %v811_v45, %v2099_v62  ;;  %v750_v45 = vsel %vm3213_vm12, %v2251_v32, -inf }
 0x297   :  { %vm3244_vm12 = vcmask 187560  }
 0x298   :  { %v852_v49 = vmax.f32 %v812_v48, %v850_v37 }
 0x29a   :  { %539 = vmax.xlane.f32.xlu1 %v538_v47  ;;  %420 = vmax.xlane.f32.xlu0 %v419_v13  ;;  %v574_v47 = vsel %vm3221_vm3, %v2204_v34, -inf  ;;  %v708_v13 = vsel %vm3216_vm13, %v2251_v32, -inf  ;;  %v855_v26 = vmax.f32 %v852_v49, %v853_v53  ;;  %v756_v53 = vsel %vm247_vm14, %v2251_v32, -inf }
 0x29c   :  { %v856_v63 = vsel %vm3240_vm6, %v855_v26, -inf  ;;  %vm3211_vm6 = vcmask 7168  }
 0x29d   :  { %v857_v60 = vrot.slane %v856_v63, 4 }
 0x29e   :  { %548 = vmax.xlane.f32.xlu1 %v547_v51  ;;  %426 = vmax.xlane.f32.xlu0 %v425_v55  ;;  %v580_v51 = vsel %vm3212_vm0, %v2204_v34, -inf  ;;  %v714_v55 = vsel %vm191_vm15, %v2251_v32, -inf  ;;  %vm3214_vm0 = vcmask 23552  }
 0x29f   :  { %v858_v3 = vmax.f32 %v856_v63, %v857_v60 }
 0x2a1   :  { %v859_v7 = vrot.slane %v858_v3, 2 }
 0x2a2   :  { %554 = vmax.xlane.f32.xlu1 %v553_v58  ;;  %536 = vmax.xlane.f32.xlu0 %v535_v20  ;;  %v966_v58 = vmul.f32 2.0, %v2040_v30 }
 0x2a3   :  { %v860_v16 = vmax.f32 %v858_v3, %v859_v7  ;;  %v753_v7 = vsel %vm243_vm5, %v2251_v32, -inf }
 0x2a4   :  { %v981_v20 = vsub.f32 %v966_v58, %v2067_v44  ;;  %v702_v44 = vsel %vm3218_vm7, %v2251_v32, -inf  ;;  %v968_v5 = vrot.slane %v966_v58, 1  ;;  %v729_v58 = vsel %vm3244_vm12, %v2251_v32, -inf }
 0x2a5   :  { %v861_v27 = vrot.slane %v860_v16, 1  ;;  %vm3250_vm12 = vcmask 236760  }
 0x2a6   :  { %560 = vmax.xlane.f32.xlu1 %v559_v1  ;;  %542 = vmax.xlane.f32.xlu0 %v541_v0  ;;  %v996_v1 = vpop.permute.xlu1 %995  ;;  %v992_v0 = vmul.f32 0.33333334, %v991_v61  ;;  %v982_v38 = vmul.f32 0.16666667, %v981_v20 }
 0x2a7   :  { %v2308_v49 = vmax.f32 %v860_v16, %v861_v27 }
 0x2a8   :  { %v998_v42 = vadd.f32 %v996_v1, %v982_v38  ;;  %v1009_v14 = vrot.slane %v982_v38, 4 }
 0x2a9   :  { %v875_v60 = vsel %vm187_vm9, %v2308_v49, -inf  ;;  %v881_v3 = vsel %vm195_vm11, %v2308_v49, -inf }
 0x2aa   :  { %566 = vmax.xlane.f32.xlu1 %v565_v2  ;;  %545 = vmax.xlane.f32.xlu0 %v544_v43  ;;  %v1000_v2 = vrot.slane %v992_v0, 2  ;;  %v732_v43 = vsel %vm3239_vm1, %v2251_v32, -inf  ;;  %vm3241_vm1 = vcmask 15360   ;;  %v1017_v0 = vrot.slane %v2040_v30, 1 }
 0x2ac   :  { %v1002_v34 = vadd.f32 %v1000_v2, %v998_v42  ;;  %v741_v42 = vsel %vm3250_vm12, %v2251_v32, -inf  ;;  %vm3257_vm12 = vcmask 130152  }
 0x2ae   :  { %572 = vmax.xlane.f32.xlu1 %v571_v6  ;;  %551 = vmax.xlane.f32.xlu0 %v550_v8  ;;  %v1005_v6 = vpop.permute.xlu0 %1004  ;;  %v738_v8 = vsel %vm3221_vm3, %v2251_v32, -inf }
 0x2af   :  { %v1007_v9 = vadd.f32 %v1005_v6, %v1002_v34  ;;  %v887_v6 = vsel %vm3257_vm12, %v2308_v49, -inf  ;;  %vm3262_vm12 = vcmask 236760  }
 0x2b1   :  { %v1011_v19 = vadd.f32 %v1009_v14, %v1007_v9 }
 0x2b2   :  { %578 = vmax.xlane.f32.xlu1 %v577_v12  ;;  %557 = vmax.xlane.f32.xlu0 %v556_v15  ;;  %v970_v12 = vsub.f32 %v2040_v30, %v968_v5 }
 0x2b6   :  { %584 = vmax.xlane.f32.xlu1 %v583_v21  ;;  %563 = vmax.xlane.f32.xlu0 %v562_v23  ;;  %v972_v21 = vrot.slane %v2040_v30, 2 }
 0x2b8   :  { %v974_v31 = vadd.f32 %v972_v21, %v970_v12  ;;  %v863_v12 = vsel %vm3219_vm8, %v2308_v49, -inf }
 0x2ba   :  { %590 = vmax.xlane.f32.xlu1 %v589_v33  ;;  %569 = vmax.xlane.f32.xlu0 %v568_v35  ;;  %v975_v48 = vmul.f32 -0.5, %v974_v31 }
 0x2bc   :  { %v976_v26 = vadd.f32 %v975_v48, %v2099_v62 }
 0x2be   :  { %700 = vmax.xlane.f32.xlu1 %v699_v46  ;;  %575 = vmax.xlane.f32.xlu0 %v574_v47  ;;  %v1012_v46 = vadd.f32 %v1011_v19, %v2097_v57 }
 0x2c2   :  { %709 = vmax.xlane.f32.xlu1 %v708_v13  ;;  %581 = vmax.xlane.f32.xlu0 %v580_v51 }
 0x2c6   :  { %715 = vmax.xlane.f32.xlu1 %v714_v55  ;;  %587 = vmax.xlane.f32.xlu0 %v586_v59  ;;  %v1014_v55 = vrot.slane %v1012_v46, 7 }
 0x2c8   :  { %v1016_v63 = vmax.f32 %v976_v26, %v1014_v55  ;;  %v890_v26 = vsel %vm207_vm4, %v2308_v49, -inf }
 0x2ca   :  { %721 = vmax.xlane.f32.xlu1 %v720_v25  ;;  %593 = vmax.xlane.f32.xlu0 %v592_v24  ;;  %v866_v25 = vsel %vm3218_vm7, %v2308_v49, -inf }
 0x2ce   :  { %727 = vmax.xlane.f32.xlu1 %v726_v41  ;;  %703 = vmax.xlane.f32.xlu0 %v702_v44  ;;  %v1019_v41 = vmax.f32 %v1016_v63, %v1017_v0 }
 0x2d2   :  { %733 = vmax.xlane.f32.xlu1 %v732_v43  ;;  %706 = vmax.xlane.f32.xlu0 %v705_v4 }
 0x2d6   :  { %739 = vmax.xlane.f32.xlu1 %v738_v8  ;;  %712 = vmax.xlane.f32.xlu0 %v711_v10 }
 0x2d7   :  { %v178_v11 = vpop.xlane.xlu1 %177  ;;  %v174_v15 = vpop.xlane.xlu0 %173 }
 0x2d8   :  { %v252_v17 = vsel %vm3211_vm6, %v174_v15, %v178_v11  ;;  %vm3242_vm6 = vcmask 130152  }
 0x2d9   :  { %v723_v37 = vsel %vm3242_vm6, %v2251_v32, -inf  ;;  %vm3215_vm6 = vcmask 39936  }
 0x2da   :  { %745 = vmax.xlane.f32.xlu1 %v744_v18  ;;  %718 = vmax.xlane.f32.xlu0 %v717_v22  ;;  %v905_v22 = vsel %vm3262_vm12, %v2308_v49, -inf  ;;  %vm3268_vm12 = vcmask 253160  }
 0x2db   :  { %v190_v23 = vpop.xlane.xlu1 %189  ;;  %v182_v33 = vpop.xlane.xlu0 %181 }
 0x2dc   :  { %v253_v35 = vsel %vm3241_vm1, %v252_v17, %v182_v33  ;;  %vm3220_vm1 = vcmask 31744   ;;  %v869_v17 = vsel %vm3217_vm10, %v2308_v49, -inf }
 0x2de   :  { %751 = vmax.xlane.f32.xlu1 %v750_v45  ;;  %724 = vmax.xlane.f32.xlu0 %v723_v37  ;;  %v878_v45 = vsel %vm191_vm15, %v2308_v49, -inf }
 0x2df   :  { %v2306_v47 = vpop.xlane.xlu1 %197  ;;  %v186_v13 = vpop.xlane.xlu0 %185 }
 0x2e0   :  { %3243 = vst [vmem:[#allocation9_spill] sm:$0xff] %v2306_v47  ;;  %v255_v51 = vsel %vm3214_vm0, %v253_v35, %v186_v13  ;;  %vm3247_vm0 = vcmask 212160   ;;  %v917_v13 = vsel %vm243_vm5, %v2308_v49, -inf }
 0x2e1   :  { %v257_v59 = vsel %vm3220_vm1, %v255_v51, %v190_v23  ;;  %v735_v24 = vsel %vm3247_vm0, %v2251_v32, -inf  ;;  %vm3253_vm0 = vcmask 296969   ;;  %v872_v23 = vsel %vm3216_vm13, %v2308_v49, -inf }
 0x2e2   :  { %757 = vmax.xlane.f32.xlu1 %v756_v53  ;;  %730 = vmax.xlane.f32.xlu0 %v729_v58  ;;  %v1020_v30 = vsel %vm3253_vm0, %v1019_v41, -inf  ;;  %vm3261_vm0 = vcmask 212160   ;;  %v884_v51 = vsel %vm199_vm2, %v2308_v49, -inf  ;;  %v902_v41 = vsel %vm3221_vm3, %v2308_v49, -inf }
 0x2e3   :  { %v2315_v28 = vpop.xlane.xlu1 %205  ;;  %v194_v20 = vpop.xlane.xlu0 %193  ;;  %v1021_v5 = vrot.slane %v1020_v30, 4 }
 0x2e4   :  { %3245 = vst [vmem:[#allocation10_spill] sm:$0xff] %v2315_v28  ;;  %v2320_v61 = vsel %vm3215_vm6, %v257_v59, %v194_v20  ;;  %vm3254_vm6 = vcmask 269552  }
 0x2e5   :  { %3246 = vst [vmem:[#allocation11_spill] sm:$0xff] %v2320_v61  ;;  %v747_v43 = vsel %vm3254_vm6, %v2251_v32, -inf  ;;  %v1022_v10 = vmax.f32 %v1020_v30, %v1021_v5  ;;  %vm3259_vm6 = vcmask 187560   ;;  %v899_v32 = vsel %vm3261_vm0, %v2308_v49, -inf }
 0x2e6   :  { %867 = vmax.xlane.f32.xlu1 %v866_v25  ;;  %736 = vmax.xlane.f32.xlu0 %v735_v24  ;;  %v893_v11 = vsel %vm3259_vm6, %v2308_v49, -inf  ;;  %vm3263_vm6 = vcmask 269552   ;;  %vm3265_vm0 = vcmask 203952   ;;  %v908_v30 = vsel %vm3268_vm12, %v2308_v49, -inf }
 0x2e7   :  { %v2326_v1 = vpop.xlane.xlu1 %213  ;;  %v2329_v38 = vpop.xlane.xlu0 %201  ;;  %v1023_v16 = vrot.slane %v1022_v10, 2  ;;  %v911_v35 = vsel %vm3263_vm6, %v2308_v49, -inf  ;;  %v896_v63 = vsel %vm3265_vm0, %v2308_v49, -inf  ;;  %vm3271_vm6 = vcmask 277760  }
 0x2e8   :  { %3248 = vst [vmem:[#allocation12_spill] sm:$0xff] %v2326_v1  ;;  %3249 = vst [vmem:[#allocation13_spill] sm:$0xff] %v2329_v38  ;;  %vm3306_vm0 = vcmask 7168   ;;  %vm3307_vm12 = vcmask 15360  }
 0x2e9   :  { %v1024_v19 = vmax.f32 %v1022_v10, %v1023_v16 }
 0x2ea   :  { %876 = vmax.xlane.f32.xlu1 %v875_v60  ;;  %742 = vmax.xlane.f32.xlu0 %v741_v42 }
 0x2eb   :  { %v2335_v44 = vpop.xlane.xlu1 %221  ;;  %v2337_v2 = vpop.xlane.xlu0 %209  ;;  %v1025_v27 = vrot.slane %v1024_v19, 1 }
 0x2ec   :  { %3251 = vst [vmem:[#allocation14_spill] sm:$0xff] %v2335_v44  ;;  %3252 = vst [vmem:[#allocation15_spill] sm:$0xff] %v2337_v2 }
 0x2ed   :  { %v2388_v48 = vmax.f32 %v1024_v19, %v1025_v27  ;;  %v2456_v27 = vld [vmem:[#allocation2 + $0xe] sm:$0x3f] }
 0x2ee   :  { %882 = vmax.xlane.f32.xlu1 %v881_v3  ;;  %748 = vmax.xlane.f32.xlu0 %v747_v43 }
 0x2ef   :  { %v2344_v34 = vpop.xlane.xlu1 %229  ;;  %v2346_v4 = vpop.xlane.xlu0 %217  ;;  %v1027_v58 = vsel %vm3219_vm8, %v2388_v48, -inf  ;;  %v1033_v25 = vsel %vm3217_vm10, %v2388_v48, -inf  ;;  %v1036_v60 = vsel %vm3216_vm13, %v2388_v48, -inf  ;;  %vm3309_vm13 = vmmov %vm3306_vm0 }
 0x2f0   :  { %3255 = vst [vmem:[#allocation16_spill] sm:$0xff] %v2344_v34  ;;  %3256 = vst [vmem:[#allocation17_spill] sm:$0xff] %v2346_v4 }
 0x2f1   :  { %vm3310_vm10 = vmmov %vm3306_vm0 }
 0x2f2   :  { %888 = vmax.xlane.f32.xlu1 %v887_v6  ;;  %754 = vmax.xlane.f32.xlu0 %v753_v7  ;;  %v914_v6 = vsel %vm3271_vm6, %v2308_v49, -inf  ;;  %vm3308_vm6 = vcmask 23552  }
 0x2f3   :  { %v2352_v8 = vpop.xlane.xlu1 %237  ;;  %v2354_v9 = vpop.xlane.xlu0 %225  ;;  %vm3317_vm1 = vmmov %vm3308_vm6 }
 0x2f4   :  { %3258 = vst [vmem:[#allocation18_spill] sm:$0xff] %v2354_v9 }
 0x2f6   :  { %894 = vmax.xlane.f32.xlu1 %v893_v11  ;;  %864 = vmax.xlane.f32.xlu0 %v863_v12  ;;  %v920_v11 = vsel %vm247_vm14, %v2308_v49, -inf }
 0x2f7   :  { %v2360_v14 = vpop.xlane.xlu1 %245  ;;  %v2362_v15 = vpop.xlane.xlu0 %233 }
 0x2f8   :  { %3260 = vst [vmem:[#allocation19_spill] sm:$0xff] %v2362_v15 }
 0x2fa   :  { %900 = vmax.xlane.f32.xlu1 %v899_v32  ;;  %870 = vmax.xlane.f32.xlu0 %v869_v17  ;;  %v2440_v32 = vld [vmem:[#allocation2 + $0x9] sm:$0x7f] }
 0x2fb   :  { %v2368_v18 = vpop.xlane.xlu1 %372  ;;  %v2370_v21 = vpop.xlane.xlu0 %241 }
 0x2fe   :  { %906 = vmax.xlane.f32.xlu1 %v905_v22  ;;  %873 = vmax.xlane.f32.xlu0 %v872_v23  ;;  %v2448_v22 = vld [vmem:[#allocation2 + $0xb] sm:$0x3f] }
 0x2ff   :  { %v2376_v31 = vpop.xlane.xlu1 %381  ;;  %v2378_v33 = vpop.xlane.xlu0 %249 }
 0x302   :  { %912 = vmax.xlane.f32.xlu1 %v911_v35  ;;  %879 = vmax.xlane.f32.xlu0 %v878_v45 }
 0x303   :  { %v2384_v46 = vpop.xlane.xlu1 %387  ;;  %v2386_v37 = vpop.xlane.xlu0 %375 }
 0x306   :  { %918 = vmax.xlane.f32.xlu1 %v917_v13  ;;  %885 = vmax.xlane.f32.xlu0 %v884_v51 }
 0x307   :  { %v2394_v53 = vpop.xlane.xlu1 %393  ;;  %v2396_v55 = vpop.xlane.xlu0 %378 }
 0x30a   :  { %1028 = vmax.xlane.f32.xlu1 %v1027_v58  ;;  %891 = vmax.xlane.f32.xlu0 %v890_v26  ;;  %v1115_v58 = vadd.f32 %v2440_v32, %v1993_v50  ;;  %v2472_v26 = vld [vmem:[#allocation2 + $0xc] sm:$0x7f] }
 0x30b   :  { %v2402_v59 = vpop.xlane.xlu1 %399  ;;  %v2404_v20 = vpop.xlane.xlu0 %384 }
 0x30c   :  { %3264 = vst [vmem:[#allocation20_spill] sm:$0xff] %v2402_v59 }
 0x30e   :  { %1034 = vmax.xlane.f32.xlu1 %v1033_v25  ;;  %897 = vmax.xlane.f32.xlu0 %v896_v63  ;;  %v1612_v63 = vmul.f32 2.0, %v2456_v27 }
 0x30f   :  { %v2410_v24 = vpop.xlane.xlu1 %405  ;;  %v2412_v0 = vpop.xlane.xlu0 %390 }
 0x310   :  { %3266 = vst [vmem:[#allocation21_spill] sm:$0xff] %v2410_v24 }
 0x312   :  { %1037 = vmax.xlane.f32.xlu1 %v1036_v60  ;;  %903 = vmax.xlane.f32.xlu0 %v902_v41  ;;  %v1279_v41 = vadd.f32 %v2448_v22, %v1995_v52 }
 0x313   :  { %v2418_v42 = vpop.xlane.xlu1 %411  ;;  %v2420_v3 = vpop.xlane.xlu0 %396 }
 0x314   :  { %3267 = vst [vmem:[#allocation22_spill] sm:$0xff] %v2418_v42 }
 0x316   :  { %909 = vmax.xlane.f32.xlu0 %v908_v30  ;;  %v1448_v30 = vmul.f32 2.0, %v2472_v26 }
 0x317   :  { %v2424_v43 = vpop.xlane.xlu1 %417  ;;  %v2426_v5 = vpop.xlane.xlu0 %402 }
 0x318   :  { %3269 = vst [vmem:[#allocation23_spill] sm:$0xff] %v2424_v43  ;;  %3270 = vst [vmem:[#allocation24_spill] sm:$0xff] %v2426_v5 }
 0x31a   :  { %915 = vmax.xlane.f32.xlu0 %v914_v6 }
 0x31b   :  { %v2430_v7 = vpop.xlane.xlu1 %423  ;;  %v2432_v10 = vpop.xlane.xlu0 %408 }
 0x31c   :  { %3272 = vst [vmem:[#allocation25_spill] sm:$0xff] %v2432_v10 }
 0x31e   :  { %921 = vmax.xlane.f32.xlu0 %v920_v11  ;;  %v2494_v11 = vsub.f32 %v1279_v41, %v2057_v29 }
 0x31f   :  { %v2436_v12 = vpop.xlane.xlu1 %429  ;;  %v2438_v16 = vpop.xlane.xlu0 %414 }
 0x320   :  { %3273 = vst [vmem:[#allocation26_spill] sm:$0xff] %v2438_v16 }
 0x323   :  { %1116 = vrot.lane.b32.xlu1 %v2440_v32, %s1899_s19  ;;  %v2444_v17 = vpop.xlane.xlu1 %539  ;;  %v2446_v19 = vpop.xlane.xlu0 %420 }
 0x327   :  { %1280 = vrot.lane.b32.xlu1 %v2448_v22, %s1899_s19  ;;  %v2452_v49 = vpop.xlane.xlu1 %548  ;;  %v2454_v23 = vpop.xlane.xlu0 %426 }
 0x32b   :  { %1608 = vrot.lane.b32.xlu1 %v2456_v27, %s1899_s19  ;;  %v2460_v35 = vpop.xlane.xlu1 %554  ;;  %v2462_v45 = vpop.xlane.xlu0 %536 }
 0x32c   :  { %3274 = vst [vmem:[#allocation27_spill] sm:$0xff] %v2460_v35 }
 0x32f   :  { %1290 = vrot.lane.b32.xlu1 %v1989_v40, %s1900_s20  ;;  %v2466_v13 = vpop.xlane.xlu1 %560  ;;  %v2468_v51 = vpop.xlane.xlu0 %542  ;;  %v2482_v40 = vsub.f32 %v1115_v58, %v2055_v36 }
 0x330   :  { %3275 = vst [vmem:[#allocation28_spill] sm:$0xff] %v2466_v13 }
 0x331   :  { %v1147_v36 = vmul.f32 3.0, %v2482_v40 }
 0x333   :  { %1444 = vrot.lane.b32.xlu1 %v2472_v26, %s1899_s19  ;;  %v2476_v25 = vpop.xlane.xlu1 %566  ;;  %v2479_v60 = vpop.xlane.xlu0 %545 }
 0x334   :  { %3276 = vst [vmem:[#allocation29_spill] sm:$0xff] %v2476_v25  ;;  %1614 = vrot.lane.b32.xlu0 %v1612_v63, %s1901_s21 }
 0x337   :  { %1618 = vrot.lane.b32.xlu1 %v1612_v63, %s1900_s20  ;;  %v2488_v50 = vpop.xlane.xlu1 %572  ;;  %v2491_v6 = vpop.xlane.xlu0 %551  ;;  %v1311_v63 = vmul.f32 3.0, %v2494_v11 }
 0x338   :  { %3277 = vst [vmem:[#allocation30_spill] sm:$0xff] %v2488_v50  ;;  %1450 = vrot.lane.b32.xlu0 %v1448_v30, %s1901_s21 }
 0x33b   :  { %1149 = vrot.lane.b32.xlu1 %v1147_v36, %s1901_s21  ;;  %v2499_v58 = vpop.xlane.xlu1 %578  ;;  %v2501_v52 = vpop.xlane.xlu0 %557 }
 0x33c   :  { %3278 = vst [vmem:[#allocation31_spill] sm:$0xff] %v2499_v58  ;;  %3279 = vst [vmem:[#allocation32_spill] sm:$0xff] %v2501_v52 }
 0x33f   :  { %1313 = vrot.lane.b32.xlu1 %v1311_v63, %s1901_s21  ;;  %v2505_v15 = vpop.xlane.xlu0 %563  ;;  %v2507_v34 = vpop.xlane.xlu1 %584  ;;  %v1030_v63 = vsel %vm3218_vm7, %v2388_v48, -inf  ;;  %vm3313_vm7 = vmmov %vm3310_vm10 }
 0x340   :  { %3280 = vst [vmem:[#allocation33_spill] sm:$0xff] %v2505_v15 }
 0x343   :  { %v2509_v29 = vpop.xlane.xlu0 %569  ;;  %v2511_v41 = vpop.xlane.xlu1 %590 }
 0x344   :  { %3281 = vst [vmem:[#allocation34_spill] sm:$0xff] %v2509_v29 }
 0x347   :  { %v2513_v9 = vpop.xlane.xlu0 %575  ;;  %v2517_v36 = vpop.xlane.xlu1 %700 }
 0x348   :  { %3282 = vst [vmem:[#allocation35_spill] sm:$0xff] %v2513_v9 }
 0x34b   :  { %v2515_v44 = vpop.xlane.xlu0 %581  ;;  %v2519_v43 = vpop.xlane.xlu1 %709 }
 0x34c   :  { %3283 = vst [vmem:[#allocation36_spill] sm:$0xff] %v2515_v44 }
 0x34f   :  { %v588_v58 = vpop.xlane.xlu0 %587  ;;  %v2525_v16 = vpop.xlane.xlu1 %715 }
 0x353   :  { %v594_v50 = vpop.xlane.xlu0 %593  ;;  %v2529_v42 = vpop.xlane.xlu1 %721 }
 0x354   :  { %3284 = vst [vmem:[#allocation37_spill] sm:$0xff] %v2529_v42 }
 0x357   :  { %1031 = vmax.xlane.f32.xlu0 %v1030_v63  ;;  %v2523_v4 = vpop.xlane.xlu0 %703  ;;  %v2535_v29 = vpop.xlane.xlu1 %727 }
 0x358   :  { %3286 = vst [vmem:[#allocation39_spill] sm:$0xff] %v2535_v29 }
 0x35b   :  { %v2527_v1 = vpop.xlane.xlu0 %706  ;;  %v2539_v2 = vpop.xlane.xlu1 %733 }
 0x35c   :  { %3288 = vst [vmem:[#allocation41_spill] sm:$0xff] %v2539_v2 }
 0x35f   :  { %v2531_v9 = vpop.xlane.xlu0 %712  ;;  %v2547_v28 = vpop.xlane.xlu1 %739 }
 0x360   :  { %3291 = vst [vmem:[#allocation44_spill] sm:$0xff] %v2547_v28 }
 0x363   :  { %v2533_v44 = vpop.xlane.xlu0 %718  ;;  %v2552_v15 = vpop.xlane.xlu1 %745 }
 0x364   :  { %3285 = vst [vmem:[#allocation38_spill] sm:$0xff] %v2533_v44  ;;  %3293 = vst [vmem:[#allocation46_spill] sm:$0xff] %v2552_v15 }
 0x367   :  { %v2537_v25 = vpop.xlane.xlu0 %724  ;;  %v752_v38 = vpop.xlane.xlu1 %751 }
 0x368   :  { %3287 = vst [vmem:[#allocation40_spill] sm:$0xff] %v2537_v25 }
 0x36b   :  { %v2541_v10 = vpop.xlane.xlu0 %730  ;;  %v758_v2 = vpop.xlane.xlu1 %757 }
 0x36c   :  { %3289 = vst [vmem:[#allocation42_spill] sm:$0xff] %v2541_v10 }
 0x36d   :  { %1126 = vrot.lane.b32.xlu0 %v1985_v39, %s1900_s20 }
 0x36f   :  { %v2545_v63 = vpop.xlane.xlu0 %736  ;;  %v2560_v39 = vpop.xlane.xlu1 %867 }
 0x370   :  { %3290 = vst [vmem:[#allocation43_spill] sm:$0xff] %v2545_v63 }
 0x371   :  { %1454 = vrot.lane.b32.xlu0 %v1448_v30, %s1900_s20 }
 0x373   :  { %v2550_v24 = vpop.xlane.xlu0 %742  ;;  %v2564_v28 = vpop.xlane.xlu1 %876 }
 0x374   :  { %3292 = vst [vmem:[#allocation45_spill] sm:$0xff] %v2550_v24  ;;  %3295 = vst [vmem:[#allocation48_spill] sm:$0xff] %v2564_v28 }
 0x377   :  { %v749_v29 = vpop.xlane.xlu0 %748  ;;  %v2570_v15 = vpop.xlane.xlu1 %882 }
 0x378   :  { %3298 = vst [vmem:[#allocation51_spill] sm:$0xff] %v2570_v15 }
 0x37b   :  { %v755_v13 = vpop.xlane.xlu0 %754  ;;  %v2574_v47 = vpop.xlane.xlu1 %888 }
 0x37c   :  { %3300 = vst [vmem:[#allocation53_spill] sm:$0xff] %v2574_v47 }
 0x37f   :  { %v2554_v25 = vpop.xlane.xlu0 %864  ;;  %v2580_v52 = vpop.xlane.xlu1 %894 }
 0x380   :  { %3303 = vst [vmem:[#allocation56_spill] sm:$0xff] %v2580_v52 }
 0x383   :  { %v2556_v10 = vpop.xlane.xlu0 %870 }
 0x387   :  { %v2558_v5 = vpop.xlane.xlu0 %873 }
 0x38b   :  { %v2562_v63 = vpop.xlane.xlu0 %879 }
 0x38c   :  { %3294 = vst [vmem:[#allocation47_spill] sm:$0xff] %v2562_v63  ;;  %v2582_v63 = vpop.xlane.xlu1 %900 }
 0x38d   :  { %3304 = vst [vmem:[#allocation57_spill] sm:$0xff] %v2582_v63 }
 0x38f   :  { %v2566_v30 = vpop.xlane.xlu0 %885 }
 0x390   :  { %3296 = vst [vmem:[#allocation49_spill] sm:$0xff] %v2566_v30  ;;  %v1607_v30 = vadd.f32 %v2456_v27, %v1997_v54  ;;  %v2588_v15 = vpop.xlane.xlu1 %906 }
 0x391   :  { %3305 = vst [vmem:[#allocation58_spill] sm:$0xff] %v2588_v15 }
 0x393   :  { %v2568_v24 = vpop.xlane.xlu0 %891 }
 0x394   :  { %3297 = vst [vmem:[#allocation50_spill] sm:$0xff] %v2568_v24 }
 0x397   :  { %v2572_v61 = vpop.xlane.xlu0 %897 }
 0x398   :  { %3299 = vst [vmem:[#allocation52_spill] sm:$0xff] %v2572_v61  ;;  %v1443_v61 = vadd.f32 %v2472_v26, %v1999_v56  ;;  %v446_v56 = vsel %vm3309_vm13, %v2446_v19, %v2430_v7  ;;  %vm3314_vm13 = vmmov %vm3313_vm7 }
 0x39b   :  { %v2576_v42 = vpop.xlane.xlu0 %903 }
 0x39c   :  { %3301 = vst [vmem:[#allocation54_spill] sm:$0xff] %v2576_v42 }
 0x39f   :  { %v2578_v59 = vpop.xlane.xlu0 %909 }
 0x3a0   :  { %3302 = vst [vmem:[#allocation55_spill] sm:$0xff] %v2578_v59  ;;  %v280_v59 = vsel %vm3306_vm0, %v2352_v8, %v2370_v21  ;;  %v610_v8 = vsel %vm3310_vm10, %v2507_v34, %v588_v58  ;;  %v913_v21 = vpop.xlane.xlu1 %912  ;;  %vm3311_vm0 = vmmov %vm3307_vm12 }
 0x3a1   :  { %v281_v54 = vsel %vm3307_vm12, %v280_v59, %v2360_v14  ;;  %vm3312_vm12 = vmmov %vm3311_vm0  ;;  %v774_v59 = vsel %vm3313_vm7, %v749_v29, %v752_v38  ;;  %v1042_v29 = vsel %vm191_vm15, %v2388_v48, -inf  ;;  %vm3319_vm7 = vcmask 130152  }
 0x3a2   :  { %v611_v14 = vsel %vm3312_vm12, %v610_v8, %v2511_v41  ;;  %vm3315_vm10 = vmmov %vm3308_vm6  ;;  %v1054_v8 = vsel %vm207_vm4, %v2388_v48, -inf }
 0x3a3   :  { %v916_v35 = vpop.xlane.xlu0 %915  ;;  %vm3316_vm8 = vmmov %vm3311_vm0 }
 0x3a4   :  { %v775_v7 = vsel %vm3316_vm8, %v774_v59, %v755_v13  ;;  %v919_v19 = vpop.xlane.xlu1 %918  ;;  %vm3318_vm12 = vmmov %vm3317_vm1  ;;  %vm3320_vm8 = vcmask 187560  }
 0x3a7   :  { %v922_v28 = vpop.xlane.xlu0 %921 }
 0x3a8   :  { %v2628_v38 = vpop.xlane.xlu1 %1028 }
 0x3ab   :  { %v1615_v24 = vpop.permute.xlu0 %1614 }
 0x3ac   :  { %v2586_v44 = vsub.f32 %v1607_v30, %v1615_v24  ;;  %v282_v30 = vsel %vm3308_vm6, %v281_v54, %v2378_v33  ;;  %v612_v33 = vsel %vm3308_vm6, %v611_v14, %v594_v50  ;;  %v776_v50 = vsel %vm3318_vm12, %v775_v7, %v758_v2 }
 0x3ad   :  { %v1039_v2 = vsel %vm187_vm9, %v2388_v48, -inf  ;;  %v1051_v54 = vsel %vm3319_vm7, %v2388_v48, -inf  ;;  %vm3322_vm6 = vcmask 203952   ;;  %vm3328_vm12 = vcmask 277760  }
 0x3ae   :  { %v1639_v42 = vmul.f32 3.0, %v2586_v44  ;;  %v1060_v14 = vsel %vm3322_vm6, %v2388_v48, -inf  ;;  %vm3331_vm7 = vcmask 7168   ;;  %vm3335_vm6 = vcmask 31744  }
 0x3af   :  { %v1451_v52 = vpop.permute.xlu0 %1450 }
 0x3b0   :  { %v2596_v63 = vsub.f32 %v1443_v61, %v1451_v52  ;;  %1641 = vrot.lane.b32.xlu1 %v1639_v42, %s1901_s21  ;;  %v447_v61 = vsel %vm3311_vm0, %v446_v56, %v2454_v23  ;;  %v938_v42 = vsel %vm3314_vm13, %v913_v21, %v916_v35  ;;  %v1057_v56 = vsel %vm3320_vm8, %v2388_v48, -inf }
 0x3b1   :  { %v448_v34 = vsel %vm3315_vm10, %v447_v61, %v2436_v12  ;;  %v939_v23 = vsel %vm3311_vm0, %v938_v42, %v919_v19  ;;  %v2630_v12 = vpop.xlane.xlu1 %1034  ;;  %vm3323_vm13 = vcmask 253160   ;;  %vm3324_vm10 = vcmask 269552  }
 0x3b2   :  { %v1475_v24 = vmul.f32 3.0, %v2596_v63  ;;  %v940_v58 = vsel %vm3317_vm1, %v939_v23, %v922_v28  ;;  %v1045_v28 = vsel %vm195_vm11, %v2388_v48, -inf  ;;  %vm3321_vm1 = vcmask 212160  }
 0x3b3   :  { %v1063_v61 = vsel %vm3321_vm1, %v2388_v48, -inf  ;;  %vm3325_vm0 = vcmask 236760   ;;  %vm3333_vm8 = vcmask 15360   ;;  %vm3334_vm1 = vcmask 23552  }
 0x3b4   :  { %284 = vrot.lane.b32.xlu1 %v282_v30, %s1903_s30  ;;  %1477 = vrot.lane.b32.xlu0 %v1475_v24, %s1901_s21  ;;  %v1048_v24 = vsel %vm199_vm2, %v2388_v48, -inf }
 0x3b5   :  { %v2632_v35 = vpop.xlane.xlu1 %1037 }
 0x3b8   :  { %614 = vrot.lane.b32.xlu1 %v612_v33, %s1903_s30  ;;  %450 = vrot.lane.b32.xlu0 %v448_v34, %s1903_s30 }
 0x3b9   :  { %v1117_v13 = vpop.permute.xlu1 %1116 }
 0x3ba   :  { %v1119_v34 = vadd.f32 %v2440_v32, %v1117_v13 }
 0x3bc   :  { %942 = vrot.lane.b32.xlu1 %v940_v58, %s1903_s30  ;;  %778 = vrot.lane.b32.xlu0 %v776_v50, %s1903_s30 }
 0x3bd   :  { %v1281_v52 = vpop.permute.xlu1 %1280 }
 0x3be   :  { %v1283_v23 = vadd.f32 %v2448_v22, %v1281_v52 }
 0x3c1   :  { %v1609_v41 = vpop.permute.xlu1 %1608 }
 0x3c5   :  { %v1291_v30 = vpop.permute.xlu1 %1290 }
 0x3c9   :  { %v1445_v21 = vpop.permute.xlu1 %1444 }
 0x3cd   :  { %v1619_v59 = vpop.permute.xlu1 %1618 }
 0x3d1   :  { %v1150_v7 = vpop.permute.xlu1 %1149 }
 0x3d5   :  { %v1314_v50 = vpop.permute.xlu1 %1313 }
 0x3db   :  { %1043 = vmax.xlane.f32.xlu0 %v1042_v29  ;;  %v1611_v29 = vadd.f32 %v2456_v27, %v1609_v41 }
 0x3df   :  { %1046 = vmax.xlane.f32.xlu0 %v1045_v28  ;;  %v1293_v28 = vsub.f32 %v1283_v23, %v1291_v30  ;;  %v1066_v23 = vsel %vm3221_vm3, %v2388_v48, -inf  ;;  %vm3339_vm3 = vcmask 23560  }
 0x3e0   :  { %1040 = vmax.xlane.f32.xlu1 %v1039_v2  ;;  %v2652_v33 = vpop.xlane.xlu0 %1031  ;;  %v1621_v2 = vsub.f32 %v1611_v29, %v1619_v59  ;;  %v1069_v29 = vsel %vm3325_vm0, %v2388_v48, -inf  ;;  %vm262_vm0 = vcmask 56320  }
 0x3e3   :  { %1052 = vmax.xlane.f32.xlu0 %v1051_v54  ;;  %v1316_v54 = vsub.f32 %v1293_v28, %v1314_v50  ;;  %v1075_v50 = vsel %vm3324_vm10, %v2388_v48, -inf  ;;  %vm3336_vm10 = vcmask 39936  }
 0x3e4   :  { %1049 = vmax.xlane.f32.xlu1 %v1048_v24  ;;  %v1127_v42 = vpop.permute.xlu0 %1126 }
 0x3e5   :  { %v1129_v19 = vsub.f32 %v1119_v34, %v1127_v42  ;;  %v1317_v32 = vmul.f32 0.33333334, %v1316_v54  ;;  %v1081_v54 = vsel %vm243_vm5, %v2388_v48, -inf }
 0x3e7   :  { %1058 = vmax.xlane.f32.xlu0 %v1057_v56  ;;  %v1152_v58 = vsub.f32 %v1129_v19, %v1150_v7  ;;  %v1322_v27 = vrot.slane %v1317_v32, 1  ;;  %v1331_v34 = vrot.slane %v1317_v32, 3  ;;  %v1084_v32 = vsel %vm247_vm14, %v2388_v48, -inf }
 0x3e8   :  { %1055 = vmax.xlane.f32.xlu1 %v1054_v8  ;;  %v1455_v56 = vpop.permute.xlu0 %1454  ;;  %v1447_v8 = vadd.f32 %v2472_v26, %v1445_v21 }
 0x3e9   :  { %v1153_v24 = vmul.f32 0.33333334, %v1152_v58  ;;  %v1072_v58 = vsel %vm3323_vm13, %v2388_v48, -inf  ;;  %vm260_vm13 = vcmask 48128  }
 0x3ea   :  { %v1457_v22 = vsub.f32 %v1447_v8, %v1455_v56 }
 0x3eb   :  { %1064 = vmax.xlane.f32.xlu0 %v1063_v61  ;;  %v1158_v13 = vrot.slane %v1153_v24, 1  ;;  %v1167_v59 = vrot.slane %v1153_v24, 3  ;;  %v1078_v24 = vsel %vm3328_vm12, %v2388_v48, -inf  ;;  %vm264_vm12 = vcmask 64512  }
 0x3ec   :  { %1061 = vmax.xlane.f32.xlu1 %v1060_v14 }
 0x3fd   :  { %1142 = vrot.lane.b32.xlu1 %v1129_v19, %s1902_s22 }
 0x401   :  { %1306 = vrot.lane.b32.xlu0 %v1293_v28, %s1902_s22  ;;  %1634 = vrot.lane.b32.xlu1 %v1621_v2, %s1902_s22 }
 0x405   :  { %1159 = vrot.lane.b32.xlu0 %v1158_v13, %s1902_s22  ;;  %1470 = vrot.lane.b32.xlu1 %v1457_v22, %s1902_s22  ;;  %v1087_v13 = vsel %vm3331_vm7, %v2628_v38, %v2652_v33  ;;  %vm266_vm7 = vcmask 72704  }
 0x409   :  { %1323 = vrot.lane.b32.xlu1 %v1322_v27, %s1902_s22 }
 0x422   :  { %v1642_v52 = vpop.permute.xlu1 %1641 }
 0x423   :  { %v1644_v41 = vsub.f32 %v1621_v2, %v1642_v52  ;;  %v1088_v52 = vsel %vm3333_vm8, %v1087_v13, %v2630_v12  ;;  %vm3224_vm8 = vcmask 80896  }
 0x425   :  { %v1645_v30 = vmul.f32 0.33333334, %v1644_v41 }
 0x426   :  { %v1478_v61 = vpop.permute.xlu0 %1477  ;;  %v2678_v28 = vpop.permute.xlu1 %284 }
 0x427   :  { %v1650_v14 = vrot.slane %v1645_v30, 1  ;;  %v1480_v26 = vsub.f32 %v1457_v22, %v1478_v61  ;;  %v1659_v7 = vrot.slane %v1645_v30, 3  ;;  %3326 = vst [vmem:[#allocation59_spill] sm:$0xff] %v2678_v28  ;;  %v1089_v61 = vsel %vm3334_vm1, %v1088_v52, %v2632_v35 }
 0x428   :  { %vm3223_vm1 = vcmask 89088   ;;  %v1294_v52 = vmul.f32 2.0, %v2494_v11 }
 0x429   :  { %v1481_v21 = vmul.f32 0.33333334, %v1480_v26  ;;  %1651 = vrot.lane.b32.xlu0 %v1650_v14, %s1902_s22 }
 0x42a   :  { %v2680_v2 = vpop.permute.xlu0 %450  ;;  %v2686_v56 = vpop.permute.xlu1 %614 }
 0x42b   :  { %v1486_v42 = vrot.slane %v1481_v21, 1  ;;  %v1495_v19 = vrot.slane %v1481_v21, 3  ;;  %3327 = vst [vmem:[#allocation60_spill] sm:$0xff] %v2680_v2  ;;  %3329 = vst [vmem:[#allocation61_spill] sm:$0xff] %v2686_v56 }
 0x42d   :  { %1168 = vrot.lane.b32.xlu0 %v1167_v59, %s1902_s22  ;;  %1487 = vrot.lane.b32.xlu1 %v1486_v42, %s1902_s22 }
 0x42e   :  { %v2688_v8 = vpop.permute.xlu0 %778  ;;  %v2695_v27 = vpop.permute.xlu1 %942 }
 0x42f   :  { %3330 = vst [vmem:[#allocation62_spill] sm:$0xff] %v2688_v8  ;;  %3332 = vst [vmem:[#allocation63_spill] sm:$0xff] %v2695_v27 }
 0x431   :  { %1660 = vrot.lane.b32.xlu0 %v1659_v7, %s1902_s22  ;;  %1332 = vrot.lane.b32.xlu1 %v1331_v34, %s1902_s22 }
 0x435   :  { %1496 = vrot.lane.b32.xlu1 %v1495_v19, %s1902_s22 }
 0x450   :  { %1067 = vmax.xlane.f32.xlu0 %v1066_v23 }
 0x454   :  { %1073 = vmax.xlane.f32.xlu0 %v1072_v58 }
 0x458   :  { %1076 = vmax.xlane.f32.xlu0 %v1075_v50 }
 0x459   :  { %1070 = vmax.xlane.f32.xlu1 %v1069_v29 }
 0x45c   :  { %1082 = vmax.xlane.f32.xlu0 %v1081_v54  ;;  %v1154_v54 = vmul.f32 4.0, %v2482_v40 }
 0x45d   :  { %1079 = vmax.xlane.f32.xlu1 %v1078_v24  ;;  %v1130_v24 = vmul.f32 2.0, %v2482_v40 }
 0x461   :  { %1085 = vmax.xlane.f32.xlu1 %v1084_v32 }
 0x464   :  { %v1044_v22 = vpop.xlane.xlu0 %1043 }
 0x468   :  { %v1047_v41 = vpop.xlane.xlu0 %1046 }
 0x469   :  { %v1041_v30 = vpop.xlane.xlu1 %1040 }
 0x46a   :  { %v1090_v14 = vsel %vm3335_vm6, %v1089_v61, %v1041_v30  ;;  %vm3222_vm6 = vcmask 97280   ;;  %v1132_v30 = vrot.slane %v1130_v24, 1 }
 0x46b   :  { %v1091_v48 = vsel %vm3336_vm10, %v1090_v14, %v1044_v22  ;;  %vm3337_vm10 = vcmask 297993  }
 0x46c   :  { %v1053_v26 = vpop.xlane.xlu0 %1052  ;;  %v1092_v21 = vsel %vm260_vm13, %v1091_v48, %v1047_v41  ;;  %v1318_v41 = vmul.f32 4.0, %v2494_v11 }
 0x46d   :  { %v1050_v38 = vpop.xlane.xlu1 %1049 }
 0x46e   :  { %v1093_v33 = vsel %vm262_vm0, %v1092_v21, %v1050_v38  ;;  %v1622_v21 = vmul.f32 2.0, %v2586_v44 }
 0x46f   :  { %v1094_v12 = vsel %vm264_vm12, %v1093_v33, %v1053_v26  ;;  %v1646_v26 = vmul.f32 4.0, %v2586_v44 }
 0x470   :  { %v1059_v59 = vpop.xlane.xlu0 %1058 }
 0x471   :  { %v1056_v42 = vpop.xlane.xlu1 %1055 }
 0x472   :  { %v1095_v35 = vsel %vm266_vm7, %v1094_v12, %v1056_v42 }
 0x473   :  { %v1096_v34 = vsel %vm3224_vm8, %v1095_v35, %v1059_v59  ;;  %v1134_v35 = vsub.f32 %v2482_v40, %v1132_v30 }
 0x474   :  { %v1065_v19 = vpop.xlane.xlu0 %1064 }
 0x475   :  { %v1062_v7 = vpop.xlane.xlu1 %1061 }
 0x476   :  { %v1097_v23 = vsel %vm3223_vm1, %v1096_v34, %v1062_v7  ;;  %vm3227_vm1 = vcmask 105472  }
 0x477   :  { %v2710_v58 = vsel %vm3222_vm6, %v1097_v23, %v1065_v19  ;;  %v1296_v19 = vrot.slane %v1294_v52, 1 }
 0x478   :  { %v1307_v32 = vpop.permute.xlu0 %1306 }
 0x479   :  { %v1143_v50 = vpop.permute.xlu1 %1142  ;;  %v1309_v38 = vsub.f32 %v1294_v52, %v1307_v32  ;;  %v1319_v12 = vsub.f32 %v1318_v41, %v1307_v32  ;;  %v1298_v32 = vsub.f32 %v2494_v11, %v1296_v19 }
 0x47a   :  { %v1155_v13 = vsub.f32 %v1154_v54, %v1143_v50  ;;  %v1145_v22 = vsub.f32 %v1130_v24, %v1143_v50  ;;  %v1136_v50 = vrot.slane %v2482_v40, 2 }
 0x47b   :  { %v1310_v23 = vmul.f32 0.16666667, %v1309_v38 }
 0x47c   :  { %v1156_v14 = vmul.f32 0.33333334, %v1155_v13  ;;  %v1146_v48 = vmul.f32 0.16666667, %v1145_v22  ;;  %v1160_v33 = vpop.permute.xlu0 %1159  ;;  %v1320_v13 = vmul.f32 0.33333334, %v1319_v12  ;;  %v1138_v28 = vadd.f32 %v1136_v50, %v1134_v35 }
 0x47d   :  { %v1635_v29 = vpop.permute.xlu1 %1634  ;;  %v1337_v35 = vrot.slane %v1310_v23, 4 }
 0x47e   :  { %v1647_v59 = vsub.f32 %v1646_v26, %v1635_v29  ;;  %v1637_v42 = vsub.f32 %v1622_v21, %v1635_v29  ;;  %v1162_v34 = vadd.f32 %v1160_v33, %v1146_v48  ;;  %v1164_v7 = vrot.slane %v1156_v14, 2 }
 0x47f   :  { %v1624_v29 = vrot.slane %v1622_v21, 1  ;;  %v1328_v26 = vrot.slane %v1320_v13, 2  ;;  %v1173_v14 = vrot.slane %v1146_v48, 4  ;;  %v1300_v33 = vrot.slane %v2494_v11, 2 }
 0x480   :  { %v1648_v22 = vmul.f32 0.33333334, %v1647_v59  ;;  %v1638_v27 = vmul.f32 0.16666667, %v1637_v42  ;;  %v1166_v56 = vadd.f32 %v1164_v7, %v1162_v34  ;;  %v1139_v2 = vmul.f32 -0.5, %v1138_v28 }
 0x481   :  { %v2716_v61 = vpop.permute.xlu1 %1470  ;;  %v1302_v42 = vadd.f32 %v1300_v33, %v1298_v32  ;;  %v1626_v50 = vsub.f32 %v2586_v44, %v1624_v29  ;;  %v1628_v48 = vrot.slane %v2586_v44, 2 }
 0x482   :  { %v1656_v38 = vrot.slane %v1648_v22, 2 }
 0x485   :  { %v1324_v54 = vpop.permute.xlu1 %1323 }
 0x486   :  { %v1326_v8 = vadd.f32 %v1324_v54, %v1310_v23  ;;  %v1665_v54 = vrot.slane %v1638_v27, 4  ;;  %v1181_v23 = vrot.slane %v2482_v40, 1 }
 0x488   :  { %v1330_v12 = vadd.f32 %v1328_v26, %v1326_v8  ;;  %v1303_v8 = vmul.f32 -0.5, %v1302_v42 }
 0x49b   :  { %v1652_v24 = vpop.permute.xlu0 %1651 }
 0x49c   :  { %v1654_v15 = vadd.f32 %v1652_v24, %v1638_v27  ;;  %v1304_v27 = vadd.f32 %v1303_v8, %v2099_v62 }
 0x49e   :  { %v1658_v59 = vadd.f32 %v1656_v38, %v1654_v15  ;;  %v1630_v15 = vadd.f32 %v1628_v48, %v1626_v50  ;;  %v1345_v50 = vrot.slane %v2494_v11, 1 }
 0x49f   :  { %v1488_v41 = vpop.permute.xlu1 %1487  ;;  %v1169_v30 = vpop.permute.xlu0 %1168 }
 0x4a0   :  { %v1171_v52 = vadd.f32 %v1169_v30, %v1166_v56  ;;  %v1140_v56 = vadd.f32 %v1139_v2, %v2099_v62  ;;  %v1458_v2 = vmul.f32 2.0, %v2596_v63  ;;  %v1631_v38 = vmul.f32 -0.5, %v1630_v15 }
 0x4a2   :  { %v1175_v47 = vadd.f32 %v1173_v14, %v1171_v52  ;;  %v1482_v14 = vmul.f32 4.0, %v2596_v63  ;;  %v1460_v11 = vrot.slane %v1458_v2, 1 }
 0x4a3   :  { %v1333_v34 = vpop.permute.xlu1 %1332  ;;  %v1661_v7 = vpop.permute.xlu0 %1660 }
 0x4a4   :  { %v1176_v21 = vadd.f32 %v1175_v47, %v2097_v57  ;;  %v1335_v19 = vadd.f32 %v1333_v34, %v1330_v12  ;;  %v1663_v24 = vadd.f32 %v1661_v7, %v1658_v59  ;;  %v1473_v12 = vsub.f32 %v1458_v2, %v2716_v61 }
 0x4a5   :  { %v1483_v40 = vsub.f32 %v1482_v14, %v2716_v61  ;;  %v1632_v34 = vadd.f32 %v1631_v38, %v2099_v62  ;;  %v1464_v38 = vrot.slane %v2596_v63, 2 }
 0x4a6   :  { %v1178_v13 = vrot.slane %v1176_v21, 7  ;;  %v1339_v28 = vadd.f32 %v1337_v35, %v1335_v19  ;;  %v1667_v22 = vadd.f32 %v1665_v54, %v1663_v24  ;;  %v1474_v19 = vmul.f32 0.16666667, %v1473_v12 }
 0x4a7   :  { %v1484_v21 = vmul.f32 0.33333334, %v1483_v40 }
 0x4a8   :  { %v1180_v32 = vmax.f32 %v1140_v56, %v1178_v13  ;;  %v1340_v29 = vadd.f32 %v1339_v28, %v2097_v57  ;;  %v1668_v47 = vadd.f32 %v1667_v22, %v2097_v57  ;;  %v1490_v48 = vadd.f32 %v1488_v41, %v1474_v19 }
 0x4a9   :  { %v1673_v13 = vrot.slane %v2586_v44, 1  ;;  %v1492_v22 = vrot.slane %v1484_v21, 2  ;;  %v1462_v44 = vsub.f32 %v2596_v63, %v1460_v11  ;;  %v1501_v41 = vrot.slane %v1474_v19, 4 }
 0x4aa   :  { %v1183_v30 = vmax.f32 %v1180_v32, %v1181_v23  ;;  %v1342_v26 = vrot.slane %v1340_v29, 7  ;;  %v1670_v42 = vrot.slane %v1668_v47, 7  ;;  %v1497_v23 = vpop.permute.xlu1 %1496 }
 0x4ab   :  { %v1494_v32 = vadd.f32 %v1492_v22, %v1490_v48 }
 0x4ac   :  { %v1184_v52 = vsel %vm3337_vm10, %v1183_v30, -inf  ;;  %v1344_v59 = vmax.f32 %v1304_v27, %v1342_v26  ;;  %v1672_v24 = vmax.f32 %v1632_v34, %v1670_v42  ;;  %vm3338_vm10 = vcmask 296969  }
 0x4ad   :  { %v1185_v33 = vrot.slane %v1184_v52, 4  ;;  %vm3340_vm6 = vmmov %vm3338_vm10  ;;  %v1499_v47 = vadd.f32 %v1497_v23, %v1494_v32 }
 0x4ae   :  { %v1347_v54 = vmax.f32 %v1344_v59, %v1345_v50  ;;  %v1675_v8 = vmax.f32 %v1672_v24, %v1673_v13 }
 0x4af   :  { %v1186_v35 = vmax.f32 %v1184_v52, %v1185_v33  ;;  %v1503_v2 = vadd.f32 %v1501_v41, %v1499_v47  ;;  %v1466_v33 = vadd.f32 %v1464_v38, %v1462_v44 }
 0x4b0   :  { %v1348_v61 = vsel %vm3338_vm10, %v1347_v54, -inf  ;;  %v1676_v26 = vsel %vm3340_vm6, %v1675_v8, -inf  ;;  %vm3341_vm10 = vcmask 39952   ;;  %vm3343_vm6 = vcmask 269552  }
 0x4b1   :  { %v1187_v7 = vrot.slane %v1186_v35, 2  ;;  %v1349_v29 = vrot.slane %v1348_v61, 4  ;;  %v1677_v14 = vrot.slane %v1676_v26, 4  ;;  %v1504_v42 = vadd.f32 %v1503_v2, %v2097_v57 }
 0x4b2   :  { %v1509_v57 = vrot.slane %v2596_v63, 1 }
 0x4b3   :  { %v1188_v56 = vmax.f32 %v1186_v35, %v1187_v7  ;;  %v1350_v27 = vmax.f32 %v1348_v61, %v1349_v29  ;;  %v1678_v40 = vmax.f32 %v1676_v26, %v1677_v14  ;;  %v1467_v35 = vmul.f32 -0.5, %v1466_v33 }
 0x4b4   :  { %v1506_v21 = vrot.slane %v1504_v42, 7 }
 0x4b5   :  { %v1189_v28 = vrot.slane %v1188_v56, 1  ;;  %v1351_v12 = vrot.slane %v1350_v27, 2  ;;  %v1679_v34 = vrot.slane %v1678_v40, 2  ;;  %v1468_v19 = vadd.f32 %v1467_v35, %v2099_v62 }
 0x4b7   :  { %v2741_v15 = vmax.f32 %v1188_v56, %v1189_v28  ;;  %v1352_v50 = vmax.f32 %v1350_v27, %v1351_v12  ;;  %v1680_v24 = vmax.f32 %v1678_v40, %v1679_v34  ;;  %v1508_v48 = vmax.f32 %v1468_v19, %v1506_v21 }
 0x4b9   :  { %v1191_v30 = vsel %vm3339_vm3, %v2741_v15, -inf  ;;  %v1194_v52 = vsel %vm3341_vm10, %v2741_v15, -inf  ;;  %vm3342_vm3 = vcmask 48160   ;;  %v1239_v7 = vsel %vm3343_vm6, %v2741_v15, -inf }
 0x4ba   :  { %1192 = vmax.xlane.f32.xlu1 %v1191_v30  ;;  %v1197_v59 = vsel %vm3342_vm3, %v2741_v15, -inf  ;;  %v1353_v54 = vrot.slane %v1352_v50, 1  ;;  %vm3344_vm10 = vcmask 277760   ;;  %v1681_v28 = vrot.slane %v1680_v24, 1 }
 0x4bb   :  { %v1242_v56 = vsel %vm3344_vm10, %v2741_v15, -inf  ;;  %v1245_v22 = vsel %vm243_vm5, %v2741_v15, -inf  ;;  %v1511_v61 = vmax.f32 %v1508_v48, %v1509_v57  ;;  %vm3345_vm3 = vmmov %vm3344_vm10  ;;  %vm3346_vm6 = vcmask 297993  }
 0x4bc   :  { %v2759_v13 = vmax.f32 %v1352_v50, %v1353_v54  ;;  %v2763_v8 = vmax.f32 %v1680_v24, %v1681_v28  ;;  %vm3347_vm10 = vcmask 269552   ;;  %vm3348_vm8 = vmmov %vm3345_vm3  ;;  %v1248_v41 = vsel %vm247_vm14, %v2741_v15, -inf }
 0x4bd   :  { %v1512_v23 = vsel %vm3346_vm6, %v1511_v61, -inf  ;;  %vm3225_vm6 = vcmask 121856   ;;  %v1212_v48 = vsel %vm199_vm2, %v2741_v15, -inf  ;;  %v1218_v57 = vsel %vm207_vm4, %v2741_v15, -inf }
 0x4be   :  { %1195 = vmax.xlane.f32.xlu1 %v1194_v52  ;;  %v1406_v62 = vsel %vm3345_vm3, %v2759_v13, -inf  ;;  %v1513_v11 = vrot.slane %v1512_v23, 4  ;;  %v1731_v63 = vsel %vm3347_vm10, %v2763_v8, -inf  ;;  %v1734_v30 = vsel %vm3348_vm8, %v2763_v8, -inf }
 0x4bf   :  { %v1409_v14 = vsel %vm243_vm5, %v2759_v13, -inf  ;;  %vm3226_vm3 = vcmask 113664   ;;  %v1737_v12 = vsel %vm243_vm5, %v2763_v8, -inf  ;;  %vm3349_vm8 = vcmask 7168  }
 0x4c0   :  { %v1514_v32 = vmax.f32 %v1512_v23, %v1513_v11  ;;  %v1412_v50 = vsel %vm247_vm14, %v2759_v13, -inf  ;;  %vm3350_vm10 = vcmask 15360  }
 0x4c2   :  { %1198 = vmax.xlane.f32.xlu1 %v1197_v59  ;;  %v1515_v47 = vrot.slane %v1514_v32, 2 }
 0x4c4   :  { %v1516_v27 = vmax.f32 %v1514_v32, %v1515_v47  ;;  %v1370_v47 = vsel %vm191_vm15, %v2759_v13, -inf }
 0x4c6   :  { %1240 = vmax.xlane.f32.xlu1 %v1239_v7  ;;  %v1517_v33 = vrot.slane %v1516_v27, 1 }
 0x4c8   :  { %v2785_v42 = vmax.f32 %v1516_v27, %v1517_v33  ;;  %v1704_v33 = vsel %vm199_vm2, %v2763_v8, -inf }
 0x4ca   :  { %1243 = vmax.xlane.f32.xlu1 %v1242_v56  ;;  %v1573_v54 = vsel %vm243_vm5, %v2785_v42, -inf  ;;  %v1206_v56 = vsel %vm191_vm15, %v2741_v15, -inf }
 0x4ce   :  { %1246 = vmax.xlane.f32.xlu1 %v1245_v22 }
 0x4d2   :  { %1407 = vmax.xlane.f32.xlu1 %v1406_v62 }
 0x4d6   :  { %1732 = vmax.xlane.f32.xlu1 %v1731_v63  ;;  %v1740_v63 = vsel %vm247_vm14, %v2763_v8, -inf }
 0x4d9   :  { %v1068_v29 = vpop.xlane.xlu0 %1067 }
 0x4da   :  { %v1099_v26 = vsel %vm3227_vm1, %v2710_v58, %v1068_v29  ;;  %1735 = vmax.xlane.f32.xlu1 %v1734_v30  ;;  %vm3359_vm1 = vcmask 23560   ;;  %v1576_v29 = vsel %vm247_vm14, %v2785_v42, -inf  ;;  %vm3362_vm14 = vcmask 130152  }
 0x4db   :  { %v1519_v11 = vsel %vm3359_vm1, %v2785_v42, -inf  ;;  %v1215_v27 = vsel %vm3362_vm14, %v2741_v15, -inf  ;;  %vm3368_vm14 = vcmask 39952  }
 0x4dd   :  { %v1074_v44 = vpop.xlane.xlu0 %1073 }
 0x4de   :  { %1249 = vmax.xlane.f32.xlu1 %v1248_v41  ;;  %v1698_v41 = vsel %vm191_vm15, %v2763_v8, -inf }
 0x4e1   :  { %v1077_v38 = vpop.xlane.xlu0 %1076 }
 0x4e2   :  { %v1071_v52 = vpop.xlane.xlu1 %1070  ;;  %1410 = vmax.xlane.f32.xlu1 %v1409_v14  ;;  %v1531_v14 = vsel %vm187_vm9, %v2785_v42, -inf }
 0x4e3   :  { %v1100_v2 = vsel %vm3226_vm3, %v1099_v26, %v1071_v52  ;;  %vm3352_vm3 = vcmask 277760   ;;  %v1203_v26 = vsel %vm187_vm9, %v2741_v15, -inf  ;;  %v1355_v52 = vsel %vm3359_vm1, %v2759_v13, -inf }
 0x4e4   :  { %v2780_v58 = vsel %vm3225_vm6, %v1100_v2, %v1074_v44  ;;  %vm3351_vm6 = vcmask 23552   ;;  %v1570_v19 = vsel %vm3352_vm3, %v2785_v42, -inf  ;;  %vm3354_vm3 = vcmask 39952  }
 0x4e5   :  { %v1083_v35 = vpop.xlane.xlu0 %1082  ;;  %v1358_v28 = vsel %vm3354_vm3, %v2759_v13, -inf  ;;  %vm3355_vm5 = vmmov %vm3354_vm3  ;;  %vm3360_vm3 = vcmask 64552   ;;  %v1209_v44 = vsel %vm195_vm11, %v2741_v15, -inf }
 0x4e6   :  { %v1080_v40 = vpop.xlane.xlu1 %1079  ;;  %1738 = vmax.xlane.f32.xlu1 %v1737_v12  ;;  %v1686_v22 = vsel %vm3355_vm5, %v2763_v8, -inf  ;;  %v1692_v32 = vsel %vm3360_vm3, %v2763_v8, -inf }
 0x4e7   :  { %v1102_v59 = vsel %vm3349_vm8, %v1077_v38, %v1080_v40  ;;  %vm3353_vm8 = vcmask 64552   ;;  %v1376_v38 = vsel %vm199_vm2, %v2759_v13, -inf  ;;  %v1537_v40 = vsel %vm195_vm11, %v2785_v42, -inf }
 0x4e8   :  { %v1103_v7 = vsel %vm3350_vm10, %v1102_v59, %v1083_v35  ;;  %v1200_v24 = vsel %vm3353_vm8, %v2741_v15, -inf  ;;  %vm3357_vm10 = vcmask 48160  }
 0x4e9   :  { %v1689_v62 = vsel %vm3357_vm10, %v2763_v8, -inf  ;;  %vm3361_vm5 = vmmov %vm3357_vm10 }
 0x4ea   :  { %v1086_v34 = vpop.xlane.xlu1 %1085  ;;  %1413 = vmax.xlane.f32.xlu1 %v1412_v50  ;;  %v1525_v30 = vsel %vm3361_vm5, %v2785_v42, -inf  ;;  %vm3364_vm10 = vmmov %vm3361_vm5  ;;  %vm3367_vm5 = vcmask 7168  }
 0x4eb   :  { %v1104_v21 = vsel %vm3351_vm6, %v1103_v7, %v1086_v34  ;;  %vm3356_vm6 = vcmask 269552   ;;  %v1361_v12 = vsel %vm3364_vm10, %v2759_v13, -inf  ;;  %v431_v50 = vsel %vm3367_vm5, %v2368_v18, %v2386_v37  ;;  %vm3371_vm10 = vmmov %vm3367_vm5 }
 0x4ec   :  { %1106 = vrot.lane.b32.xlu0 %v1104_v21, %s1903_s30  ;;  %v1403_v61 = vsel %vm3356_vm6, %v2759_v13, -inf  ;;  %vm3358_vm8 = vmmov %vm3356_vm6  ;;  %v1522_v34 = vsel %vm3368_vm14, %v2785_v42, -inf  ;;  %v1540_v21 = vsel %vm199_vm2, %v2785_v42, -inf  ;;  %v1367_v18 = vsel %vm187_vm9, %v2759_v13, -inf }
 0x4ed   :  { %v1567_v23 = vsel %vm3358_vm8, %v2785_v42, -inf  ;;  %vm3363_vm6 = vmmov %vm3359_vm1  ;;  %vm3369_vm1 = vcmask 15360  }
 0x4ee   :  { %1571 = vmax.xlane.f32.xlu1 %v1570_v19  ;;  %v1683_v2 = vsel %vm3363_vm6, %v2763_v8, -inf  ;;  %vm3365_vm8 = vmmov %vm3360_vm3  ;;  %vm3366_vm3 = vcmask 187560   ;;  %v432_v7 = vsel %vm3369_vm1, %v431_v50, %v2396_v55  ;;  %vm3370_vm6 = vcmask 23552   ;;  %v3406_v50 = vld [vmem:[#allocation49_spill] sm:$0xff] }
 0x4ef   :  { %v1364_v59 = vsel %vm3365_vm8, %v2759_v13, -inf  ;;  %v1221_v35 = vsel %vm3366_vm3, %v2741_v15, -inf  ;;  %v433_v19 = vsel %vm3370_vm6, %v432_v7, %v2376_v31  ;;  %vm3372_vm8 = vcmask 31744   ;;  %vm3373_vm3 = vmmov %vm3367_vm5 }
 0x4f0   :  { %v434_v37 = vsel %vm3372_vm8, %v433_v19, %v2404_v20  ;;  %v595_v55 = vsel %vm3373_vm3, %v2462_v45, %v2444_v17  ;;  %vm3374_vm2 = vmmov %vm3369_vm1  ;;  %v1695_v17 = vsel %vm187_vm9, %v2763_v8, -inf  ;;  %vm3385_vm9 = vcmask 130152  }
 0x4f1   :  { %vm3375_vm5 = vmmov %vm3369_vm1  ;;  %vm3377_vm1 = vcmask 203952  }
 0x4f2   :  { %1574 = vmax.xlane.f32.xlu1 %v1573_v54  ;;  %v759_v54 = vsel %vm3371_vm10, %v2517_v36, %v2523_v4  ;;  %v596_v31 = vsel %vm3375_vm5, %v595_v55, %v2468_v51  ;;  %vm3376_vm14 = vmmov %vm3370_vm6  ;;  %v1224_v36 = vsel %vm3377_vm1, %v2741_v15, -inf  ;;  %vm3378_vm6 = vcmask 39936   ;;  %v3411_v55 = vld [vmem:[#allocation39_spill] sm:$0xff] }
 0x4f3   :  { %v597_v4 = vsel %vm3376_vm14, %v596_v31, %v2479_v60  ;;  %v435_v20 = vsel %vm3378_vm6, %v434_v37, %v2384_v46  ;;  %vm3379_vm10 = vmmov %vm3376_vm14  ;;  %v1701_v31 = vsel %vm195_vm11, %v2763_v8, -inf }
 0x4f4   :  { %vm3380_vm8 = vmmov %vm3373_vm3  ;;  %v436_v45 = vsel %vm260_vm13, %v435_v20, %v2412_v0  ;;  %vm3381_vm3 = vcmask 31744   ;;  %v3413_v20 = vld [vmem:[#allocation25_spill] sm:$0xff] }
 0x4f5   :  { %vm3382_vm5 = vmmov %vm3381_vm3  ;;  %v437_v0 = vsel %vm262_vm0, %v436_v45, %v2394_v53  ;;  %v3417_v45 = vld [vmem:[#allocation53_spill] sm:$0xff] }
 0x4f6   :  { %1201 = vmax.xlane.f32.xlu1 %v1200_v24  ;;  %v760_v24 = vsel %vm3374_vm2, %v759_v54, %v2527_v1  ;;  %v923_v1 = vsel %vm3380_vm8, %v2554_v25, %v2560_v39  ;;  %vm3383_vm14 = vmmov %vm3379_vm10  ;;  %v1543_v39 = vsel %vm3385_vm9, %v2785_v42, -inf  ;;  %v1546_v54 = vsel %vm207_vm4, %v2785_v42, -inf }
 0x4f7   :  { %v924_v46 = vsel %vm3374_vm2, %v923_v1, %v2556_v10  ;;  %vm3384_vm1 = vmmov %vm3378_vm6  ;;  %vm3395_vm2 = vcmask 212160   ;;  %vm3414_vm9 = vcmask 97280   ;;  %v3415_v1 = vld [vmem:[#allocation42_spill] sm:$0xff] }
 0x4f8   :  { %v925_v25 = vsel %vm3383_vm14, %v924_v46, %v2558_v5  ;;  %vm3386_vm6 = vmmov %vm3384_vm1  ;;  %v3388_v5 = vld [vmem:[#allocation38_spill] sm:$0xff]  ;;  %vm3407_vm14 = vcmask 7168  }
 0x4f9   :  { %vm3390_vm8 = vmmov %vm3381_vm3 }
 0x4fa   :  { %1207 = vmax.xlane.f32.xlu1 %v1206_v56  ;;  %v761_v56 = vsel %vm3379_vm10, %v760_v24, %v2519_v43  ;;  %v598_v43 = vsel %vm3382_vm5, %v597_v4, %v2452_v49  ;;  %vm3387_vm10 = vcmask 64552   ;;  %v438_v49 = vsel %vm264_vm12, %v437_v0, %v2420_v3  ;;  %v3412_v4 = vld [vmem:[#allocation10_spill] sm:$0xff] }
 0x4fb   :  { %v762_v51 = vsel %vm3381_vm3, %v761_v56, %v2531_v9  ;;  %v599_v60 = vsel %vm3384_vm1, %v598_v43, %v2491_v6  ;;  %v1528_v10 = vsel %vm3387_vm10, %v2785_v42, -inf  ;;  %v3389_v6 = vld [vmem:[#allocation48_spill] sm:$0xff]  ;;  %vm3393_vm3 = vmmov %vm3384_vm1  ;;  %v1227_v3 = vsel %vm3395_vm2, %v2741_v15, -inf  ;;  %v3418_v43 = vld [vmem:[#allocation15_spill] sm:$0xff] }
 0x4fc   :  { %v763_v9 = vsel %vm3386_vm6, %v762_v51, %v2525_v16  ;;  %vm3401_vm5 = vcmask 80896   ;;  %vm3410_vm1 = vcmask 89088   ;;  %v3421_v0 = vld [vmem:[#allocation50_spill] sm:$0xff]  ;;  %vm3427_vm2 = vcmask 105472  }
 0x4fd   :  { %vm3416_vm6 = vmmov %vm3401_vm5 }
 0x4fe   :  { %1213 = vmax.xlane.f32.xlu1 %v1212_v48  ;;  %v764_v48 = vsel %vm260_vm13, %v763_v9, %v3388_v5  ;;  %vm3420_vm10 = vmmov %vm3401_vm5 }
 0x502   :  { %1219 = vmax.xlane.f32.xlu1 %v1218_v57  ;;  %v926_v57 = vsel %vm3390_vm8, %v925_v25, %v3389_v6  ;;  %vm3424_vm8 = vmmov %vm3410_vm1  ;;  %v3426_v6 = vld [vmem:[#allocation22_spill] sm:$0xff] }
 0x506   :  { %1359 = vmax.xlane.f32.xlu1 %v1358_v28 }
 0x50a   :  { %1687 = vmax.xlane.f32.xlu1 %v1686_v22  ;;  %v3391_v22 = vld [vmem:[#allocation27_spill] sm:$0xff] }
 0x50b   :  { %1404 = vmax.xlane.f32.xlu0 %v1403_v61  ;;  %v600_v53 = vsel %vm260_vm13, %v599_v60, %v3391_v22  ;;  %v3392_v61 = vld [vmem:[#allocation47_spill] sm:$0xff]  ;;  %v3419_v60 = vld [vmem:[#allocation29_spill] sm:$0xff] }
 0x50c   :  { %v927_v16 = vsel %vm3393_vm3, %v926_v57, %v3392_v61  ;;  %vm3425_vm3 = vcmask 228552   ;;  %v3430_v61 = vld [vmem:[#allocation12_spill] sm:$0xff] }
 0x50e   :  { %1690 = vmax.xlane.f32.xlu1 %v1689_v62  ;;  %v3394_v62 = vld [vmem:[#allocation32_spill] sm:$0xff] }
 0x50f   :  { %1568 = vmax.xlane.f32.xlu0 %v1567_v23  ;;  %v601_v23 = vsel %vm262_vm0, %v600_v53, %v3394_v62  ;;  %v1534_v53 = vsel %vm191_vm15, %v2785_v42, -inf  ;;  %v3432_v62 = vld [vmem:[#allocation26_spill] sm:$0xff]  ;;  %vm3439_vm15 = vmmov %vm3414_vm9 }
 0x512   :  { %1520 = vmax.xlane.f32.xlu1 %v1519_v11  ;;  %v3396_v11 = vld [vmem:[#allocation20_spill] sm:$0xff] }
 0x513   :  { %1741 = vmax.xlane.f32.xlu0 %v1740_v63  ;;  %v439_v63 = vsel %vm266_vm7, %v438_v49, %v3396_v11  ;;  %v3423_v49 = vld [vmem:[#allocation34_spill] sm:$0xff] }
 0x516   :  { %1693 = vmax.xlane.f32.xlu1 %v1692_v32  ;;  %v3397_v32 = vld [vmem:[#allocation37_spill] sm:$0xff] }
 0x517   :  { %1577 = vmax.xlane.f32.xlu0 %v1576_v29  ;;  %v765_v29 = vsel %vm262_vm0, %v764_v48, %v3397_v32  ;;  %v1230_v48 = vsel %vm3425_vm3, %v2741_v15, -inf  ;;  %vm3444_vm3 = vcmask 187560  }
 0x51a   :  { %1526 = vmax.xlane.f32.xlu1 %v1525_v30  ;;  %v1373_v30 = vsel %vm195_vm11, %v2759_v13, -inf  ;;  %vm3422_vm11 = vcmask 15360  }
 0x51b   :  { %1204 = vmax.xlane.f32.xlu0 %v1203_v26  ;;  %v3398_v26 = vld [vmem:[#allocation9_spill] sm:$0xff] }
 0x51e   :  { %1371 = vmax.xlane.f32.xlu1 %v1370_v47  ;;  %v3399_v47 = vld [vmem:[#allocation11_spill] sm:$0xff] }
 0x51f   :  { %1210 = vmax.xlane.f32.xlu0 %v1209_v44  ;;  %v261_v44 = vsel %vm260_vm13, %v3399_v47, %v3398_v26  ;;  %v3438_v47 = vld [vmem:[#allocation30_spill] sm:$0xff] }
 0x522   :  { %1699 = vmax.xlane.f32.xlu1 %v1698_v41  ;;  %v3400_v41 = vld [vmem:[#allocation24_spill] sm:$0xff] }
 0x523   :  { %1216 = vmax.xlane.f32.xlu0 %v1215_v27  ;;  %v440_v27 = vsel %vm3401_vm5, %v439_v63, %v3400_v41  ;;  %vm3429_vm5 = vmmov %vm3410_vm1  ;;  %v3435_v63 = vld [vmem:[#allocation56_spill] sm:$0xff] }
 0x524   :  { %v3440_v41 = vld [vmem:[#allocation52_spill] sm:$0xff] }
 0x526   :  { %1532 = vmax.xlane.f32.xlu1 %v1531_v14  ;;  %v3402_v14 = vld [vmem:[#allocation40_spill] sm:$0xff] }
 0x527   :  { %1356 = vmax.xlane.f32.xlu0 %v1355_v52  ;;  %v766_v52 = vsel %vm264_vm12, %v765_v29, %v3402_v14  ;;  %v3442_v14 = vld [vmem:[#allocation35_spill] sm:$0xff] }
 0x528   :  { %v767_v24 = vsel %vm266_vm7, %v766_v52, %v3411_v55  ;;  %v3455_v55 = vld [vmem:[#allocation18_spill] sm:$0xff] }
 0x52a   :  { %1377 = vmax.xlane.f32.xlu1 %v1376_v38  ;;  %v3403_v38 = vld [vmem:[#allocation51_spill] sm:$0xff] }
 0x52b   :  { %1684 = vmax.xlane.f32.xlu0 %v1683_v2  ;;  %v928_v2 = vsel %vm260_vm13, %v927_v16, %v3403_v38  ;;  %v1549_v38 = vsel %vm3444_vm3, %v2785_v42, -inf }
 0x52e   :  { %1705 = vmax.xlane.f32.xlu1 %v1704_v33 }
 0x52f   :  { %1362 = vmax.xlane.f32.xlu0 %v1361_v12  ;;  %v3404_v12 = vld [vmem:[#allocation13_spill] sm:$0xff] }
 0x532   :  { %1538 = vmax.xlane.f32.xlu1 %v1537_v40  ;;  %v263_v40 = vsel %vm262_vm0, %v261_v44, %v3404_v12  ;;  %v3446_v12 = vld [vmem:[#allocation23_spill] sm:$0xff] }
 0x533   :  { %1365 = vmax.xlane.f32.xlu0 %v1364_v59  ;;  %v3405_v59 = vld [vmem:[#allocation28_spill] sm:$0xff] }
 0x536   :  { %1222 = vmax.xlane.f32.xlu1 %v1221_v35  ;;  %v602_v35 = vsel %vm264_vm12, %v601_v23, %v3405_v59 }
 0x537   :  { %1523 = vmax.xlane.f32.xlu0 %v1522_v34  ;;  %v929_v34 = vsel %vm262_vm0, %v928_v2, %v3406_v50  ;;  %v3445_v2 = vld [vmem:[#allocation44_spill] sm:$0xff] }
 0x538   :  { %v930_v51 = vsel %vm264_vm12, %v929_v34, %v3417_v45  ;;  %v3450_v34 = vld [vmem:[#allocation45_spill] sm:$0xff] }
 0x539   :  { %v931_v9 = vsel %vm266_vm7, %v930_v51, %v3421_v0  ;;  %v3464_v45 = vld [vmem:[#allocation61_spill] sm:$0xff] }
 0x53a   :  { %1541 = vmax.xlane.f32.xlu1 %v1540_v21  ;;  %v3408_v21 = vld [vmem:[#allocation33_spill] sm:$0xff]  ;;  %v932_v32 = vsel %vm3416_vm6, %v931_v9, %v3435_v63  ;;  %v3469_v9 = vld [vmem:[#allocation58_spill] sm:$0xff] }
 0x53b   :  { %1368 = vmax.xlane.f32.xlu0 %v1367_v18  ;;  %v603_v19 = vsel %vm266_vm7, %v602_v35, %v3408_v21  ;;  %v3409_v18 = vld [vmem:[#allocation21_spill] sm:$0xff]  ;;  %v3449_v35 = vld [vmem:[#allocation14_spill] sm:$0xff] }
 0x53c   :  { %v441_v37 = vsel %vm3410_vm1, %v440_v27, %v3409_v18  ;;  %vm3433_vm1 = vcmask 113664   ;;  %v3452_v21 = vld [vmem:[#allocation57_spill] sm:$0xff] }
 0x53d   :  { %v442_v56 = vsel %vm3414_vm9, %v441_v37, %v3413_v20 }
 0x53e   :  { %1225 = vmax.xlane.f32.xlu1 %v1224_v36  ;;  %v265_v36 = vsel %vm264_vm12, %v263_v40, %v3412_v4  ;;  %v443_v57 = vsel %vm3427_vm2, %v442_v56, %v3426_v6  ;;  %v3461_v56 = vld [vmem:[#allocation36_spill] sm:$0xff] }
 0x53f   :  { %1696 = vmax.xlane.f32.xlu0 %v1695_v17  ;;  %v768_v17 = vsel %vm3416_vm6, %v767_v24, %v3415_v1  ;;  %v267_v25 = vsel %vm266_vm7, %v265_v36, %v3418_v43  ;;  %v444_v23 = vsel %vm3433_vm1, %v443_v57, %v3432_v62  ;;  %vm3448_vm1 = vcmask 130152   ;;  %v3459_v36 = vld [vmem:[#allocation54_spill] sm:$0xff]  ;;  %v3471_v57 = vld [vmem:[#allocation19_spill] sm:$0xff] }
 0x540   :  { %v1379_v59 = vsel %vm3448_vm1, %v2759_v13, -inf  ;;  %v3465_v43 = vld [vmem:[#allocation46_spill] sm:$0xff] }
 0x542   :  { %1544 = vmax.xlane.f32.xlu1 %v1543_v39  ;;  %v604_v39 = vsel %vm3420_vm10, %v603_v19, %v3419_v60  ;;  %vm3437_vm10 = vmmov %vm3429_vm5  ;;  %v1707_v60 = vsel %vm3448_vm1, %v2763_v8, -inf  ;;  %vm1796_vm1 = vcmask 1043456  }
 0x543   :  { %v1193_v28 = vpop.xlane.xlu1 %1192  ;;  %1529 = vmax.xlane.f32.xlu0 %v1528_v10  ;;  %v605_v5 = vsel %vm3424_vm8, %v604_v39, %v3423_v49  ;;  %vm3443_vm8 = vmmov %vm3427_vm2  ;;  %v3467_v39 = vld [vmem:[#allocation16_spill] sm:$0xff] }
 0x544   :  { %v606_v44 = vsel %vm3439_vm15, %v605_v5, %v3438_v47  ;;  %vm3456_vm15 = vmmov %vm3427_vm2  ;;  %v3470_v5 = vld [vmem:[#allocation62_spill] sm:$0xff] }
 0x545   :  { %v607_v52 = vsel %vm3443_vm8, %v606_v44, %v3442_v14  ;;  %vm3460_vm8 = vmmov %vm3427_vm2 }
 0x546   :  { %1228 = vmax.xlane.f32.xlu1 %v1227_v3  ;;  %v3434_v3 = vld [vmem:[#allocation43_spill] sm:$0xff] }
 0x547   :  { %v1196_v33 = vpop.xlane.xlu1 %1195  ;;  %1374 = vmax.xlane.f32.xlu0 %v1373_v30  ;;  %v3436_v30 = vld [vmem:[#allocation17_spill] sm:$0xff] }
 0x548   :  { %v1251_v7 = vsel %vm3407_vm14, %v1193_v28, %v1196_v33  ;;  %v3428_v28 = vld [vmem:[#allocation41_spill] sm:$0xff]  ;;  %vm3431_vm14 = vmmov %vm3416_vm6  ;;  %vm3451_vm6 = vcmask 113664  }
 0x549   :  { %v769_v22 = vsel %vm3429_vm5, %v768_v17, %v3428_v28  ;;  %v269_v16 = vsel %vm3431_vm14, %v267_v25, %v3430_v61  ;;  %vm3447_vm14 = vcmask 121856   ;;  %v3475_v61 = vld [vmem:[#allocation59_spill] sm:$0xff] }
 0x54a   :  { %1547 = vmax.xlane.f32.xlu1 %v1546_v54  ;;  %v770_v11 = vsel %vm3414_vm9, %v769_v22, %v3434_v3  ;;  %v271_v26 = vsel %vm3437_vm10, %v269_v16, %v3436_v30  ;;  %v445_v40 = vsel %vm3447_vm14, %v444_v23, %v3446_v12  ;;  %vm3453_vm10 = vmmov %vm3414_vm9  ;;  %v3454_v54 = vld [vmem:[#allocation60_spill] sm:$0xff]  ;;  %v3473_v22 = vld [vmem:[#allocation55_spill] sm:$0xff]  ;;  %v1382_v30 = vsel %vm207_vm4, %v2759_v13, -inf }
 0x54b   :  { %v1199_v46 = vpop.xlane.xlu1 %1198  ;;  %1702 = vmax.xlane.f32.xlu0 %v1701_v31  ;;  %v771_v33 = vsel %vm3427_vm2, %v770_v11, %v3445_v2  ;;  %v273_v50 = vsel %vm3414_vm9, %v271_v26, %v3449_v35  ;;  %v3457_v31 = vld [vmem:[#allocation31_spill] sm:$0xff]  ;;  %vm3462_vm3 = vmmov %vm3447_vm14  ;;  %vm3463_vm2 = vcmask 236760  }
 0x54c   :  { %v2971_v10 = vsel %vm3422_vm11, %v1251_v7, %v1199_v46  ;;  %vm3441_vm11 = vmmov %vm3429_vm5  ;;  %vm287_vm5 = vcmask 130048   ;;  %v772_v7 = vsel %vm3451_vm6, %v771_v33, %v3450_v34  ;;  %v275_v24 = vsel %vm3456_vm15, %v273_v50, %v3455_v55  ;;  %v3477_v11 = vld [vmem:[#allocation63_spill] sm:$0xff] }
 0x54d   :  { %v933_v27 = vsel %vm3441_vm11, %v932_v32, %v3440_v41  ;;  %v453_v18 = vsel %vm287_vm5, %v445_v40, %v3454_v54  ;;  %vm3458_vm11 = vmmov %vm3451_vm6  ;;  %v1233_v17 = vsel %vm3463_vm2, %v2741_v15, -inf  ;;  %vm1794_vm2 = vcmask 1042432  }
 0x54e   :  { %1231 = vmax.xlane.f32.xlu1 %v1230_v48  ;;  %v934_v19 = vsel %vm3453_vm10, %v933_v27, %v3452_v21  ;;  %v608_v4 = vsel %vm3458_vm11, %v607_v52, %v3457_v31  ;;  %v1767_v46 = vrot.slane %v453_v18, 7  ;;  %vm3466_vm14 = vmmov %vm3462_vm3  ;;  %vm1790_vm10 = vcmask 1040384  }
 0x54f   :  { %v2991_v29 = vpop.xlane.xlu1 %1240  ;;  %1535 = vmax.xlane.f32.xlu0 %v1534_v53  ;;  %v935_v20 = vsel %vm3460_vm8, %v934_v19, %v3459_v36  ;;  %v609_v1 = vsel %vm3462_vm3, %v608_v4, %v3461_v56  ;;  %v773_v25 = vsel %vm3466_vm14, %v772_v7, %v3465_v43  ;;  %vm3468_vm9 = vmmov %vm3451_vm6  ;;  %vm1792_vm8 = vcmask 1041408  }
 0x550   :  { %v617_v51 = vsel %vm287_vm5, %v609_v1, %v3464_v45  ;;  %v277_v0 = vsel %vm3468_vm9, %v275_v24, %v3467_v39  ;;  %v936_v49 = vsel %vm3451_vm6, %v935_v20, %v3469_v9  ;;  %v781_v48 = vsel %vm287_vm5, %v773_v25, %v3470_v5  ;;  %vm3472_vm15 = vmmov %vm3462_vm3 }
 0x551   :  { %v279_v28 = vsel %vm3472_vm15, %v277_v0, %v3471_v57  ;;  %vm3474_vm11 = vmmov %vm3462_vm3  ;;  %v1770_v62 = vrot.slane %v617_v51, 6  ;;  %vm3476_vm3 = vcmask 203952   ;;  %v1773_v32 = vrot.slane %v781_v48, 5 }
 0x552   :  { %1550 = vmax.xlane.f32.xlu1 %v1549_v38  ;;  %v937_v53 = vsel %vm3474_vm11, %v936_v49, %v3473_v22  ;;  %v288_v16 = vsel %vm287_vm5, %v279_v28, %v3475_v61  ;;  %v1552_v23 = vsel %vm3476_vm3, %v2785_v42, -inf  ;;  %vm3478_vm14 = vcmask 253160  }
 0x553   :  { %v3017_v37 = vpop.xlane.xlu1 %1243  ;;  %1380 = vmax.xlane.f32.xlu0 %v1379_v59  ;;  %v1791_v3 = vsel %vm1790_vm10, %v288_v16, %v1767_v46  ;;  %v945_v63 = vsel %vm287_vm5, %v937_v53, %v3477_v11  ;;  %v1236_v41 = vsel %vm3478_vm14, %v2741_v15, -inf  ;;  %v1710_v52 = vsel %vm207_vm4, %v2763_v8, -inf  ;;  %vm3481_vm4 = vmmov %vm3478_vm14 }
 0x554   :  { %v1776_v47 = vrot.slane %v945_v63, 4  ;;  %v1793_v44 = vsel %vm1792_vm8, %v1791_v3, %v1770_v62  ;;  %vm1798_vm9 = vcmask 1044480   ;;  %vm3479_vm6 = vcmask 212160   ;;  %vm3483_vm8 = vmmov %vm3481_vm4 }
 0x555   :  { %v1795_v27 = vsel %vm1794_vm2, %v1793_v44, %v1773_v32  ;;  %v1555_v40 = vsel %vm3479_vm6, %v2785_v42, -inf  ;;  %vm3480_vm15 = vcmask 187560   ;;  %v1400_v50 = vsel %vm3481_vm4, %v2759_v13, -inf  ;;  %vm3484_vm2 = vmmov %vm3481_vm4 }
 0x556   :  { %1234 = vmax.xlane.f32.xlu1 %v1233_v17  ;;  %v1797_v12 = vsel %vm1796_vm1, %v1795_v27, %v1776_v47  ;;  %v1385_v15 = vsel %vm3480_vm15, %v2759_v13, -inf  ;;  %vm3482_vm11 = vmmov %vm3480_vm15  ;;  %v1728_v7 = vsel %vm3483_vm8, %v2763_v8, -inf  ;;  %v1388_v21 = vsel %vm3476_vm3, %v2759_v13, -inf }
 0x557   :  { %v3041_v6 = vpop.xlane.xlu1 %1246  ;;  %1708 = vmax.xlane.f32.xlu0 %v1707_v60  ;;  %v1564_v54 = vsel %vm3484_vm2, %v2785_v42, -inf  ;;  %vm3485_vm14 = vmmov %vm3476_vm3  ;;  %vm3490_vm4 = vcmask 23552  }
 0x558   :  { %v1716_v18 = vsel %vm3485_vm14, %v2763_v8, -inf  ;;  %vm3486_vm1 = vmmov %vm3479_vm6  ;;  %vm3488_vm6 = vcmask 228552   ;;  %vm3495_vm14 = vcmask 7168  }
 0x559   :  { %v1391_v24 = vsel %vm3486_vm1, %v2759_v13, -inf  ;;  %v1394_v20 = vsel %vm3488_vm6, %v2759_v13, -inf  ;;  %vm3489_vm15 = vmmov %vm3488_vm6 }
 0x55a   :  { %1553 = vmax.xlane.f32.xlu1 %v1552_v23  ;;  %v1722_v1 = vsel %vm3489_vm15, %v2763_v8, -inf  ;;  %vm3493_vm3 = vmmov %vm3488_vm6 }
 0x55b   :  { %v3056_v26 = vpop.xlane.xlu1 %1407  ;;  %1383 = vmax.xlane.f32.xlu0 %v1382_v30  ;;  %v1558_v60 = vsel %vm3493_vm3, %v2785_v42, -inf  ;;  %vm3498_vm6 = vmmov %vm3495_vm14 }
 0x55e   :  { %1237 = vmax.xlane.f32.xlu1 %v1236_v41  ;;  %v1107_v14 = vpop.permute.xlu0 %1106 }
 0x55f   :  { %v1109_v38 = vsel %vm287_vm5, %v2780_v58, %v1107_v14  ;;  %v1733_v2 = vpop.xlane.xlu1 %1732  ;;  %1711 = vmax.xlane.f32.xlu0 %v1710_v52  ;;  %v1713_v58 = vsel %vm3482_vm11, %v2763_v8, -inf  ;;  %vm3491_vm11 = vcmask 236760  }
 0x560   :  { %v1779_v33 = vrot.slane %v1109_v38, 3  ;;  %v1397_v51 = vsel %vm3491_vm11, %v2759_v13, -inf  ;;  %vm3492_vm8 = vmmov %vm3491_vm11 }
 0x561   :  { %v1725_v43 = vsel %vm3492_vm8, %v2763_v8, -inf  ;;  %vm3494_vm2 = vmmov %vm3492_vm8 }
 0x562   :  { %v3066_v59 = vsel %vm1798_vm9, %v1797_v12, %v1779_v33  ;;  %1556 = vmax.xlane.f32.xlu1 %v1555_v40  ;;  %vm3487_vm9 = vmmov %vm3486_vm1  ;;  %v1561_v0 = vsel %vm3494_vm2, %v2785_v42, -inf  ;;  %vm3496_vm1 = vcmask 15360  }
 0x563   :  { %v1736_v35 = vpop.xlane.xlu1 %1735  ;;  %1386 = vmax.xlane.f32.xlu0 %v1385_v15  ;;  %v1719_v4 = vsel %vm3487_vm9, %v2763_v8, -inf  ;;  %vm3497_vm9 = vmmov %vm3490_vm4 }
 0x564   :  { %v1758_v28 = vsel %vm3498_vm6, %v1733_v2, %v1736_v35  ;;  %vm3499_vm15 = vmmov %vm3496_vm1 }
 0x565   :  { %vm3501_vm11 = vmmov %vm3497_vm9 }
 0x566   :  { %1401 = vmax.xlane.f32.xlu1 %v1400_v50  ;;  %vm3502_vm8 = vmmov %vm3496_vm1 }
 0x567   :  { %v1250_v34 = vpop.xlane.xlu1 %1249  ;;  %1714 = vmax.xlane.f32.xlu0 %v1713_v58  ;;  %vm3503_vm3 = vmmov %vm3497_vm9 }
 0x56a   :  { %1729 = vmax.xlane.f32.xlu1 %v1728_v7 }
 0x56b   :  { %v1411_v19 = vpop.xlane.xlu1 %1410  ;;  %1389 = vmax.xlane.f32.xlu0 %v1388_v21 }
 0x56e   :  { %1565 = vmax.xlane.f32.xlu1 %v1564_v54 }
 0x56f   :  { %v1739_v55 = vpop.xlane.xlu1 %1738  ;;  %1717 = vmax.xlane.f32.xlu0 %v1716_v18 }
 0x570   :  { %v1759_v42 = vsel %vm3499_vm15, %v1758_v28, %v1739_v55 }
 0x573   :  { %v1414_v31 = vpop.xlane.xlu1 %1413  ;;  %1392 = vmax.xlane.f32.xlu0 %v1391_v24 }
 0x577   :  { %v1572_v36 = vpop.xlane.xlu1 %1571  ;;  %1720 = vmax.xlane.f32.xlu0 %v1719_v4 }
 0x57b   :  { %v1575_v56 = vpop.xlane.xlu1 %1574  ;;  %1395 = vmax.xlane.f32.xlu0 %v1394_v20 }
 0x57f   :  { %v1202_v17 = vpop.xlane.xlu1 %1201  ;;  %1723 = vmax.xlane.f32.xlu0 %v1722_v1 }
 0x580   :  { %v1253_v45 = vsel %vm3490_vm4, %v2971_v10, %v1202_v17  ;;  %vm3500_vm4 = vmmov %vm3498_vm6  ;;  %vm3508_vm6 = vcmask 39936  }
 0x581   :  { %vm3504_vm2 = vmmov %vm3500_vm4 }
 0x582   :  { %v1266_v63 = vsel %vm3504_vm2, %v2991_v29, %v3017_v37  ;;  %vm3509_vm15 = vmmov %vm3504_vm2 }
 0x583   :  { %v1208_v46 = vpop.xlane.xlu1 %1207  ;;  %1398 = vmax.xlane.f32.xlu0 %v1397_v51 }
 0x587   :  { %v1214_v25 = vpop.xlane.xlu1 %1213  ;;  %1726 = vmax.xlane.f32.xlu0 %v1725_v43 }
 0x58b   :  { %v1220_v39 = vpop.xlane.xlu1 %1219  ;;  %1559 = vmax.xlane.f32.xlu0 %v1558_v60 }
 0x58f   :  { %v1360_v9 = vpop.xlane.xlu1 %1359  ;;  %1562 = vmax.xlane.f32.xlu0 %v1561_v0 }
 0x593   :  { %v1688_v10 = vpop.xlane.xlu1 %1687 }
 0x594   :  { %v1405_v49 = vpop.xlane.xlu0 %1404 }
 0x595   :  { %v1430_v13 = vsel %vm3495_vm14, %v1405_v49, %v3056_v26  ;;  %vm3505_vm14 = vmmov %vm3496_vm1 }
 0x596   :  { %v1431_v5 = vsel %vm3496_vm1, %v1430_v13, %v1411_v19  ;;  %v1267_v32 = vsel %vm3505_vm14, %v1266_v63, %v3041_v6  ;;  %vm3506_vm1 = vmmov %vm3503_vm3  ;;  %vm3515_vm14 = vcmask 80896  }
 0x597   :  { %v1691_v8 = vpop.xlane.xlu1 %1690  ;;  %v1432_v48 = vsel %vm3497_vm9, %v1431_v5, %v1414_v31  ;;  %v1268_v26 = vsel %vm3506_vm1, %v1267_v32, %v1250_v34  ;;  %vm3507_vm9 = vcmask 31744  }
 0x598   :  { %1434 = vrot.lane.b32.xlu1 %v1432_v48, %s1903_s30  ;;  %v1569_v57 = vpop.xlane.xlu0 %1568 }
 0x599   :  { %v1594_v61 = vsel %vm3500_vm4, %v1569_v57, %v1572_v36  ;;  %vm3510_vm4 = vmmov %vm3504_vm2 }
 0x59a   :  { %v1595_v23 = vsel %vm3502_vm8, %v1594_v61, %v1575_v56  ;;  %vm3514_vm2 = vmmov %vm3506_vm1 }
 0x59b   :  { %v1521_v22 = vpop.xlane.xlu1 %1520 }
 0x59c   :  { %v1742_v53 = vpop.xlane.xlu0 %1741 }
 0x59d   :  { %v1760_v16 = vsel %vm3501_vm11, %v1759_v42, %v1742_v53  ;;  %vm3511_vm11 = vmmov %vm3502_vm8 }
 0x59e   :  { %1762 = vrot.lane.b32.xlu1 %v1760_v16, %s1903_s30  ;;  %vm3512_vm8 = vmmov %vm3506_vm1 }
 0x59f   :  { %v1694_v62 = vpop.xlane.xlu1 %1693  ;;  %vm3516_vm1 = vmmov %vm3510_vm4 }
 0x5a0   :  { %v1578_v3 = vpop.xlane.xlu0 %1577 }
 0x5a1   :  { %v1596_v11 = vsel %vm3503_vm3, %v1595_v23, %v1578_v3  ;;  %vm3513_vm3 = vmmov %vm3511_vm11 }
 0x5a2   :  { %1598 = vrot.lane.b32.xlu1 %v1596_v11, %s1903_s30 }
 0x5a3   :  { %v1527_v30 = vpop.xlane.xlu1 %1526 }
 0x5a4   :  { %v1205_v47 = vpop.xlane.xlu0 %1204 }
 0x5a5   :  { %v1254_v44 = vsel %vm3507_vm9, %v1253_v45, %v1205_v47  ;;  %1270 = vrot.lane.b32.xlu0 %v1268_v26, %s1903_s30  ;;  %vm3517_vm9 = vmmov %vm3513_vm3 }
 0x5a6   :  { %v1255_v41 = vsel %vm3508_vm6, %v1254_v44, %v1208_v46  ;;  %vm3518_vm6 = vcmask 31744  }
 0x5a7   :  { %v1372_v27 = vpop.xlane.xlu1 %1371 }
 0x5a8   :  { %v1211_v14 = vpop.xlane.xlu0 %1210 }
 0x5a9   :  { %v1256_v52 = vsel %vm260_vm13, %v1255_v41, %v1211_v14 }
 0x5aa   :  { %v1257_v29 = vsel %vm262_vm0, %v1256_v52, %v1214_v25 }
 0x5ab   :  { %v1700_v37 = vpop.xlane.xlu1 %1699 }
 0x5ac   :  { %v1217_v38 = vpop.xlane.xlu0 %1216 }
 0x5ad   :  { %v1258_v6 = vsel %vm264_vm12, %v1257_v29, %v1217_v38 }
 0x5ae   :  { %v1259_v2 = vsel %vm266_vm7, %v1258_v6, %v1220_v39 }
 0x5af   :  { %v1533_v33 = vpop.xlane.xlu1 %1532 }
 0x5b0   :  { %v1357_v12 = vpop.xlane.xlu0 %1356 }
 0x5b1   :  { %v1415_v40 = vsel %vm3509_vm15, %v1357_v12, %v1360_v9  ;;  %vm3519_vm15 = vcmask 39936  }
 0x5b3   :  { %v1378_v15 = vpop.xlane.xlu1 %1377 }
 0x5b4   :  { %v1685_v35 = vpop.xlane.xlu0 %1684 }
 0x5b5   :  { %v1743_v50 = vsel %vm3510_vm4, %v1685_v35, %v1688_v10  ;;  %vm3520_vm4 = vmmov %vm3518_vm6 }
 0x5b6   :  { %v1744_v58 = vsel %vm3511_vm11, %v1743_v50, %v1691_v8  ;;  %vm3521_vm11 = vmmov %vm3519_vm15 }
 0x5b7   :  { %v1706_v34 = vpop.xlane.xlu1 %1705  ;;  %v1745_v7 = vsel %vm3512_vm8, %v1744_v58, %v1694_v62  ;;  %vm3522_vm8 = vmmov %vm3514_vm2 }
 0x5b8   :  { %v1363_v21 = vpop.xlane.xlu0 %1362 }
 0x5b9   :  { %v1416_v19 = vsel %vm3513_vm3, %v1415_v40, %v1363_v21  ;;  %vm3523_vm3 = vmmov %vm3520_vm4 }
 0x5bb   :  { %v1539_v54 = vpop.xlane.xlu1 %1538 }
 0x5bc   :  { %v1366_v18 = vpop.xlane.xlu0 %1365 }
 0x5bd   :  { %v1417_v55 = vsel %vm3514_vm2, %v1416_v19, %v1366_v18  ;;  %vm3524_vm2 = vmmov %vm3521_vm11 }
 0x5bf   :  { %v1223_v24 = vpop.xlane.xlu1 %1222 }
 0x5c0   :  { %v3133_v31 = vsel %vm3515_vm14, %v1259_v2, %v1223_v24  ;;  %v1524_v4 = vpop.xlane.xlu0 %1523 }
 0x5c1   :  { %v1579_v36 = vsel %vm3516_vm1, %v1521_v22, %v1524_v4  ;;  %vm3525_vm1 = vcmask 89088  }
 0x5c2   :  { %v1580_v20 = vsel %vm3517_vm9, %v1579_v36, %v1527_v30  ;;  %vm3526_vm9 = vcmask 97280  }
 0x5c3   :  { %v1542_v56 = vpop.xlane.xlu1 %1541 }
 0x5c4   :  { %v1369_v1 = vpop.xlane.xlu0 %1368 }
 0x5c5   :  { %v1418_v17 = vsel %vm3518_vm6, %v1417_v55, %v1369_v1  ;;  %vm3527_vm6 = vcmask 105472  }
 0x5c6   :  { %v1419_v45 = vsel %vm3519_vm15, %v1418_v17, %v1372_v27  ;;  %vm3530_vm15 = vmmov %vm3525_vm1 }
 0x5c7   :  { %v3139_v51 = vpop.xlane.xlu1 %1225 }
 0x5c8   :  { %v1697_v46 = vpop.xlane.xlu0 %1696 }
 0x5c9   :  { %v1746_v43 = vsel %vm3520_vm4, %v1745_v7, %v1697_v46  ;;  %vm3531_vm4 = vmmov %vm3526_vm9 }
 0x5ca   :  { %v1747_v25 = vsel %vm3521_vm11, %v1746_v43, %v1700_v37  ;;  %vm3532_vm11 = vcmask 121856  }
 0x5cb   :  { %v1545_v60 = vpop.xlane.xlu1 %1544 }
 0x5cc   :  { %v1530_v39 = vpop.xlane.xlu0 %1529 }
 0x5cd   :  { %v1581_v0 = vsel %vm3522_vm8, %v1580_v20, %v1530_v39  ;;  %vm3534_vm8 = vmmov %vm3527_vm6 }
 0x5ce   :  { %v1582_v9 = vsel %vm3523_vm3, %v1581_v0, %v1533_v33  ;;  %vm3535_vm3 = vmmov %vm3525_vm1 }
 0x5cf   :  { %v3145_v10 = vpop.xlane.xlu1 %1228 }
 0x5d0   :  { %v1375_v49 = vpop.xlane.xlu0 %1374 }
 0x5d1   :  { %v1420_v13 = vsel %vm260_vm13, %v1419_v45, %v1375_v49 }
 0x5d2   :  { %v1421_v5 = vsel %vm262_vm0, %v1420_v13, %v1378_v15 }
 0x5d3   :  { %v1548_v57 = vpop.xlane.xlu1 %1547 }
 0x5d4   :  { %v1703_v8 = vpop.xlane.xlu0 %1702 }
 0x5d5   :  { %v1748_v48 = vsel %vm260_vm13, %v1747_v25, %v1703_v8 }
 0x5d6   :  { %v1749_v28 = vsel %vm262_vm0, %v1748_v48, %v1706_v34 }
 0x5d7   :  { %v1232_v42 = vpop.xlane.xlu1 %1231 }
 0x5d8   :  { %v1536_v22 = vpop.xlane.xlu0 %1535 }
 0x5d9   :  { %v1583_v29 = vsel %vm3524_vm2, %v1582_v9, %v1536_v22 }
 0x5da   :  { %v1584_v6 = vsel %vm260_vm13, %v1583_v29, %v1539_v54  ;;  %vm3528_vm13 = vcmask 113664  }
 0x5db   :  { %v1551_v16 = vpop.xlane.xlu1 %1550  ;;  %v1585_v33 = vsel %vm262_vm0, %v1584_v6, %v1542_v56  ;;  %vm3529_vm0 = vmmov %vm3515_vm14 }
 0x5dc   :  { %v1381_v53 = vpop.xlane.xlu0 %1380  ;;  %v1586_v58 = vsel %vm264_vm12, %v1585_v33, %v1545_v60  ;;  %vm3536_vm2 = vmmov %vm3528_vm13 }
 0x5dd   :  { %v1422_v7 = vsel %vm264_vm12, %v1421_v5, %v1381_v53  ;;  %v1587_v24 = vsel %vm266_vm7, %v1586_v58, %v1548_v57 }
 0x5df   :  { %v1235_v23 = vpop.xlane.xlu1 %1234 }
 0x5e0   :  { %v1709_v61 = vpop.xlane.xlu0 %1708 }
 0x5e1   :  { %v1750_v2 = vsel %vm264_vm12, %v1749_v28, %v1709_v61  ;;  %vm3533_vm12 = vmmov %vm3529_vm0 }
 0x5e2   :  { %v1588_v45 = vsel %vm3533_vm12, %v1587_v24, %v1551_v16  ;;  %v1807_v16 = vstv %s2087_s24  ;;  %vm1800_vm12 = vcmask 1045504  }
 0x5e3   :  { %v1554_v63 = vpop.xlane.xlu1 %1553 }
 0x5e4   :  { %v1384_v62 = vpop.xlane.xlu0 %1383  ;;  %v1589_v43 = vsel %vm3535_vm3, %v1588_v45, %v1554_v63 }
 0x5e5   :  { %v1423_v18 = vsel %vm266_vm7, %v1422_v7, %v1384_v62 }
 0x5e7   :  { %v1238_v30 = vpop.xlane.xlu1 %1237 }
 0x5e8   :  { %v1712_v3 = vpop.xlane.xlu0 %1711 }
 0x5e9   :  { %v1751_v12 = vsel %vm266_vm7, %v1750_v2, %v1712_v3  ;;  %vm3538_vm7 = vmmov %vm3525_vm1 }
 0x5ea   :  { %v1261_v0 = vsel %vm3538_vm7, %v3133_v31, %v3139_v51 }
 0x5eb   :  { %v1557_v44 = vpop.xlane.xlu1 %1556 }
 0x5ec   :  { %v1387_v11 = vpop.xlane.xlu0 %1386 }
 0x5ed   :  { %v1424_v4 = vsel %vm3529_vm0, %v1423_v18, %v1387_v11 }
 0x5ef   :  { %v1402_v27 = vpop.xlane.xlu1 %1401 }
 0x5f0   :  { %v1715_v32 = vpop.xlane.xlu0 %1714 }
 0x5f1   :  { %v1752_v35 = vsel %vm3515_vm14, %v1751_v12, %v1715_v32  ;;  %vm3537_vm14 = vmmov %vm3531_vm4 }
 0x5f2   :  { %v1590_v60 = vsel %vm3537_vm14, %v1589_v43, %v1557_v44 }
 0x5f3   :  { %v1730_v37 = vpop.xlane.xlu1 %1729 }
 0x5f4   :  { %v1390_v26 = vpop.xlane.xlu0 %1389 }
 0x5f5   :  { %v1425_v36 = vsel %vm3530_vm15, %v1424_v4, %v1390_v26 }
 0x5f7   :  { %v1566_v40 = vpop.xlane.xlu1 %1565 }
 0x5f8   :  { %v1718_v47 = vpop.xlane.xlu0 %1717 }
 0x5f9   :  { %v1753_v50 = vsel %vm3525_vm1, %v1752_v35, %v1718_v47  ;;  %vm3539_vm1 = vmmov %vm3527_vm6 }
 0x5fa   :  { %vm3543_vm0 = vmmov %vm3539_vm1 }
 0x5fc   :  { %v1393_v41 = vpop.xlane.xlu0 %1392 }
 0x5fd   :  { %v1426_v20 = vsel %vm3531_vm4, %v1425_v36, %v1393_v41 }
 0x600   :  { %v1721_v14 = vpop.xlane.xlu0 %1720 }
 0x601   :  { %v1754_v34 = vsel %vm3526_vm9, %v1753_v50, %v1721_v14  ;;  %vm3540_vm9 = vmmov %vm3531_vm4 }
 0x602   :  { %v1262_v13 = vsel %vm3540_vm9, %v1261_v0, %v3145_v10  ;;  %vm3545_vm4 = vmmov %vm3536_vm2 }
 0x603   :  { %v1263_v48 = vsel %vm3543_vm0, %v1262_v13, %v1232_v42 }
 0x604   :  { %v1396_v52 = vpop.xlane.xlu0 %1395  ;;  %v1264_v53 = vsel %vm3545_vm4, %v1263_v48, %v1235_v23 }
 0x605   :  { %v1427_v46 = vsel %vm3534_vm8, %v1426_v20, %v1396_v52  ;;  %vm1802_vm8 = vcmask 1046528  }
 0x608   :  { %v1724_v38 = vpop.xlane.xlu0 %1723 }
 0x609   :  { %v1755_v21 = vsel %vm3527_vm6, %v1754_v34, %v1724_v38  ;;  %vm3541_vm6 = vmmov %vm3532_vm11 }
 0x60a   :  { %v1435_v19 = vpop.permute.xlu1 %1434  ;;  %vm3544_vm15 = vmmov %vm3541_vm6 }
 0x60c   :  { %v1399_v15 = vpop.xlane.xlu0 %1398 }
 0x60d   :  { %v1428_v25 = vsel %vm3536_vm2, %v1427_v46, %v1399_v15 }
 0x60e   :  { %v1429_v5 = vsel %vm3541_vm6, %v1428_v25, %v1402_v27 }
 0x60f   :  { %v1437_v61 = vsel %vm287_vm5, %v1429_v5, %v1435_v19 }
 0x610   :  { %v1727_v54 = vpop.xlane.xlu0 %1726  ;;  %v1763_v56 = vpop.permute.xlu1 %1762  ;;  %v1785_v63 = vrot.slane %v1437_v61, 1 }
 0x611   :  { %v1756_v55 = vsel %vm3528_vm13, %v1755_v21, %v1727_v54  ;;  %vm3542_vm13 = vmmov %vm3536_vm2 }
 0x612   :  { %v1757_v1 = vsel %vm3532_vm11, %v1756_v55, %v1730_v37  ;;  %vm3546_vm11 = vmmov %vm3541_vm6 }
 0x613   :  { %v1765_v39 = vsel %vm287_vm5, %v1757_v1, %v1763_v56  ;;  %v1265_v51 = vsel %vm3546_vm11, %v1264_v53, %v1238_v30 }
 0x614   :  { %v1560_v17 = vpop.xlane.xlu0 %1559  ;;  %v1788_v57 = vrot.slane %v1765_v39, 7  ;;  %v1599_v28 = vpop.permute.xlu1 %1598 }
 0x615   :  { %v1591_v9 = vsel %vm3539_vm1, %v1590_v60, %v1560_v17 }
 0x618   :  { %v1563_v49 = vpop.xlane.xlu0 %1562 }
 0x619   :  { %v1592_v8 = vsel %vm3542_vm13, %v1591_v9, %v1563_v49 }
 0x61a   :  { %v1593_v22 = vsel %vm3544_vm15, %v1592_v8, %v1566_v40 }
 0x61b   :  { %v1601_v31 = vsel %vm287_vm5, %v1593_v22, %v1599_v28 }
 0x61c   :  { %v1804_v10 = vsel %vm1790_vm10, %v1601_v31, %v1788_v57  ;;  %v1271_v62 = vpop.permute.xlu0 %1270  ;;  %vm1822_vm10 = vcmask 162816  }
 0x61d   :  { %v1806_v3 = vmul.f32 0.5, %v1804_v10  ;;  %v1273_v42 = vsel %vm287_vm5, %v1265_v51, %v1271_v62  ;;  %vm1824_vm5 = vcmask 156672  }
 0x61e   :  { %v1782_v11 = vrot.slane %v1273_v42, 2 }
 0x61f   :  { %v1809_v32 = vadd.f32 %v1807_v16, %v1806_v3 }
 0x620   :  { %v1801_v23 = vsel %vm1800_vm12, %v3066_v59, %v1782_v11 }
 0x621   :  { %v1835_v26 = vmul.f32 -1.442695, %v1809_v32  ;;  %v1803_v47 = vsel %vm1802_vm8, %v1801_v23, %v1785_v63 }
 0x622   :  { %v1805_v44 = vmul.f32 0.5, %v1803_v47 }
 0x623   :  { %1848 = vpow2.f32 %v1835_v26 }
 0x624   :  { %v1808_v30 = vadd.f32 %v1807_v16, %v1805_v44 }
 0x626   :  { %v1834_v41 = vmul.f32 -1.442695, %v1808_v30 }
 0x628   :  { %1850 = vpow2.f32 %v1834_v41 }
 0x630   :  { %v1849_v27 = vpop.eup %1848 }
 0x631   :  { %v1817_v14 = vadd.f32 1.0, %v1849_v27 }
 0x633   :  { %1852 = vrcp.f32 %v1817_v14 }
 0x635   :  { %v1851_v52 = vpop.eup %1850 }
 0x636   :  { %v1816_v29 = vadd.f32 1.0, %v1851_v52 }
 0x638   :  { %1854 = vrcp.f32 %v1816_v29 }
 0x640   :  { %v1853_v37 = vpop.eup %1852 }
 0x641   :  { %1825 = vst.msk [vmem:[%s3201_s2 + $0x8] sm:$0x3] %vm1824_vm5, %v1853_v37 }
 0x645   :  { %v1855_v59 = vpop.eup %1854 }
 0x646   :  { %1823 = vst.msk [vmem:[%s3201_s2] sm:$0xff] %vm1822_vm10, %v1855_v59 }
 0x647   :  { %1830 = vsyncpa [#allocation4], 1 }
 0x648   :  { %1831 = vsyncpa [#allocation5], 1 }

</bundles_post_ra>
